<compile_context>
chip_gen: v5e
topology: v5e:2x2
jax: 0.10.0
libtpu: 0.0.40
codegen_flags: <defaults>
</compile_context>

<pallas_src>
import functools
import math

import jax
import jax.numpy as jnp
from jax import lax
from jax.experimental import pallas as pl
from jax.experimental.pallas import tpu as pltpu


def _layernorm(x, w, b, eps=1e-5):
    mu = jnp.mean(x, axis=-1, keepdims=True)
    var = jnp.mean((x - mu) ** 2, axis=-1, keepdims=True)
    return (x - mu) * lax.rsqrt(var + eps) * w + b


def _gelu_exact(x):
    # torch nn.GELU() default is the exact erf formulation
    return 0.5 * x * (1.0 + lax.erf(x * (1.0 / math.sqrt(2.0))))


def block_kernel(x_ref,
                 ln1_w_ref, ln1_b_ref,
                 qkv_w_ref,
                 proj_w_ref, proj_b_ref,
                 ln2_w_ref, ln2_b_ref,
                 fc1_w_ref, fc1_b_ref,
                 dw_w_ref, dw_b_ref, masks_ref,
                 fc2_w_ref, fc2_b_ref,
                 out_ref,
                 *, H, W, num_heads):
    f32 = jnp.float32
    bf16 = jnp.bfloat16
    N = H * W

    x = x_ref[...]                                           # (N, C) f32 — one image per grid step
    C = x.shape[-1]
    hd = C // num_heads

    # ---------------- Attention branch: x + proj(softmax(q k^T) v) ----------------
    # (softmax scale already folded into the q columns of the fused qkv weight)
    xn = _layernorm(x, ln1_w_ref[...], ln1_b_ref[...])
    qkv = jnp.dot(xn.astype(bf16), qkv_w_ref[...],
                  preferred_element_type=f32)                # (N, 3C) — single wide MXU pass
    qkv_b = qkv.astype(bf16)

    heads_o = []
    for h in range(num_heads):
        q = qkv_b[:, h * hd:(h + 1) * hd]                    # (N, hd) bf16
        k = qkv_b[:, C + h * hd:C + (h + 1) * hd]
        v = qkv_b[:, 2 * C + h * hd:2 * C + (h + 1) * hd]
        s = lax.dot_general(q, k, (((1,), (1,)), ((), ())),
                            preferred_element_type=f32)      # (N, N) = q @ k^T (scale folded)
        s = s - jnp.max(s, axis=-1, keepdims=True)
        p = jnp.exp(s)
        p = p * pl.reciprocal(jnp.sum(p, axis=-1, keepdims=True), approx=True)
        o = jnp.dot(p.astype(bf16), v, preferred_element_type=f32)   # (N, hd)
        heads_o.append(o)                                    # only (N, hd) survives the iteration
    o_cat = (jnp.concatenate(heads_o, axis=-1) if num_heads > 1
             else heads_o[0]).astype(bf16)                   # (N, C) head-major lanes
    attn_out = jnp.dot(o_cat, proj_w_ref[...],
                       preferred_element_type=f32) + proj_b_ref[...]  # single K=C projection
    x1 = x + attn_out

    # ---------------- MLP branch: fc1 -> depthwise 3x3 conv -> GELU -> fc2 ----------------
    xn2 = _layernorm(x1, ln2_w_ref[...], ln2_b_ref[...])
    hid = jnp.dot(xn2.astype(bf16), fc1_w_ref[...],
                  preferred_element_type=f32) + fc1_b_ref[...]        # (N, H1) f32

    # Depthwise conv on the flat per-image token axis: neighbour (di, dj) of token n lives at
    # n + di*W + dj. Row-offset rolls (+/-W) are composed with +/-1 column rolls; precomputed
    # boundary masks (one column per non-centre tap) zero out-of-image taps.
    conv = hid * dw_w_ref[4:5, :]                            # centre tap (ki=1, kj=1)
    t = 0
    for di in (-1, 0, 1):
        base = hid if di == 0 else pltpu.roll(hid, shift=(-di * W) % N, axis=0)
        for dj in (-1, 0, 1):
            if di == 0 and dj == 0:
                continue
            tap = base if dj == 0 else pltpu.roll(base, shift=(-dj) % N, axis=0)
            widx = (di + 1) * 3 + (dj + 1)
            conv = conv + (tap * masks_ref[:, t:t + 1]) * dw_w_ref[widx:widx + 1, :]
            t += 1
    conv = conv + dw_b_ref[...]

    act = _gelu_exact(conv)
    mlp = jnp.dot(act.astype(bf16), fc2_w_ref[...],
                  preferred_element_type=f32) + fc2_b_ref[...]

    out_ref[...] = (x1 + mlp).astype(out_ref.dtype)


def pvt_block_forward(x, params, H, W, num_heads):
    B, N, C = x.shape
    assert N == H * W
    assert N % 8 == 0
    hd = C // num_heads
    H1 = params['fc1_w'].shape[1]
    scale = hd ** (-0.5)

    f32 = jnp.float32
    bf16 = jnp.bfloat16

    # fused qkv weight, softmax scale folded into the q columns
    qkv_w = params['qkv_w'].astype(f32)
    qkv_w = jnp.concatenate([qkv_w[:, :C] * scale, qkv_w[:, C:]], axis=1).astype(bf16)
    proj_w = params['proj_w'].astype(bf16)                   # rows already head-major

    # static 3x3 depthwise-conv boundary masks, one column per non-centre tap (built in XLA)
    ii = jnp.arange(N, dtype=jnp.int32) // W
    jj = jnp.arange(N, dtype=jnp.int32) % W
    cols = []
    for di in (-1, 0, 1):
        for dj in (-1, 0, 1):
            if di == 0 and dj == 0:
                continue
            m = jnp.ones((N,), f32)
            if di == -1:
                m = m * (ii >= 1)
            elif di == 1:
                m = m * (ii <= H - 2)
            if dj == -1:
                m = m * (jj >= 1)
            elif dj == 1:
                m = m * (jj <= W - 2)
            cols.append(m)
    masks = jnp.stack(cols, axis=-1).astype(f32)             # (N, 8)

    r1 = lambda a: a.reshape(1, -1).astype(f32)              # 1-D params -> (1, D)
    const = lambda shape: pl.BlockSpec(shape, lambda b: (0,) * len(shape))

    kern = functools.partial(block_kernel, H=H, W=W, num_heads=num_heads)

    in_specs = [
        pl.BlockSpec((N, C), lambda b: (b, 0)),              # x: one image per grid step
        const((1, C)), const((1, C)),                        # ln1 w, b
        const((C, 3 * C)),                                   # fused qkv weight (bf16)
        const((C, C)), const((1, C)),                        # proj w (bf16), b
        const((1, C)), const((1, C)),                        # ln2 w, b
        const((C, H1)), const((1, H1)),                      # fc1 w, b
        const((9, H1)), const((1, H1)),                      # depthwise conv w (tap-major), b
        const((N, 8)),                                       # precomputed boundary masks
        const((H1, C)), const((1, C)),                       # fc2 w, b
    ]

    out_flat = pl.pallas_call(
        kern,
        out_shape=jax.ShapeDtypeStruct((B * N, C), f32),
        grid_spec=pltpu.PrefetchScalarGridSpec(
            num_scalar_prefetch=0,
            grid=(B,),                                       # one image per grid step
            in_specs=in_specs,
            out_specs=pl.BlockSpec((N, C), lambda b: (b, 0)),
        ),
        compiler_params=pltpu.CompilerParams(
            dimension_semantics=("parallel",),
            vmem_limit_bytes=48 * 1024 * 1024),
    )(x.reshape(B * N, C),
      r1(params['ln1_w']), r1(params['ln1_b']),
      qkv_w,
      proj_w, r1(params['proj_b']),
      r1(params['ln2_w']), r1(params['ln2_b']),
      params['fc1_w'].astype(bf16), r1(params['fc1_b']),
      params['dw_w'].astype(f32), r1(params['dw_b']),
      masks,
      params['fc2_w'].astype(bf16), r1(params['fc2_b']))

    return out_flat.reshape(B, N, C)


def reference_block(x, p, H, W, num_heads):
    """Pure-JAX (f32) reference mirroring the PyTorch Block forward."""
    B, N, C = x.shape
    hd = C // num_heads
    scale = hd ** (-0.5)

    def ln(z, w, b, eps=1e-5):
        mu = z.mean(-1, keepdims=True)
        var = ((z - mu) ** 2).mean(-1, keepdims=True)
        return (z - mu) / jnp.sqrt(var + eps) * w + b

    # Attention
    xn = ln(x, p['ln1_w'], p['ln1_b'])
    qkv = xn @ p['qkv_w']
    qkv = qkv.reshape(B, N, 3, num_heads, hd).transpose(2, 0, 3, 1, 4)
    q, k, v = qkv[0], qkv[1], qkv[2]
    attn = jnp.einsum('bhnd,bhmd->bhnm', q, k) * scale
    attn = jax.nn.softmax(attn, axis=-1)
    o = jnp.einsum('bhnm,bhmd->bhnd', attn, v)
    o = o.transpose(0, 2, 1, 3).reshape(B, N, C)
    o = o @ p['proj_w'] + p['proj_b']
    x1 = x + o

    # Mlp with depthwise conv
    xn2 = ln(x1, p['ln2_w'], p['ln2_b'])
    hid = xn2 @ p['fc1_w'] + p['fc1_b']
    H1 = hid.shape[-1]
    himg = hid.reshape(B, H, W, H1)
    kern = p['dw_w'].reshape(3, 3, H1)[:, :, None, :]        # HWIO, I=1 (grouped)
    conv = lax.conv_general_dilated(
        himg, kern, window_strides=(1, 1), padding='SAME',
        dimension_numbers=('NHWC', 'HWIO', 'NHWC'),
        feature_group_count=H1)
    conv = conv + p['dw_b']
    act = 0.5 * conv * (1.0 + lax.erf(conv / jnp.sqrt(2.0)))
    m = act.reshape(B, N, H1) @ p['fc2_w'] + p['fc2_b']
    return x1 + m


if __name__ == "__main__":
    # Small shapes consistent with the module: B=2, H=W=8 (N=64), dim=32, heads=4, mlp_ratio=4
    B, Hs, Ws, C, num_heads = 2, 8, 8, 32, 4
    N = Hs * Ws
    H1 = 4 * C  # mlp_hidden_dim

    key = jax.random.PRNGKey(0)
    ks = jax.random.split(key, 12)

    params = {
        'ln1_w': jnp.ones((C,), jnp.float32),
        'ln1_b': jnp.zeros((C,), jnp.float32),
        # qkv weight stored pre-transposed so that y = x @ W  (torch: y = x @ weight.T)
        'qkv_w': 0.02 * jax.random.normal(ks[0], (C, 3 * C), jnp.float32),
        'proj_w': 0.02 * jax.random.normal(ks[1], (C, C), jnp.float32),
        'proj_b': 0.02 * jax.random.normal(ks[2], (C,), jnp.float32),
        'ln2_w': jnp.ones((C,), jnp.float32),
        'ln2_b': jnp.zeros((C,), jnp.float32),
        'fc1_w': 0.02 * jax.random.normal(ks[3], (C, H1), jnp.float32),
        'fc1_b': 0.02 * jax.random.normal(ks[4], (H1,), jnp.float32),
        # depthwise 3x3 weight stored as (9, H1): row ki*3+kj == torch weight[:, 0, ki, kj]
        'dw_w': math.sqrt(2.0 / 9.0) * jax.random.normal(ks[5], (9, H1), jnp.float32),
        'dw_b': 0.02 * jax.random.normal(ks[6], (H1,), jnp.float32),
        'fc2_w': 0.02 * jax.random.normal(ks[7], (H1, C), jnp.float32),
        'fc2_b': 0.02 * jax.random.normal(ks[8], (C,), jnp.float32),
    }

    x = jax.random.normal(ks[9], (B, N, C), jnp.float32)

    out = pvt_block_forward(x, params, Hs, Ws, num_heads)
    out = jax.block_until_ready(out)

    ref = reference_block(x, params, Hs, Ws, num_heads)
    assert out.shape == (B, N, C)
    # tolerance loosened vs. pure-f32: matmuls use bf16 operands (f32 accumulation) and the
    # softmax denominator uses the EUP approximate reciprocal.
    max_err = jnp.max(jnp.abs(out - ref))
    assert jnp.allclose(out, ref, atol=5e-3, rtol=5e-3), f"max abs err {max_err}"

    print("KERNEL_OK")
</pallas_src>

<mosaic_0001>
module attributes {stable_mosaic.version = 11 : i64} {
  func.func @block_kernel(%arg0: i32, %arg1: memref<64x32xf32, #tpu.memory_space<vmem>>, %arg2: memref<1x32xf32, #tpu.memory_space<vmem>>, %arg3: memref<1x32xf32, #tpu.memory_space<vmem>>, %arg4: memref<32x96xbf16, #tpu.memory_space<vmem>>, %arg5: memref<32x32xbf16, #tpu.memory_space<vmem>>, %arg6: memref<1x32xf32, #tpu.memory_space<vmem>>, %arg7: memref<1x32xf32, #tpu.memory_space<vmem>>, %arg8: memref<1x32xf32, #tpu.memory_space<vmem>>, %arg9: memref<32x128xbf16, #tpu.memory_space<vmem>>, %arg10: memref<1x128xf32, #tpu.memory_space<vmem>>, %arg11: memref<9x128xf32, #tpu.memory_space<vmem>>, %arg12: memref<1x128xf32, #tpu.memory_space<vmem>>, %arg13: memref<64x8xf32, #tpu.memory_space<vmem>>, %arg14: memref<128x32xbf16, #tpu.memory_space<vmem>>, %arg15: memref<1x32xf32, #tpu.memory_space<vmem>>, %arg16: memref<64x32xf32, #tpu.memory_space<vmem>>) attributes {dimension_semantics = [#tpu.dimension_semantics<parallel>], iteration_bounds = array<i64: 2>, scalar_prefetch = 0 : i64, scratch_operands = 0 : i64, tpu.core_type = #tpu.core_type<tc>, window_params = [{transform_indices = @transform_0, window_bounds = array<i64: 64, 32>}, {pipeline_mode = #tpu.pipeline_mode<synchronous>, transform_indices = @transform_1, window_bounds = array<i64: 1, 32>}, {pipeline_mode = #tpu.pipeline_mode<synchronous>, transform_indices = @transform_2, window_bounds = array<i64: 1, 32>}, {pipeline_mode = #tpu.pipeline_mode<synchronous>, transform_indices = @transform_3, window_bounds = array<i64: 32, 96>}, {pipeline_mode = #tpu.pipeline_mode<synchronous>, transform_indices = @transform_4, window_bounds = array<i64: 32, 32>}, {pipeline_mode = #tpu.pipeline_mode<synchronous>, transform_indices = @transform_5, window_bounds = array<i64: 1, 32>}, {pipeline_mode = #tpu.pipeline_mode<synchronous>, transform_indices = @transform_6, window_bounds = array<i64: 1, 32>}, {pipeline_mode = #tpu.pipeline_mode<synchronous>, transform_indices = @transform_7, window_bounds = array<i64: 1, 32>}, {pipeline_mode = #tpu.pipeline_mode<synchronous>, transform_indices = @transform_8, window_bounds = array<i64: 32, 128>}, {pipeline_mode = #tpu.pipeline_mode<synchronous>, transform_indices = @transform_9, window_bounds = array<i64: 1, 128>}, {pipeline_mode = #tpu.pipeline_mode<synchronous>, transform_indices = @transform_10, window_bounds = array<i64: 9, 128>}, {pipeline_mode = #tpu.pipeline_mode<synchronous>, transform_indices = @transform_11, window_bounds = array<i64: 1, 128>}, {pipeline_mode = #tpu.pipeline_mode<synchronous>, transform_indices = @transform_12, window_bounds = array<i64: 64, 8>}, {pipeline_mode = #tpu.pipeline_mode<synchronous>, transform_indices = @transform_13, window_bounds = array<i64: 128, 32>}, {pipeline_mode = #tpu.pipeline_mode<synchronous>, transform_indices = @transform_14, window_bounds = array<i64: 1, 32>}, {transform_indices = @transform_15, window_bounds = array<i64: 64, 32>}]} {
    %c0 = arith.constant 0 : index
    %c0_0 = arith.constant 0 : index
    %0 = vector.load %arg1[%c0, %c0_0] : memref<64x32xf32, #tpu.memory_space<vmem>>, vector<64x32xf32>
    %c0_1 = arith.constant 0 : index
    %c0_2 = arith.constant 0 : index
    %1 = vector.load %arg2[%c0_1, %c0_2] : memref<1x32xf32, #tpu.memory_space<vmem>>, vector<1x32xf32>
    %c0_3 = arith.constant 0 : index
    %c0_4 = arith.constant 0 : index
    %2 = vector.load %arg3[%c0_3, %c0_4] : memref<1x32xf32, #tpu.memory_space<vmem>>, vector<1x32xf32>
    %cst = arith.constant dense<0.000000e+00> : vector<64xf32>
    %3 = vector.multi_reduction <add>, %0, %cst [1] : vector<64x32xf32> to vector<64xf32>
    %4 = vector.shape_cast %3 : vector<64xf32> to vector<64x1xf32>
    %cst_5 = arith.constant 3.200000e+01 : f32
    %5 = vector.broadcast %cst_5 : f32 to vector<64x1xf32>
    %6 = arith.divf %4, %5 : vector<64x1xf32>
    %7 = vector.broadcast %6 : vector<64x1xf32> to vector<64x32xf32>
    %8 = arith.subf %0, %7 : vector<64x32xf32>
    %9 = arith.mulf %8, %8 : vector<64x32xf32>
    %cst_6 = arith.constant dense<0.000000e+00> : vector<64xf32>
    %10 = vector.multi_reduction <add>, %9, %cst_6 [1] : vector<64x32xf32> to vector<64xf32>
    %11 = vector.shape_cast %10 : vector<64xf32> to vector<64x1xf32>
    %cst_7 = arith.constant 3.200000e+01 : f32
    %12 = vector.broadcast %cst_7 : f32 to vector<64x1xf32>
    %13 = arith.divf %11, %12 : vector<64x1xf32>
    %14 = vector.broadcast %6 : vector<64x1xf32> to vector<64x32xf32>
    %15 = arith.subf %0, %14 : vector<64x32xf32>
    %cst_8 = arith.constant 9.99999974E-6 : f32
    %16 = vector.broadcast %cst_8 : f32 to vector<64x1xf32>
    %17 = arith.addf %13, %16 : vector<64x1xf32>
    %18 = math.rsqrt %17 : vector<64x1xf32>
    %19 = vector.broadcast %18 : vector<64x1xf32> to vector<64x32xf32>
    %20 = arith.mulf %15, %19 : vector<64x32xf32>
    %21 = vector.broadcast %1 : vector<1x32xf32> to vector<64x32xf32>
    %22 = arith.mulf %20, %21 : vector<64x32xf32>
    %23 = vector.broadcast %2 : vector<1x32xf32> to vector<64x32xf32>
    %24 = arith.addf %22, %23 : vector<64x32xf32>
    %25 = arith.truncf %24 : vector<64x32xf32> to vector<64x32xbf16>
    %c0_9 = arith.constant 0 : index
    %c0_10 = arith.constant 0 : index
    %26 = vector.load %arg4[%c0_9, %c0_10] : memref<32x96xbf16, #tpu.memory_space<vmem>>, vector<32x96xbf16>
    %cst_11 = arith.constant dense<0.000000e+00> : vector<64x96xf32>
    %27 = tpu.matmul %25, %26, %cst_11 {dimension_numbers = #tpu.dot_dimension_numbers<[1], [0], [0], [1], [0, 0, 1, 1], [], []>} : vector<64x32xbf16>, vector<32x96xbf16>, vector<64x96xf32> -> vector<64x96xf32>
    %28 = arith.truncf %27 : vector<64x96xf32> to vector<64x96xbf16>
    %29 = vector.extract_strided_slice %28 {offsets = [0, 0], sizes = [64, 8], strides = [1, 1]} : vector<64x96xbf16> to vector<64x8xbf16>
    %30 = vector.extract_strided_slice %28 {offsets = [0, 32], sizes = [64, 8], strides = [1, 1]} : vector<64x96xbf16> to vector<64x8xbf16>
    %31 = vector.extract_strided_slice %28 {offsets = [0, 64], sizes = [64, 8], strides = [1, 1]} : vector<64x96xbf16> to vector<64x8xbf16>
    %cst_12 = arith.constant dense<0.000000e+00> : vector<64x64xf32>
    %32 = tpu.matmul %29, %30, %cst_12 {dimension_numbers = #tpu.dot_dimension_numbers<[1], [1], [0], [0], [0, 0, 1, 0], [], []>} : vector<64x8xbf16>, vector<64x8xbf16>, vector<64x64xf32> -> vector<64x64xf32>
    %cst_13 = arith.constant dense<0xFF800000> : vector<64xf32>
    %33 = vector.multi_reduction <maximumf>, %32, %cst_13 [1] : vector<64x64xf32> to vector<64xf32>
    %34 = vector.shape_cast %33 : vector<64xf32> to vector<64x1xf32>
    %35 = vector.broadcast %34 : vector<64x1xf32> to vector<64x64xf32>
    %36 = arith.subf %32, %35 : vector<64x64xf32>
    %37 = math.exp %36 : vector<64x64xf32>
    %cst_14 = arith.constant dense<0.000000e+00> : vector<64xf32>
    %38 = vector.multi_reduction <add>, %37, %cst_14 [1] : vector<64x64xf32> to vector<64xf32>
    %39 = vector.shape_cast %38 : vector<64xf32> to vector<64x1xf32>
    %40 = tpu.reciprocal %39 {approx = true} : vector<64x1xf32> -> vector<64x1xf32>
    %41 = vector.broadcast %40 : vector<64x1xf32> to vector<64x64xf32>
    %42 = arith.mulf %37, %41 : vector<64x64xf32>
    %43 = arith.truncf %42 : vector<64x64xf32> to vector<64x64xbf16>
    %cst_15 = arith.constant dense<0.000000e+00> : vector<64x8xf32>
    %44 = tpu.matmul %43, %31, %cst_15 {dimension_numbers = #tpu.dot_dimension_numbers<[1], [0], [0], [1], [0, 0, 1, 1], [], []>} : vector<64x64xbf16>, vector<64x8xbf16>, vector<64x8xf32> -> vector<64x8xf32>
    %45 = vector.extract_strided_slice %28 {offsets = [0, 8], sizes = [64, 8], strides = [1, 1]} : vector<64x96xbf16> to vector<64x8xbf16>
    %46 = vector.extract_strided_slice %28 {offsets = [0, 40], sizes = [64, 8], strides = [1, 1]} : vector<64x96xbf16> to vector<64x8xbf16>
    %47 = vector.extract_strided_slice %28 {offsets = [0, 72], sizes = [64, 8], strides = [1, 1]} : vector<64x96xbf16> to vector<64x8xbf16>
    %cst_16 = arith.constant dense<0.000000e+00> : vector<64x64xf32>
    %48 = tpu.matmul %45, %46, %cst_16 {dimension_numbers = #tpu.dot_dimension_numbers<[1], [1], [0], [0], [0, 0, 1, 0], [], []>} : vector<64x8xbf16>, vector<64x8xbf16>, vector<64x64xf32> -> vector<64x64xf32>
    %cst_17 = arith.constant dense<0xFF800000> : vector<64xf32>
    %49 = vector.multi_reduction <maximumf>, %48, %cst_17 [1] : vector<64x64xf32> to vector<64xf32>
    %50 = vector.shape_cast %49 : vector<64xf32> to vector<64x1xf32>
    %51 = vector.broadcast %50 : vector<64x1xf32> to vector<64x64xf32>
    %52 = arith.subf %48, %51 : vector<64x64xf32>
    %53 = math.exp %52 : vector<64x64xf32>
    %cst_18 = arith.constant dense<0.000000e+00> : vector<64xf32>
    %54 = vector.multi_reduction <add>, %53, %cst_18 [1] : vector<64x64xf32> to vector<64xf32>
    %55 = vector.shape_cast %54 : vector<64xf32> to vector<64x1xf32>
    %56 = tpu.reciprocal %55 {approx = true} : vector<64x1xf32> -> vector<64x1xf32>
    %57 = vector.broadcast %56 : vector<64x1xf32> to vector<64x64xf32>
    %58 = arith.mulf %53, %57 : vector<64x64xf32>
    %59 = arith.truncf %58 : vector<64x64xf32> to vector<64x64xbf16>
    %cst_19 = arith.constant dense<0.000000e+00> : vector<64x8xf32>
    %60 = tpu.matmul %59, %47, %cst_19 {dimension_numbers = #tpu.dot_dimension_numbers<[1], [0], [0], [1], [0, 0, 1, 1], [], []>} : vector<64x64xbf16>, vector<64x8xbf16>, vector<64x8xf32> -> vector<64x8xf32>
    %61 = vector.extract_strided_slice %28 {offsets = [0, 16], sizes = [64, 8], strides = [1, 1]} : vector<64x96xbf16> to vector<64x8xbf16>
    %62 = vector.extract_strided_slice %28 {offsets = [0, 48], sizes = [64, 8], strides = [1, 1]} : vector<64x96xbf16> to vector<64x8xbf16>
    %63 = vector.extract_strided_slice %28 {offsets = [0, 80], sizes = [64, 8], strides = [1, 1]} : vector<64x96xbf16> to vector<64x8xbf16>
    %cst_20 = arith.constant dense<0.000000e+00> : vector<64x64xf32>
    %64 = tpu.matmul %61, %62, %cst_20 {dimension_numbers = #tpu.dot_dimension_numbers<[1], [1], [0], [0], [0, 0, 1, 0], [], []>} : vector<64x8xbf16>, vector<64x8xbf16>, vector<64x64xf32> -> vector<64x64xf32>
    %cst_21 = arith.constant dense<0xFF800000> : vector<64xf32>
    %65 = vector.multi_reduction <maximumf>, %64, %cst_21 [1] : vector<64x64xf32> to vector<64xf32>
    %66 = vector.shape_cast %65 : vector<64xf32> to vector<64x1xf32>
    %67 = vector.broadcast %66 : vector<64x1xf32> to vector<64x64xf32>
    %68 = arith.subf %64, %67 : vector<64x64xf32>
    %69 = math.exp %68 : vector<64x64xf32>
    %cst_22 = arith.constant dense<0.000000e+00> : vector<64xf32>
    %70 = vector.multi_reduction <add>, %69, %cst_22 [1] : vector<64x64xf32> to vector<64xf32>
    %71 = vector.shape_cast %70 : vector<64xf32> to vector<64x1xf32>
    %72 = tpu.reciprocal %71 {approx = true} : vector<64x1xf32> -> vector<64x1xf32>
    %73 = vector.broadcast %72 : vector<64x1xf32> to vector<64x64xf32>
    %74 = arith.mulf %69, %73 : vector<64x64xf32>
    %75 = arith.truncf %74 : vector<64x64xf32> to vector<64x64xbf16>
    %cst_23 = arith.constant dense<0.000000e+00> : vector<64x8xf32>
    %76 = tpu.matmul %75, %63, %cst_23 {dimension_numbers = #tpu.dot_dimension_numbers<[1], [0], [0], [1], [0, 0, 1, 1], [], []>} : vector<64x64xbf16>, vector<64x8xbf16>, vector<64x8xf32> -> vector<64x8xf32>
    %77 = vector.extract_strided_slice %28 {offsets = [0, 24], sizes = [64, 8], strides = [1, 1]} : vector<64x96xbf16> to vector<64x8xbf16>
    %78 = vector.extract_strided_slice %28 {offsets = [0, 56], sizes = [64, 8], strides = [1, 1]} : vector<64x96xbf16> to vector<64x8xbf16>
    %79 = vector.extract_strided_slice %28 {offsets = [0, 88], sizes = [64, 8], strides = [1, 1]} : vector<64x96xbf16> to vector<64x8xbf16>
    %cst_24 = arith.constant dense<0.000000e+00> : vector<64x64xf32>
    %80 = tpu.matmul %77, %78, %cst_24 {dimension_numbers = #tpu.dot_dimension_numbers<[1], [1], [0], [0], [0, 0, 1, 0], [], []>} : vector<64x8xbf16>, vector<64x8xbf16>, vector<64x64xf32> -> vector<64x64xf32>
    %cst_25 = arith.constant dense<0xFF800000> : vector<64xf32>
    %81 = vector.multi_reduction <maximumf>, %80, %cst_25 [1] : vector<64x64xf32> to vector<64xf32>
    %82 = vector.shape_cast %81 : vector<64xf32> to vector<64x1xf32>
    %83 = vector.broadcast %82 : vector<64x1xf32> to vector<64x64xf32>
    %84 = arith.subf %80, %83 : vector<64x64xf32>
    %85 = math.exp %84 : vector<64x64xf32>
    %cst_26 = arith.constant dense<0.000000e+00> : vector<64xf32>
    %86 = vector.multi_reduction <add>, %85, %cst_26 [1] : vector<64x64xf32> to vector<64xf32>
    %87 = vector.shape_cast %86 : vector<64xf32> to vector<64x1xf32>
    %88 = tpu.reciprocal %87 {approx = true} : vector<64x1xf32> -> vector<64x1xf32>
    %89 = vector.broadcast %88 : vector<64x1xf32> to vector<64x64xf32>
    %90 = arith.mulf %85, %89 : vector<64x64xf32>
    %91 = arith.truncf %90 : vector<64x64xf32> to vector<64x64xbf16>
    %cst_27 = arith.constant dense<0.000000e+00> : vector<64x8xf32>
    %92 = tpu.matmul %91, %79, %cst_27 {dimension_numbers = #tpu.dot_dimension_numbers<[1], [0], [0], [1], [0, 0, 1, 1], [], []>} : vector<64x64xbf16>, vector<64x8xbf16>, vector<64x8xf32> -> vector<64x8xf32>
    %93 = tpu.concatenate %44, %60, %76, %92 in 1 : vector<64x8xf32>, vector<64x8xf32>, vector<64x8xf32>, vector<64x8xf32> -> vector<64x32xf32>
    %94 = arith.truncf %93 : vector<64x32xf32> to vector<64x32xbf16>
    %c0_28 = arith.constant 0 : index
    %c0_29 = arith.constant 0 : index
    %95 = vector.load %arg5[%c0_28, %c0_29] : memref<32x32xbf16, #tpu.memory_space<vmem>>, vector<32x32xbf16>
    %cst_30 = arith.constant dense<0.000000e+00> : vector<64x32xf32>
    %96 = tpu.matmul %94, %95, %cst_30 {dimension_numbers = #tpu.dot_dimension_numbers<[1], [0], [0], [1], [0, 0, 1, 1], [], []>} : vector<64x32xbf16>, vector<32x32xbf16>, vector<64x32xf32> -> vector<64x32xf32>
    %c0_31 = arith.constant 0 : index
    %c0_32 = arith.constant 0 : index
    %97 = vector.load %arg6[%c0_31, %c0_32] : memref<1x32xf32, #tpu.memory_space<vmem>>, vector<1x32xf32>
    %98 = vector.broadcast %97 : vector<1x32xf32> to vector<64x32xf32>
    %99 = arith.addf %96, %98 : vector<64x32xf32>
    %100 = arith.addf %0, %99 : vector<64x32xf32>
    %c0_33 = arith.constant 0 : index
    %c0_34 = arith.constant 0 : index
    %101 = vector.load %arg7[%c0_33, %c0_34] : memref<1x32xf32, #tpu.memory_space<vmem>>, vector<1x32xf32>
    %c0_35 = arith.constant 0 : index
    %c0_36 = arith.constant 0 : index
    %102 = vector.load %arg8[%c0_35, %c0_36] : memref<1x32xf32, #tpu.memory_space<vmem>>, vector<1x32xf32>
    %cst_37 = arith.constant dense<0.000000e+00> : vector<64xf32>
    %103 = vector.multi_reduction <add>, %100, %cst_37 [1] : vector<64x32xf32> to vector<64xf32>
    %104 = vector.shape_cast %103 : vector<64xf32> to vector<64x1xf32>
    %cst_38 = arith.constant 3.200000e+01 : f32
    %105 = vector.broadcast %cst_38 : f32 to vector<64x1xf32>
    %106 = arith.divf %104, %105 : vector<64x1xf32>
    %107 = vector.broadcast %106 : vector<64x1xf32> to vector<64x32xf32>
    %108 = arith.subf %100, %107 : vector<64x32xf32>
    %109 = arith.mulf %108, %108 : vector<64x32xf32>
    %cst_39 = arith.constant dense<0.000000e+00> : vector<64xf32>
    %110 = vector.multi_reduction <add>, %109, %cst_39 [1] : vector<64x32xf32> to vector<64xf32>
    %111 = vector.shape_cast %110 : vector<64xf32> to vector<64x1xf32>
    %cst_40 = arith.constant 3.200000e+01 : f32
    %112 = vector.broadcast %cst_40 : f32 to vector<64x1xf32>
    %113 = arith.divf %111, %112 : vector<64x1xf32>
    %114 = vector.broadcast %106 : vector<64x1xf32> to vector<64x32xf32>
    %115 = arith.subf %100, %114 : vector<64x32xf32>
    %cst_41 = arith.constant 9.99999974E-6 : f32
    %116 = vector.broadcast %cst_41 : f32 to vector<64x1xf32>
    %117 = arith.addf %113, %116 : vector<64x1xf32>
    %118 = math.rsqrt %117 : vector<64x1xf32>
    %119 = vector.broadcast %118 : vector<64x1xf32> to vector<64x32xf32>
    %120 = arith.mulf %115, %119 : vector<64x32xf32>
    %121 = vector.broadcast %101 : vector<1x32xf32> to vector<64x32xf32>
    %122 = arith.mulf %120, %121 : vector<64x32xf32>
    %123 = vector.broadcast %102 : vector<1x32xf32> to vector<64x32xf32>
    %124 = arith.addf %122, %123 : vector<64x32xf32>
    %125 = arith.truncf %124 : vector<64x32xf32> to vector<64x32xbf16>
    %c0_42 = arith.constant 0 : index
    %c0_43 = arith.constant 0 : index
    %126 = vector.load %arg9[%c0_42, %c0_43] : memref<32x128xbf16, #tpu.memory_space<vmem>>, vector<32x128xbf16>
    %cst_44 = arith.constant dense<0.000000e+00> : vector<64x128xf32>
    %127 = tpu.matmul %125, %126, %cst_44 {dimension_numbers = #tpu.dot_dimension_numbers<[1], [0], [0], [1], [0, 0, 1, 1], [], []>} : vector<64x32xbf16>, vector<32x128xbf16>, vector<64x128xf32> -> vector<64x128xf32>
    %c0_45 = arith.constant 0 : index
    %c0_46 = arith.constant 0 : index
    %128 = vector.load %arg10[%c0_45, %c0_46] : memref<1x128xf32, #tpu.memory_space<vmem>>, vector<1x128xf32>
    %129 = vector.broadcast %128 : vector<1x128xf32> to vector<64x128xf32>
    %130 = arith.addf %127, %129 : vector<64x128xf32>
    %c4 = arith.constant 4 : index
    %c0_47 = arith.constant 0 : index
    %131 = vector.load %arg11[%c4, %c0_47] : memref<9x128xf32, #tpu.memory_space<vmem>>, vector<1x128xf32>
    %132 = vector.broadcast %131 : vector<1x128xf32> to vector<64x128xf32>
    %133 = arith.mulf %130, %132 : vector<64x128xf32>
    %c8_i32 = arith.constant 8 : i32
    %134 = tpu.dynamic_rotate %130 by %c8_i32 dim 0 : vector<64x128xf32>, i32 -> vector<64x128xf32>
    %c1_i32 = arith.constant 1 : i32
    %135 = tpu.dynamic_rotate %134 by %c1_i32 dim 0 : vector<64x128xf32>, i32 -> vector<64x128xf32>
    %c0_48 = arith.constant 0 : index
    %c0_49 = arith.constant 0 : index
    %136 = vector.load %arg13[%c0_48, %c0_49] : memref<64x8xf32, #tpu.memory_space<vmem>>, vector<64x1xf32>
    %137 = vector.broadcast %136 : vector<64x1xf32> to vector<64x128xf32>
    %138 = arith.mulf %135, %137 : vector<64x128xf32>
    %c0_50 = arith.constant 0 : index
    %c0_51 = arith.constant 0 : index
    %139 = vector.load %arg11[%c0_50, %c0_51] : memref<9x128xf32, #tpu.memory_space<vmem>>, vector<1x128xf32>
    %140 = vector.broadcast %139 : vector<1x128xf32> to vector<64x128xf32>
    %141 = arith.mulf %138, %140 : vector<64x128xf32>
    %142 = arith.addf %133, %141 : vector<64x128xf32>
    %c0_52 = arith.constant 0 : index
    %c1 = arith.constant 1 : index
    %143 = vector.load %arg13[%c0_52, %c1] : memref<64x8xf32, #tpu.memory_space<vmem>>, vector<64x1xf32>
    %144 = vector.broadcast %143 : vector<64x1xf32> to vector<64x128xf32>
    %145 = arith.mulf %134, %144 : vector<64x128xf32>
    %c1_53 = arith.constant 1 : index
    %c0_54 = arith.constant 0 : index
    %146 = vector.load %arg11[%c1_53, %c0_54] : memref<9x128xf32, #tpu.memory_space<vmem>>, vector<1x128xf32>
    %147 = vector.broadcast %146 : vector<1x128xf32> to vector<64x128xf32>
    %148 = arith.mulf %145, %147 : vector<64x128xf32>
    %149 = arith.addf %142, %148 : vector<64x128xf32>
    %c63_i32 = arith.constant 63 : i32
    %150 = tpu.dynamic_rotate %134 by %c63_i32 dim 0 : vector<64x128xf32>, i32 -> vector<64x128xf32>
    %c0_55 = arith.constant 0 : index
    %c2 = arith.constant 2 : index
    %151 = vector.load %arg13[%c0_55, %c2] : memref<64x8xf32, #tpu.memory_space<vmem>>, vector<64x1xf32>
    %152 = vector.broadcast %151 : vector<64x1xf32> to vector<64x128xf32>
    %153 = arith.mulf %150, %152 : vector<64x128xf32>
    %c2_56 = arith.constant 2 : index
    %c0_57 = arith.constant 0 : index
    %154 = vector.load %arg11[%c2_56, %c0_57] : memref<9x128xf32, #tpu.memory_space<vmem>>, vector<1x128xf32>
    %155 = vector.broadcast %154 : vector<1x128xf32> to vector<64x128xf32>
    %156 = arith.mulf %153, %155 : vector<64x128xf32>
    %157 = arith.addf %149, %156 : vector<64x128xf32>
    %c1_i32_58 = arith.constant 1 : i32
    %158 = tpu.dynamic_rotate %130 by %c1_i32_58 dim 0 : vector<64x128xf32>, i32 -> vector<64x128xf32>
    %c0_59 = arith.constant 0 : index
    %c3 = arith.constant 3 : index
    %159 = vector.load %arg13[%c0_59, %c3] : memref<64x8xf32, #tpu.memory_space<vmem>>, vector<64x1xf32>
    %160 = vector.broadcast %159 : vector<64x1xf32> to vector<64x128xf32>
    %161 = arith.mulf %158, %160 : vector<64x128xf32>
    %c3_60 = arith.constant 3 : index
    %c0_61 = arith.constant 0 : index
    %162 = vector.load %arg11[%c3_60, %c0_61] : memref<9x128xf32, #tpu.memory_space<vmem>>, vector<1x128xf32>
    %163 = vector.broadcast %162 : vector<1x128xf32> to vector<64x128xf32>
    %164 = arith.mulf %161, %163 : vector<64x128xf32>
    %165 = arith.addf %157, %164 : vector<64x128xf32>
    %c63_i32_62 = arith.constant 63 : i32
    %166 = tpu.dynamic_rotate %130 by %c63_i32_62 dim 0 : vector<64x128xf32>, i32 -> vector<64x128xf32>
    %c0_63 = arith.constant 0 : index
    %c4_64 = arith.constant 4 : index
    %167 = vector.load %arg13[%c0_63, %c4_64] : memref<64x8xf32, #tpu.memory_space<vmem>>, vector<64x1xf32>
    %168 = vector.broadcast %167 : vector<64x1xf32> to vector<64x128xf32>
    %169 = arith.mulf %166, %168 : vector<64x128xf32>
    %c5 = arith.constant 5 : index
    %c0_65 = arith.constant 0 : index
    %170 = vector.load %arg11[%c5, %c0_65] : memref<9x128xf32, #tpu.memory_space<vmem>>, vector<1x128xf32>
    %171 = vector.broadcast %170 : vector<1x128xf32> to vector<64x128xf32>
    %172 = arith.mulf %169, %171 : vector<64x128xf32>
    %173 = arith.addf %165, %172 : vector<64x128xf32>
    %c56_i32 = arith.constant 56 : i32
    %174 = tpu.dynamic_rotate %130 by %c56_i32 dim 0 : vector<64x128xf32>, i32 -> vector<64x128xf32>
    %c1_i32_66 = arith.constant 1 : i32
    %175 = tpu.dynamic_rotate %174 by %c1_i32_66 dim 0 : vector<64x128xf32>, i32 -> vector<64x128xf32>
    %c0_67 = arith.constant 0 : index
    %c5_68 = arith.constant 5 : index
    %176 = vector.load %arg13[%c0_67, %c5_68] : memref<64x8xf32, #tpu.memory_space<vmem>>, vector<64x1xf32>
    %177 = vector.broadcast %176 : vector<64x1xf32> to vector<64x128xf32>
    %178 = arith.mulf %175, %177 : vector<64x128xf32>
    %c6 = arith.constant 6 : index
    %c0_69 = arith.constant 0 : index
    %179 = vector.load %arg11[%c6, %c0_69] : memref<9x128xf32, #tpu.memory_space<vmem>>, vector<1x128xf32>
    %180 = vector.broadcast %179 : vector<1x128xf32> to vector<64x128xf32>
    %181 = arith.mulf %178, %180 : vector<64x128xf32>
    %182 = arith.addf %173, %181 : vector<64x128xf32>
    %c0_70 = arith.constant 0 : index
    %c6_71 = arith.constant 6 : index
    %183 = vector.load %arg13[%c0_70, %c6_71] : memref<64x8xf32, #tpu.memory_space<vmem>>, vector<64x1xf32>
    %184 = vector.broadcast %183 : vector<64x1xf32> to vector<64x128xf32>
    %185 = arith.mulf %174, %184 : vector<64x128xf32>
    %c7 = arith.constant 7 : index
    %c0_72 = arith.constant 0 : index
    %186 = vector.load %arg11[%c7, %c0_72] : memref<9x128xf32, #tpu.memory_space<vmem>>, vector<1x128xf32>
    %187 = vector.broadcast %186 : vector<1x128xf32> to vector<64x128xf32>
    %188 = arith.mulf %185, %187 : vector<64x128xf32>
    %189 = arith.addf %182, %188 : vector<64x128xf32>
    %c63_i32_73 = arith.constant 63 : i32
    %190 = tpu.dynamic_rotate %174 by %c63_i32_73 dim 0 : vector<64x128xf32>, i32 -> vector<64x128xf32>
    %c0_74 = arith.constant 0 : index
    %c7_75 = arith.constant 7 : index
    %191 = vector.load %arg13[%c0_74, %c7_75] : memref<64x8xf32, #tpu.memory_space<vmem>>, vector<64x1xf32>
    %192 = vector.broadcast %191 : vector<64x1xf32> to vector<64x128xf32>
    %193 = arith.mulf %190, %192 : vector<64x128xf32>
    %c8 = arith.constant 8 : index
    %c0_76 = arith.constant 0 : index
    %194 = vector.load %arg11[%c8, %c0_76] : memref<9x128xf32, #tpu.memory_space<vmem>>, vector<1x128xf32>
    %195 = vector.broadcast %194 : vector<1x128xf32> to vector<64x128xf32>
    %196 = arith.mulf %193, %195 : vector<64x128xf32>
    %197 = arith.addf %189, %196 : vector<64x128xf32>
    %c0_77 = arith.constant 0 : index
    %c0_78 = arith.constant 0 : index
    %198 = vector.load %arg12[%c0_77, %c0_78] : memref<1x128xf32, #tpu.memory_space<vmem>>, vector<1x128xf32>
    %199 = vector.broadcast %198 : vector<1x128xf32> to vector<64x128xf32>
    %200 = arith.addf %197, %199 : vector<64x128xf32>
    %cst_79 = arith.constant 5.000000e-01 : f32
    %201 = vector.broadcast %cst_79 : f32 to vector<64x128xf32>
    %202 = arith.mulf %201, %200 : vector<64x128xf32>
    %cst_80 = arith.constant 0.707106769 : f32
    %203 = vector.broadcast %cst_80 : f32 to vector<64x128xf32>
    %204 = arith.mulf %200, %203 : vector<64x128xf32>
    %205 = math.erf %204 : vector<64x128xf32>
    %cst_81 = arith.constant 1.000000e+00 : f32
    %206 = vector.broadcast %cst_81 : f32 to vector<64x128xf32>
    %207 = arith.addf %206, %205 : vector<64x128xf32>
    %208 = arith.mulf %202, %207 : vector<64x128xf32>
    %209 = arith.truncf %208 : vector<64x128xf32> to vector<64x128xbf16>
    %c0_82 = arith.constant 0 : index
    %c0_83 = arith.constant 0 : index
    %210 = vector.load %arg14[%c0_82, %c0_83] : memref<128x32xbf16, #tpu.memory_space<vmem>>, vector<128x32xbf16>
    %cst_84 = arith.constant dense<0.000000e+00> : vector<64x32xf32>
    %211 = tpu.matmul %209, %210, %cst_84 {dimension_numbers = #tpu.dot_dimension_numbers<[1], [0], [0], [1], [0, 0, 1, 1], [], []>} : vector<64x128xbf16>, vector<128x32xbf16>, vector<64x32xf32> -> vector<64x32xf32>
    %c0_85 = arith.constant 0 : index
    %c0_86 = arith.constant 0 : index
    %212 = vector.load %arg15[%c0_85, %c0_86] : memref<1x32xf32, #tpu.memory_space<vmem>>, vector<1x32xf32>
    %213 = vector.broadcast %212 : vector<1x32xf32> to vector<64x32xf32>
    %214 = arith.addf %211, %213 : vector<64x32xf32>
    %215 = arith.addf %100, %214 : vector<64x32xf32>
    %c0_87 = arith.constant 0 : index
    %c0_88 = arith.constant 0 : index
    %216 = vector.load %arg16[%c0_87, %c0_88] : memref<64x32xf32, #tpu.memory_space<vmem>>, vector<64x32xf32>
    tpu.vector_store %arg16[%c0_87, %c0_88], %215 {strides = array<i32>} : memref<64x32xf32, #tpu.memory_space<vmem>>, vector<64x32xf32>,
    return
  }
  func.func @transform_0(%arg0: i32) -> (i32, i32) {
    %c0_i32 = arith.constant 0 : i32
    %c0_i32_0 = arith.constant 0 : i32
    return %arg0, %c0_i32 : i32, i32
  }
  func.func @transform_1(%arg0: i32) -> (i32, i32) {
    %c0_i32 = arith.constant 0 : i32
    %c0_i32_0 = arith.constant 0 : i32
    %c0_i32_1 = arith.constant 0 : i32
    return %c0_i32, %c0_i32_0 : i32, i32
  }
  func.func @transform_2(%arg0: i32) -> (i32, i32) {
    %c0_i32 = arith.constant 0 : i32
    %c0_i32_0 = arith.constant 0 : i32
    %c0_i32_1 = arith.constant 0 : i32
    return %c0_i32, %c0_i32_0 : i32, i32
  }
  func.func @transform_3(%arg0: i32) -> (i32, i32) {
    %c0_i32 = arith.constant 0 : i32
    %c0_i32_0 = arith.constant 0 : i32
    %c0_i32_1 = arith.constant 0 : i32
    return %c0_i32, %c0_i32_0 : i32, i32
  }
  func.func @transform_4(%arg0: i32) -> (i32, i32) {
    %c0_i32 = arith.constant 0 : i32
    %c0_i32_0 = arith.constant 0 : i32
    %c0_i32_1 = arith.constant 0 : i32
    return %c0_i32, %c0_i32_0 : i32, i32
  }
  func.func @transform_5(%arg0: i32) -> (i32, i32) {
    %c0_i32 = arith.constant 0 : i32
    %c0_i32_0 = arith.constant 0 : i32
    %c0_i32_1 = arith.constant 0 : i32
    return %c0_i32, %c0_i32_0 : i32, i32
  }
  func.func @transform_6(%arg0: i32) -> (i32, i32) {
    %c0_i32 = arith.constant 0 : i32
    %c0_i32_0 = arith.constant 0 : i32
    %c0_i32_1 = arith.constant 0 : i32
    return %c0_i32, %c0_i32_0 : i32, i32
  }
  func.func @transform_7(%arg0: i32) -> (i32, i32) {
    %c0_i32 = arith.constant 0 : i32
    %c0_i32_0 = arith.constant 0 : i32
    %c0_i32_1 = arith.constant 0 : i32
    return %c0_i32, %c0_i32_0 : i32, i32
  }
  func.func @transform_8(%arg0: i32) -> (i32, i32) {
    %c0_i32 = arith.constant 0 : i32
    %c0_i32_0 = arith.constant 0 : i32
    %c0_i32_1 = arith.constant 0 : i32
    return %c0_i32, %c0_i32_0 : i32, i32
  }
  func.func @transform_9(%arg0: i32) -> (i32, i32) {
    %c0_i32 = arith.constant 0 : i32
    %c0_i32_0 = arith.constant 0 : i32
    %c0_i32_1 = arith.constant 0 : i32
    return %c0_i32, %c0_i32_0 : i32, i32
  }
  func.func @transform_10(%arg0: i32) -> (i32, i32) {
    %c0_i32 = arith.constant 0 : i32
    %c0_i32_0 = arith.constant 0 : i32
    %c0_i32_1 = arith.constant 0 : i32
    return %c0_i32, %c0_i32_0 : i32, i32
  }
  func.func @transform_11(%arg0: i32) -> (i32, i32) {
    %c0_i32 = arith.constant 0 : i32
    %c0_i32_0 = arith.constant 0 : i32
    %c0_i32_1 = arith.constant 0 : i32
    return %c0_i32, %c0_i32_0 : i32, i32
  }
  func.func @transform_12(%arg0: i32) -> (i32, i32) {
    %c0_i32 = arith.constant 0 : i32
    %c0_i32_0 = arith.constant 0 : i32
    %c0_i32_1 = arith.constant 0 : i32
    return %c0_i32, %c0_i32_0 : i32, i32
  }
  func.func @transform_13(%arg0: i32) -> (i32, i32) {
    %c0_i32 = arith.constant 0 : i32
    %c0_i32_0 = arith.constant 0 : i32
    %c0_i32_1 = arith.constant 0 : i32
    return %c0_i32, %c0_i32_0 : i32, i32
  }
  func.func @transform_14(%arg0: i32) -> (i32, i32) {
    %c0_i32 = arith.constant 0 : i32
    %c0_i32_0 = arith.constant 0 : i32
    %c0_i32_1 = arith.constant 0 : i32
    return %c0_i32, %c0_i32_0 : i32, i32
  }
  func.func @transform_15(%arg0: i32) -> (i32, i32) {
    %c0_i32 = arith.constant 0 : i32
    %c0_i32_0 = arith.constant 0 : i32
    return %arg0, %c0_i32 : i32, i32
  }
}

</mosaic_0001>

<bundles_post_ra>
// kernel: tpu_custom_call.1
= control target key start
LH: loop header
LB: loop body
LE: loop exit
PB: predicated region body
PF: predicated region fallthrough
CT: control target
= control target key end

     0   :  { %s3775_s18 = smov 0   ;;  %s5670_s0 = inlined_call_operand.vmem [shape: f32[128,32], index: 0, kind: input, shape index: {}]   ;;  %s5671_s1 = inlined_call_operand.vmem [shape: f32[1,32], index: 1, kind: input, shape index: {}]   ;;  %s5672_s2 = inlined_call_operand.vmem [shape: f32[1,32], index: 2, kind: input, shape index: {}]   ;;  %s5673_s3 = inlined_call_operand.vmem [shape: bf16[32,96], index: 3, kind: input, shape index: {}]   ;;  %s5674_s4 = inlined_call_operand.vmem [shape: bf16[32,32], index: 4, kind: input, shape index: {}]   ;;  %s5675_s5 = inlined_call_operand.vmem [shape: f32[1,32], index: 5, kind: input, shape index: {}]   ;;  %s5676_s6 = inlined_call_operand.vmem [shape: f32[1,32], index: 6, kind: input, shape index: {}]   ;;  %s5677_s7 = inlined_call_operand.vmem [shape: f32[1,32], index: 7, kind: input, shape index: {}]   ;;  %s5678_s8 = inlined_call_operand.vmem [shape: bf16[32,128], index: 8, kind: input, shape index: {}]   ;;  %s5679_s9 = inlined_call_operand.vmem [shape: f32[1,128], index: 9, kind: input, shape index: {}]   ;;  %s5680_s10 = inlined_call_operand.vmem [shape: f32[9,128], index: 10, kind: input, shape index: {}]   ;;  %s5681_s11 = inlined_call_operand.vmem [shape: f32[1,128], index: 11, kind: input, shape index: {}]   ;;  %s5682_s12 = inlined_call_operand.vmem [shape: f32[64,8], index: 12, kind: input, shape index: {}]   ;;  %s5683_s13 = inlined_call_operand.vmem [shape: bf16[128,32], index: 13, kind: input, shape index: {}]   ;;  %s5684_s14 = inlined_call_operand.vmem [shape: f32[1,32], index: 14, kind: input, shape index: {}]   ;;  %s5685_s15 = inlined_call_operand.vmem [shape: f32[128,32], index: 15, kind: output, shape index: {}]  }
   0x1 LB: > { %s3177_s19 = sadd.s32 4294967295, %s3670_s18   ;;  %p3181_p0 = scmp.ge.s32.totalorder %s3670_s18, 1  ;;  %s3670_s18 = sphi %s3775_s18, %s25_s18  }
   0x2   : > { %p438_p1 = scmp.lt.s32.totalorder %s3670_s18, 3 }
   0x4   : > { %p439_p2 = pnand %p3181_p0, %p438_p1 }
   0x6   : > { %442 = sbr.rel (%p439_p2) target bundleno = 2855 (0xb27), region = 80 }
   0xb   : > { %s3182_s20 = sshll.u32 %s3177_s19, 3  ;;  %vm509_vm0 = vcmask 261120   ;;  %v3672_v14 = vmov 32.0   ;;  %v3297_v58 = vld [vmem:[%s5673_s3 + $0x8] sm:$0xff]  ;;  %v3296_v62 = vld [vmem:[%s5673_s3] sm:$0xff]  ;;  %s3673_s19 = smov 96  }
   0xc   : > { %p487_p3 = scmp.lt.s32.totalorder %s3182_s20, 15  ;;  %3478 = vrcp.f32 %v3672_v14  ;;  %753 = vmatpush.bf16.msra.mxu0 %v3297_v58  ;;  %s3674_s22 = smov 88  }
   0xd   : > { %s3675_s23 = smov 120   ;;  %s3676_s25 = smov 64  }
   0xe   : > { %s5798_s20 = smov (!%p487_p3, %s3182_s20), 15  ;;  %s3677_s26 = smov 80  }
   0xf   : > { %s3183_s21 = sshll.u32 %s5798_s20, 3  ;;  %s3678_s27 = smov 72  }
  0x10   : > { %s3791_s24 = scalar_lea.vmem %s5670_s0, %s3183_s21  ;;  %754 = vmatpush.bf16.msra.mxu0 %v3296_v62  ;;  %s3679_s28 = smov 112  }
  0x11   : > { %v503_v0 = vld [vmem:[%s3791_s24 + $0x20] sm:$0xff]  ;;  %v501_v1 = vld [vmem:[%s3791_s24 + $0x10] sm:$0xff]  ;;  %v504_v6 = vld [vmem:[%s3791_s24 + $0x28] sm:$0xff]  ;;  %s3680_s29 = smov 104   ;;  %s3681_s30 = smov 56  }
  0x12   : > { %v499_v2 = vld [vmem:[%s3791_s24] sm:$0xff]  ;;  %v522_v3 = vsel %vm509_vm0, %v503_v0, 0.0  ;;  %v516_v4 = vsel %vm509_vm0, %v501_v1, 0.0  ;;  %v502_v7 = vld [vmem:[%s3791_s24 + $0x18] sm:$0xff]  ;;  %v500_v8 = vld [vmem:[%s3791_s24 + $0x8] sm:$0xff]  ;;  %v525_v9 = vsel %vm509_vm0, %v504_v6, 0.0  ;;  %v3479_v15 = vpop.eup %3478 }
  0x13   : > { %v510_v5 = vsel %vm509_vm0, %v499_v2, 0.0  ;;  %523 = vadd.xlane.f32.xlu2 %v522_v3  ;;  %517 = vadd.xlane.f32.xlu1 %v516_v4  ;;  %v519_v10 = vsel %vm509_vm0, %v502_v7, 0.0  ;;  %v513_v11 = vsel %vm509_vm0, %v500_v8, 0.0  ;;  %v505_v12 = vld [vmem:[%s3791_s24 + $0x30] sm:$0xff]  ;;  %v535_v16 = vmul.f32 32.0, %v3479_v15  ;;  %v506_v36 = vld [vmem:[%s3791_s24 + $0x38] sm:$0xff] }
  0x14   : > { %511 = vadd.xlane.f32.xlu0 %v510_v5  ;;  %v528_v13 = vsel %vm509_vm0, %v505_v12, 0.0  ;;  %vm539_vm1 = vweird.f32 %v3479_v15  ;;  %v531_v41 = vsel %vm509_vm0, %v506_v36, 0.0  ;;  %s3682_s16 = smov 48   ;;  %s3683_s17 = smov 40  }
  0x15   : > { %v536_v17 = vsub.f32 1.0, %v535_v16 }
  0x17   : > { %v537_v18 = vmul.f32 %v3479_v15, %v536_v17 }
  0x19   : > { %v538_v19 = vadd.f32 %v3479_v15, %v537_v18 }
  0x1b   : > { %526 = vadd.xlane.f32.xlu2 %v525_v9  ;;  %520 = vadd.xlane.f32.xlu1 %v519_v10  ;;  %v3807_v20 = vsel %vm539_vm1, %v3479_v15, %v538_v19 }
  0x1c   : > { %514 = vadd.xlane.f32.xlu0 %v513_v11 }
  0x23   : > { %529 = vadd.xlane.f32.xlu2 %v528_v13 }
  0x86   : > { %v524_v21 = vpop.xlane.xlu2 %523  ;;  %v518_v22 = vpop.xlane.xlu1 %517 }
  0x87   : > { %v512_v23 = vpop.xlane.xlu0 %511  ;;  %v545_v32 = vmul.f32 %v3807_v20, %v524_v21  ;;  %v543_v33 = vmul.f32 %v3807_v20, %v518_v22 }
  0x88   : > { %v541_v24 = vmul.f32 %v3807_v20, %v512_v23 }
  0x89   : > { %v3826_v39 = vsub.f32 %v503_v0, %v545_v32  ;;  %v3828_v40 = vsub.f32 %v501_v1, %v543_v33 }
  0x8a   : > { %v3810_v25 = vsub.f32 %v499_v2, %v541_v24 }
  0x8b   : > { %v561_v48 = vmul.f32 %v3826_v39, %v3826_v39  ;;  %v559_v49 = vmul.f32 %v3828_v40, %v3828_v40 }
  0x8c   : > { %v557_v26 = vmul.f32 %v3810_v25, %v3810_v25 }
  0x8d   : > { %v577_v53 = vsel %vm509_vm0, %v561_v48, 0.0  ;;  %v571_v54 = vsel %vm509_vm0, %v559_v49, 0.0 }
  0x8e   : > { %v527_v27 = vpop.xlane.xlu2 %526  ;;  %v521_v28 = vpop.xlane.xlu1 %520  ;;  %v565_v29 = vsel %vm509_vm0, %v557_v26, 0.0 }
  0x8f   : > { %v544_v30 = vmul.f32 %v3807_v20, %v521_v28  ;;  %566 = vadd.xlane.f32.xlu0 %v565_v29  ;;  %v515_v31 = vpop.xlane.xlu0 %514  ;;  %v546_v47 = vmul.f32 %v3807_v20, %v527_v27 }
  0x90   : > { %v542_v34 = vmul.f32 %v3807_v20, %v515_v31 }
  0x91   : > { %v3819_v35 = vsub.f32 %v502_v7, %v544_v30  ;;  %v3845_v52 = vsub.f32 %v504_v6, %v546_v47 }
  0x92   : > { %v3822_v37 = vsub.f32 %v500_v8, %v542_v34 }
  0x93   : > { %v560_v38 = vmul.f32 %v3819_v35, %v3819_v35  ;;  %v562_v56 = vmul.f32 %v3845_v52, %v3845_v52 }
  0x94   : > { %v558_v42 = vmul.f32 %v3822_v37, %v3822_v37 }
  0x95   : > { %v574_v43 = vsel %vm509_vm0, %v560_v38, 0.0  ;;  %v580_v57 = vsel %vm509_vm0, %v562_v56, 0.0 }
  0x96   : > { %v530_v44 = vpop.xlane.xlu2 %529  ;;  %575 = vadd.xlane.f32.xlu2 %v574_v43  ;;  %v568_v45 = vsel %vm509_vm0, %v558_v42, 0.0 }
  0x97   : > { %v547_v46 = vmul.f32 %v3807_v20, %v530_v44  ;;  %532 = vadd.xlane.f32.xlu0 %v531_v41  ;;  %569 = vadd.xlane.f32.xlu1 %v568_v45  ;;  %v3889_v45 = vld [vmem:[%s5671_s1] ss:$0 sm:$0xff] }
  0x99   : > { %v3841_v50 = vsub.f32 %v505_v12, %v547_v46 }
  0x9b   : > { %v563_v51 = vmul.f32 %v3841_v50, %v3841_v50 }
  0x9d   : > { %v583_v55 = vsel %vm509_vm0, %v563_v51, 0.0 }
  0x9e   : > { %584 = vadd.xlane.f32.xlu2 %v583_v55 }
  0x9f   : > { %578 = vadd.xlane.f32.xlu0 %v577_v53  ;;  %572 = vadd.xlane.f32.xlu1 %v571_v54  ;;  %v3896_v54 = vld [vmem:[%s5672_s2] ss:$0 sm:$0xff] }
  0xa7   : > { %581 = vadd.xlane.f32.xlu1 %v580_v57 }
 0x102   : > { %v567_v59 = vpop.xlane.xlu0 %566 }
 0x103   : > { %v589_v60 = vmul.f32 %v567_v59, %v3807_v20 }
 0x105   : > { %v597_v61 = vadd.f32 1e-05, %v589_v60 }
 0x107   : > { %3480 = vrsqrt.f32 %v597_v61  ;;  %vm611_vm3 = vweird.f32 %v597_v61 }
 0x109   : > { %v576_v63 = vpop.xlane.xlu2 %575 }
 0x10a   : > { %v592_v0 = vmul.f32 %v576_v63, %v3807_v20  ;;  %v570_v1 = vpop.xlane.xlu1 %569  ;;  %v533_v2 = vpop.xlane.xlu0 %532 }
 0x10b   : > { %v590_v3 = vmul.f32 %v570_v1, %v3807_v20  ;;  %v548_v4 = vmul.f32 %v3807_v20, %v533_v2 }
 0x10c   : > { %v3863_v5 = vadd.f32 1e-05, %v592_v0 }
 0x10d   : > { %v3481_v6 = vpop.eup %3480  ;;  %v598_v7 = vadd.f32 1e-05, %v590_v3  ;;  %v3865_v8 = vsub.f32 %v506_v36, %v548_v4 }
 0x10e   : > { %v606_v9 = vmul.f32 %v3481_v6, %v597_v61  ;;  %3482 = vrsqrt.f32 %v3863_v5  ;;  %vm612_vm2 = vweird.f32 %v3481_v6  ;;  %vm641_vm10 = vweird.f32 %v3863_v5 }
 0x10f   : > { %3484 = vrsqrt.f32 %v598_v7  ;;  %v564_v10 = vmul.f32 %v3865_v8, %v3865_v8  ;;  %vm3877_vm4 = vmor %vm611_vm3, %vm612_vm2  ;;  %vm621_vm5 = vweird.f32 %v598_v7 }
 0x110   : > { %v607_v11 = vmul.f32 %v3481_v6, %v606_v9 }
 0x111   : > { %v586_v12 = vsel %vm509_vm0, %v564_v10, 0.0  ;;  %v585_v28 = vpop.xlane.xlu2 %584 }
 0x112   : > { %v608_v13 = vmul.f32 0.5, %v607_v11  ;;  %v573_v14 = vpop.xlane.xlu1 %572  ;;  %587 = vadd.xlane.f32.xlu0 %v586_v12  ;;  %v579_v16 = vpop.xlane.xlu0 %578 }
 0x113   : > { %v591_v15 = vmul.f32 %v573_v14, %v3807_v20  ;;  %v593_v23 = vmul.f32 %v579_v16, %v3807_v20 }
 0x114   : > { %v3872_v17 = vpop.eup %3482  ;;  %v609_v18 = vsub.f32 1.5, %v608_v13 }
 0x115   : > { %v3485_v19 = vpop.eup %3484  ;;  %v599_v21 = vadd.f32 1e-05, %v591_v15  ;;  %v636_v26 = vmul.f32 %v3872_v17, %v3863_v5  ;;  %v601_v30 = vadd.f32 1e-05, %v593_v23  ;;  %vm642_vm11 = vweird.f32 %v3872_v17 }
 0x116   : > { %v616_v22 = vmul.f32 %v3485_v19, %v598_v7  ;;  %v610_v24 = vmul.f32 %v3481_v6, %v609_v18  ;;  %vm622_vm6 = vweird.f32 %v3485_v19  ;;  %vm643_vm13 = vmor %vm641_vm10, %vm642_vm11  ;;  %vm812_vm11 = vcmask 64512  }
 0x117   : > { %3486 = vrsqrt.f32 %v599_v21  ;;  %v637_v33 = vmul.f32 %v3872_v17, %v636_v26  ;;  %vm623_vm7 = vmor %vm621_vm5, %vm622_vm6  ;;  %vm631_vm8 = vweird.f32 %v599_v21  ;;  %vm651_vm1 = vweird.f32 %v601_v30 }
 0x118   : > { %v617_v27 = vmul.f32 %v3485_v19, %v616_v22  ;;  %v614_v32 = vsel %vm3877_vm4, %v3481_v6, %v610_v24  ;;  %3488 = vrsqrt.f32 %v601_v30 }
 0x119   : > { %v685_v44 = vmul.f32 %v614_v32, %v3810_v25  ;;  %v638_v46 = vmul.f32 0.5, %v637_v33 }
 0x11a   : > { %v618_v29 = vmul.f32 0.5, %v617_v27  ;;  %v582_v31 = vpop.xlane.xlu1 %581 }
 0x11b   : > { %v594_v34 = vmul.f32 %v582_v31, %v3807_v20  ;;  %v696_v53 = vmul.f32 %v3889_v45, %v685_v44  ;;  %v639_v25 = vsub.f32 1.5, %v638_v46 }
 0x11c   : > { %v619_v36 = vsub.f32 1.5, %v618_v29  ;;  %v595_v29 = vmul.f32 %v585_v28, %v3807_v20 }
 0x11d   : > { %v3487_v38 = vpop.eup %3486  ;;  %v602_v41 = vadd.f32 1e-05, %v594_v34  ;;  %v707_v60 = vadd.f32 %v3896_v54, %v696_v53  ;;  %v640_v61 = vmul.f32 %v3872_v17, %v639_v25 }
 0x11e   : > { %v620_v42 = vmul.f32 %v3485_v19, %v619_v36  ;;  %v626_v43 = vmul.f32 %v3487_v38, %v599_v21  ;;  %vm632_vm9 = vweird.f32 %v3487_v38  ;;  %v3489_v56 = vpop.eup %3488 }
 0x11f   : > { %3490 = vrsqrt.f32 %v602_v41  ;;  %vm633_vm12 = vmor %vm631_vm8, %vm632_vm9  ;;  %v646_v62 = vmul.f32 %v3489_v56, %v601_v30  ;;  %v644_v3 = vsel %vm643_vm13, %v3872_v17, %v640_v61  ;;  %vm661_vm14 = vweird.f32 %v602_v41 }
 0x120   : > { %v624_v47 = vsel %vm623_vm7, %v3485_v19, %v620_v42  ;;  %v627_v48 = vmul.f32 %v3487_v38, %v626_v43  ;;  %v688_v7 = vmul.f32 %v644_v3, %v3819_v35  ;;  %vm652_vm2 = vweird.f32 %v3489_v56 }
 0x121   : > { %v686_v49 = vmul.f32 %v624_v47, %v3822_v37  ;;  %v647_v4 = vmul.f32 %v3489_v56, %v646_v62  ;;  %vm653_vm4 = vmor %vm651_vm1, %vm652_vm2  ;;  %v603_v30 = vadd.f32 1e-05, %v595_v29  ;;  %vm1758_vm13 = vcmask 130048  }
 0x122   : > { %v628_v51 = vmul.f32 0.5, %v627_v48  ;;  %v699_v12 = vmul.f32 %v3889_v45, %v688_v7 }
 0x123   : > { %v697_v55 = vmul.f32 %v3889_v45, %v686_v49  ;;  %v648_v9 = vmul.f32 0.5, %v647_v4  ;;  %3492 = vrsqrt.f32 %v603_v30  ;;  %vm671_vm5 = vweird.f32 %v603_v30 }
 0x124   : > { %v629_v57 = vsub.f32 1.5, %v628_v51 }
 0x125   : > { %v708_v37 = vadd.f32 %v3896_v54, %v697_v55  ;;  %v3491_v58 = vpop.eup %3490  ;;  %v649_v13 = vsub.f32 1.5, %v648_v9 }
 0x126   : > { %v630_v59 = vmul.f32 %v3487_v38, %v629_v57  ;;  %v656_v63 = vmul.f32 %v3491_v58, %v602_v41  ;;  %vm662_vm15 = vweird.f32 %v3491_v58 }
 0x127   : > { %v715_v0 = vpack.c.bf16 %v708_v37, %v707_v60  ;;  %vm663_vm3 = vmor %vm661_vm14, %vm662_vm15  ;;  %v650_v16 = vmul.f32 %v3489_v56, %v649_v13  ;;  %vm1767_vm14 = vcmask 195584  }
 0x128   : > { %v634_v1 = vsel %vm633_vm12, %v3487_v38, %v630_v59  ;;  %v657_v2 = vmul.f32 %v3491_v58, %v656_v63  ;;  %vm866_vm12 = vcmask 523264  }
 0x129   : > { %3194 = vmatmul.msk.bf16.vlgmr.msra.gmra.mxu0 %vm509_vm0, %v715_v0  ;;  %v687_v5 = vmul.f32 %v634_v1, %v3828_v40  ;;  %v710_v40 = vadd.f32 %v3896_v54, %v699_v12  ;;  %v654_v18 = vsel %vm653_vm4, %v3489_v56, %v650_v16  ;;  %v3493_v31 = vpop.eup %3492 }
 0x12a   : > { %v658_v6 = vmul.f32 0.5, %v657_v2  ;;  %v689_v21 = vmul.f32 %v654_v18, %v3826_v39  ;;  %vm672_vm6 = vweird.f32 %v3493_v31 }
 0x12b   : > { %v698_v10 = vmul.f32 %v3889_v45, %v687_v5  ;;  %vm673_vm7 = vmor %vm671_vm5, %vm672_vm6 }
 0x12c   : > { %v659_v11 = vsub.f32 1.5, %v658_v6  ;;  %v700_v23 = vmul.f32 %v3889_v45, %v689_v21 }
 0x12d   : > { %v709_v14 = vadd.f32 %v3896_v54, %v698_v10 }
 0x12e   : > { %v660_v15 = vmul.f32 %v3491_v58, %v659_v11  ;;  %v711_v26 = vadd.f32 %v3896_v54, %v700_v23 }
 0x12f   : > { %v716_v35 = vpack.c.bf16 %v710_v40, %v709_v14 }
 0x130   : > { %v664_v17 = vsel %vm663_vm3, %v3491_v58, %v660_v15 }
 0x131   : > { %v690_v19 = vmul.f32 %v664_v17, %v3845_v52  ;;  %v666_v52 = vmul.f32 %v3493_v31, %v603_v30 }
 0x133   : > { %v701_v22 = vmul.f32 %v3889_v45, %v690_v19  ;;  %v667_v32 = vmul.f32 %v3493_v31, %v666_v52 }
 0x135   : > { %v712_v24 = vadd.f32 %v3896_v54, %v701_v22  ;;  %v668_v36 = vmul.f32 0.5, %v667_v32 }
 0x137   : > { %v717_v27 = vpack.c.bf16 %v712_v24, %v711_v26  ;;  %v669_v38 = vsub.f32 1.5, %v668_v36 }
 0x139   : > { %3195 = vmatmul.msk.bf16.gmra.mxu0 %vm509_vm0, %v716_v35  ;;  %v670_v42 = vmul.f32 %v3493_v31, %v669_v38 }
 0x13b   : > { %v674_v46 = vsel %vm673_vm7, %v3493_v31, %v670_v42 }
 0x13c   : > { %v691_v49 = vmul.f32 %v674_v46, %v3841_v50 }
 0x13e   : > { %v702_v55 = vmul.f32 %v3889_v45, %v691_v49 }
 0x140   : > { %v713_v57 = vadd.f32 %v3896_v54, %v702_v55 }
 0x149   : > { %3196 = vmatmul.msk.bf16.gmra.mxu0 %vm509_vm0, %v717_v27 }
 0x185   : > { %v588_v39 = vpop.xlane.xlu0 %587 }
 0x186   : > { %v596_v33 = vmul.f32 %v588_v39, %v3807_v20 }
 0x188   : > { %v604_v34 = vadd.f32 1e-05, %v596_v33 }
 0x18a   : > { %3494 = vrsqrt.f32 %v604_v34  ;;  %vm681_vm9 = vweird.f32 %v604_v34 }
 0x190   : > { %v3495_v41 = vpop.eup %3494 }
 0x191   : > { %v676_v43 = vmul.f32 %v3495_v41, %v604_v34  ;;  %vm682_vm8 = vweird.f32 %v3495_v41 }
 0x192   : > { %vm683_vm10 = vmor %vm681_vm9, %vm682_vm8 }
 0x193   : > { %v677_v44 = vmul.f32 %v3495_v41, %v676_v43 }
 0x195   : > { %v678_v47 = vmul.f32 0.5, %v677_v44 }
 0x197   : > { %v679_v48 = vsub.f32 1.5, %v678_v47 }
 0x199   : > { %v680_v51 = vmul.f32 %v3495_v41, %v679_v48 }
 0x19b   : > { %v684_v53 = vsel %vm683_vm10, %v3495_v41, %v680_v51 }
 0x19c   : > { %v692_v25 = vmul.f32 %v684_v53, %v3865_v8 }
 0x19e   : > { %v703_v56 = vmul.f32 %v3889_v45, %v692_v25 }
 0x1a0   : > { %v714_v37 = vadd.f32 %v3896_v54, %v703_v56 }
 0x1a2   : > { %v718_v58 = vpack.c.bf16 %v714_v37, %v713_v57 }
 0x1a4   : > { %3197 = vmatmul.msk.bf16.gmra.mxu0 %vm509_vm0, %v718_v58 }
 0x1a6   : > { %v756_v59 = vpop.f32.mrf.mxu0 }
 0x1a7   : > { %v776_v9 = vpack.c.bf16 %v756_v59, %v756_v59 }
 0x1a9   : > { %v792_v11 = vunpack.c.l.b16 %v776_v9 }
 0x1ae   : > { %v758_v60 = vpop.f32.mrf.mxu0 }
 0x1af   : > { %v777_v6 = vpack.c.bf16 %v758_v60, %v758_v60 }
 0x1b1   : > { %v793_v10 = vunpack.c.l.b16 %v777_v6 }
 0x1b3   : > { %v3939_v12 = vpack.c.b16 %v793_v10, %v792_v11 }
 0x1b6   : > { %v761_v50 = vpop.f32.mrf.mxu0 }
 0x1b7   : > { %v778_v61 = vpack.c.bf16 %v761_v50, %v761_v50 }
 0x1b9   : > { %v794_v0 = vunpack.c.l.b16 %v778_v61 }
 0x1be   : > { %v763_v62 = vpop.f32.mrf.mxu0 }
 0x1bf   : > { %v779_v63 = vpack.c.bf16 %v763_v62, %v763_v62 }
 0x1c1   : > { %v795_v1 = vunpack.c.l.b16 %v779_v63 }
 0x1c3   : > { %v3929_v8 = vpack.c.b16 %v795_v1, %v794_v0 }
 0x1c5   : > { %806 = vrot.lane.b32.xlu0 %v3929_v8, %s3673_s19 }
 0x1c6   : > { %v766_v45 = vpop.f32.mrf.mxu0 }
 0x1c7   : > { %v780_v2 = vpack.c.bf16 %v766_v45, %v766_v45 }
 0x1c9   : > { %v796_v4 = vunpack.c.l.b16 %v780_v2 }
 0x1ce   : > { %v768_v54 = vpop.f32.mrf.mxu0 }
 0x1cf   : > { %v781_v3 = vpack.c.bf16 %v768_v54, %v768_v54 }
 0x1d1   : > { %v797_v5 = vunpack.c.l.b16 %v781_v3 }
 0x1d3   : > { %v3933_v7 = vpack.c.b16 %v797_v5, %v796_v4 }
 0x1d5   : > { %1024 = vrot.lane.b32.xlu0 %v3933_v7, %s3674_s22  ;;  %808 = vrot.lane.b32.xlu2 %v3933_v7, %s3673_s19 }
 0x1dd   : > { %1022 = vrot.lane.b32.xlu0 %v3929_v8, %s3674_s22  ;;  %804 = vrot.lane.b32.xlu2 %v3939_v12, %s3673_s19 }
 0x1e5   : > { %1014 = vrot.lane.b32.xlu0 %v3929_v8, %s3675_s23  ;;  %963 = vrot.lane.b32.xlu2 %v3933_v7, %s3676_s25 }
 0x1ed   : > { %1238 = vrot.lane.b32.xlu0 %v3933_v7, %s3677_s26  ;;  %961 = vrot.lane.b32.xlu2 %v3929_v8, %s3676_s25 }
 0x1f5   : > { %1452 = vrot.lane.b32.xlu0 %v3933_v7, %s3678_s27  ;;  %1020 = vrot.lane.b32.xlu2 %v3939_v12, %s3674_s22 }
 0x1fd   : > { %1236 = vrot.lane.b32.xlu0 %v3929_v8, %s3677_s26  ;;  %1012 = vrot.lane.b32.xlu2 %v3939_v12, %s3675_s23 }
 0x205   : > { %1450 = vrot.lane.b32.xlu0 %v3929_v8, %s3678_s27 }
 0x20d   : > { %1234 = vrot.lane.b32.xlu0 %v3939_v12, %s3677_s26 }
 0x221   : > { %v771_v13 = vpop.f32.mrf.mxu0 }
 0x222   : > { %v782_v14 = vpack.c.bf16 %v771_v13, %v771_v13 }
 0x224   : > { %v798_v16 = vunpack.c.l.b16 %v782_v14 }
 0x229   : > { %v773_v15 = vpop.f32.mrf.mxu0 }
 0x22a   : > { %v783_v40 = vpack.c.bf16 %v773_v15, %v773_v15 }
 0x22c   : > { %v799_v35 = vunpack.c.l.b16 %v783_v40 }
 0x22e   : > { %v3958_v17 = vpack.c.b16 %v799_v35, %v798_v16 }
 0x22f   : > { %v809_v18 = vpop.permute.xlu2 %808 }
 0x230   : > { %1454 = vrot.lane.b32.xlu0 %v3958_v17, %s3678_s27  ;;  %965 = vrot.lane.b32.xlu2 %v3958_v17, %s3676_s25  ;;  %v832_v36 = vsel %vm812_vm11, %v809_v18, 0 }
 0x231   : > { %810 = vrot.lane.b32.xlu1 %v3958_v17, %s3673_s19  ;;  %s3684_s19 = smov 8  }
 0x237   : > { %v805_v19 = vpop.permute.xlu2 %804  ;;  %v807_v23 = vpop.permute.xlu0 %806 }
 0x238   : > { %1226 = vrot.lane.b32.xlu0 %v3939_v12, %s3679_s28  ;;  %1240 = vrot.lane.b32.xlu2 %v3958_v17, %s3677_s26  ;;  %v829_v43 = vsel %vm812_vm11, %v807_v23, 0  ;;  %v826_v48 = vsel %vm812_vm11, %v805_v19, 0 }
 0x239   : > { %959 = vrot.lane.b32.xlu1 %v3939_v12, %s3676_s25  ;;  %s496_s25 = scalar_lea.vmem %s5685_s15, %s3183_s21 }
 0x23f   : > { %v964_v21 = vpop.permute.xlu2 %963 }
 0x240   : > { %1228 = vrot.lane.b32.xlu0 %v3929_v8, %s3679_s28  ;;  %1018 = vrot.lane.b32.xlu2 %v3958_v17, %s3675_s23 }
 0x241   : > { %1016 = vrot.lane.b32.xlu1 %v3933_v7, %s3675_s23  ;;  %s3686_s23 = smov 24  }
 0x247   : > { %v962_v22 = vpop.permute.xlu2 %961  ;;  %v1025_v26 = vpop.permute.xlu0 %1024 }
 0x248   : > { %1230 = vrot.lane.b32.xlu0 %v3933_v7, %s3679_s28  ;;  %1440 = vrot.lane.b32.xlu2 %v3939_v12, %s3680_s29  ;;  %v1047_v25 = vsel %vm812_vm11, %v1025_v26, 0 }
 0x249   : > { %1026 = vrot.lane.b32.xlu1 %v3958_v17, %s3674_s22  ;;  %s3685_s22 = smov 16  }
 0x24f   : > { %v1021_v24 = vpop.permute.xlu2 %1020  ;;  %v1023_v28 = vpop.permute.xlu0 %1022 }
 0x250   : > { %1442 = vrot.lane.b32.xlu2 %v3929_v8, %s3680_s29  ;;  %v1044_v56 = vsel %vm812_vm11, %v1023_v28, 0  ;;  %v1041_v37 = vsel %vm812_vm11, %v1021_v24, 0 }
 0x257   : > { %v1013_v27 = vpop.permute.xlu2 %1012  ;;  %v1015_v30 = vpop.permute.xlu0 %1014 }
 0x25f   : > { %v1239_v31 = vpop.permute.xlu0 %1238 }
 0x260   : > { %v1261_v44 = vsel %vm812_vm11, %v1239_v31, 0 }
 0x267   : > { %v1453_v32 = vpop.permute.xlu0 %1452 }
 0x268   : > { %v1475_v59 = vsel %vm812_vm11, %v1453_v32, 0 }
 0x26f   : > { %v1237_v41 = vpop.permute.xlu0 %1236 }
 0x270   : > { %v1258_v51 = vsel %vm812_vm11, %v1237_v41, 0 }
 0x277   : > { %v1451_v46 = vpop.permute.xlu0 %1450 }
 0x278   : > { %v1472_v60 = vsel %vm812_vm11, %v1451_v46, 0 }
 0x27f   : > { %v1235_v53 = vpop.permute.xlu0 %1234 }
 0x280   : > { %v1255_v55 = vsel %vm812_vm11, %v1235_v53, 0 }
 0x28a   : > { %v966_v29 = vpop.permute.xlu2 %965 }
 0x28b   : > { %987 = vmatpush.bf16.msra.mxu2 %v966_v29 }
 0x28f   : > { %988 = vmatpush.bf16.msra.mxu2 %v964_v21 }
 0x292   : > { %v1241_v33 = vpop.permute.xlu2 %1240 }
 0x293   : > { %989 = vmatpush.bf16.msra.mxu2 %v962_v22  ;;  %v1264_v38 = vsel %vm812_vm11, %v1241_v33, 0 }
 0x29a   : > { %v1019_v50 = vpop.permute.xlu2 %1018 }
 0x2a2   : > { %v1455_v57 = vpop.permute.xlu0 %1454  ;;  %v1441_v40 = vpop.permute.xlu2 %1440 }
 0x2a3   : > { %v811_v52 = vpop.permute.xlu1 %810  ;;  %v1478_v58 = vsel %vm812_vm11, %v1455_v57, 0 }
 0x2a4   : > { %v835_v39 = vsel %vm812_vm11, %v811_v52, 0 }
 0x2a5   : > { %841 = vmatpush.bf16.xpose.msra.mxu1 %v835_v39 }
 0x2aa   : > { %v4024_v14 = vpop.permute.xlu0 %1226  ;;  %v1443_v21 = vpop.permute.xlu2 %1442 }
 0x2ab   : > { %v960_v34 = vpop.permute.xlu1 %959 }
 0x2ac   : > { %990 = vmatpush.bf16.msra.mxu2 %v960_v34 }
 0x2ad   : > { %842 = vmatpush.bf16.xpose.msra.mxu1 %v832_v36 }
 0x2b0   : > { %1270 = vmatpush.bf16.xpose.msrb.mxu2 %v1264_v38 }
 0x2b2   : > { %v4026_v15 = vpop.permute.xlu0 %1228 }
 0x2b3   : > { %v1017_v42 = vpop.permute.xlu1 %1016 }
 0x2b5   : > { %843 = vmatpush.bf16.xpose.msra.mxu1 %v829_v43 }
 0x2b8   : > { %1271 = vmatpush.bf16.xpose.msrb.mxu2 %v1261_v44 }
 0x2ba   : > { %v4028_v16 = vpop.permute.xlu0 %1230 }
 0x2bb   : > { %v1027_v47 = vpop.permute.xlu1 %1026 }
 0x2bc   : > { %v1050_v49 = vsel %vm812_vm11, %v1027_v47, 0 }
 0x2bd   : > { %844 = vmatpush.bf16.xpose.msra.mxu1 %v826_v48  ;;  %1056 = vmatpush.bf16.xpose.msra.mxu3 %v1050_v49 }
 0x2c0   : > { %1272 = vmatpush.bf16.xpose.msrb.mxu2 %v1258_v51 }
 0x2c4   : > { %3198 = vmatmul.msk.bf16.vlgmr.msra.gmra.mxu1 %vm812_vm11, %v3939_v12 }
 0x2c5   : > { %1057 = vmatpush.bf16.xpose.msra.mxu3 %v1047_v25 }
 0x2c8   : > { %1273 = vmatpush.bf16.xpose.msrb.mxu2 %v1255_v55 }
 0x2cd   : > { %1058 = vmatpush.bf16.xpose.msra.mxu3 %v1044_v56 }
 0x2d4   : > { %3199 = vmatmul.msk.bf16.gmra.mxu1 %vm812_vm11, %v3929_v8 }
 0x2d5   : > { %1059 = vmatpush.bf16.xpose.msra.mxu3 %v1041_v37 }
 0x2dc   : > { %3206 = vmatmul.msk.bf16.vlgmr.msra.gmra.mxu3 %vm812_vm11, %v1013_v27 }
 0x2dd   : > { %1484 = vmatpush.bf16.xpose.msrb.mxu3 %v1478_v58 }
 0x2e4   : > { %3200 = vmatmul.msk.bf16.gmra.mxu1 %vm812_vm11, %v3933_v7 }
 0x2e5   : > { %1485 = vmatpush.bf16.xpose.msrb.mxu3 %v1475_v59 }
 0x2ec   : > { %3207 = vmatmul.msk.bf16.gmra.mxu3 %vm812_vm11, %v1015_v30 }
 0x2ed   : > { %1486 = vmatpush.bf16.xpose.msrb.mxu3 %v1472_v60 }
 0x2f4   : > { %3201 = vmatmul.msk.bf16.gmra.mxu1 %vm812_vm11, %v3958_v17 }
 0x2fc   : > { %3208 = vmatmul.msk.bf16.gmra.mxu3 %vm812_vm11, %v1017_v42 }
 0x30c   : > { %3209 = vmatmul.msk.bf16.gmra.mxu3 %vm812_vm11, %v1019_v50 }
 0x341   : > { %v846_v61 = vpop.f32.mrf.mxu1 }
 0x342   : > { %v867_v62 = vsel %vm866_vm12, %v846_v61, -inf }
 0x343   : > { %868 = vmax.xlane.f32.xlu1 %v867_v62 }
 0x349   : > { %v848_v63 = vpop.f32.mrf.mxu1 }
 0x34a   : > { %v870_v0 = vsel %vm866_vm12, %v848_v63, -inf }
 0x34b   : > { %871 = vmax.xlane.f32.xlu0 %v870_v0 }
 0x351   : > { %v851_v1 = vpop.f32.mrf.mxu1 }
 0x352   : > { %v873_v45 = vsel %vm866_vm12, %v851_v1, -inf }
 0x353   : > { %874 = vmax.xlane.f32.xlu2 %v873_v45 }
 0x359   : > { %v853_v2 = vpop.f32.mrf.mxu1 }
 0x35a   : > { %v876_v13 = vsel %vm866_vm12, %v853_v2, -inf }
 0x35c   : > { %1448 = vrot.lane.b32.xlu1 %v3939_v12, %s3678_s27 }
 0x35f   : > { %v4051_v44 = vpop.f32.mrf.mxu3 }
 0x361   : > { %v856_v54 = vpop.f32.mrf.mxu1 }
 0x362   : > { %v879_v3 = vsel %vm866_vm12, %v856_v54, -inf }
 0x363   : > { %880 = vmax.xlane.f32.xlu0 %v879_v3 }
 0x367   : > { %v4053_v46 = vpop.f32.mrf.mxu3 }
 0x368   : > { %v1084_v3 = vsel %vm866_vm12, %v4053_v46, -inf }
 0x369   : > { %v858_v4 = vpop.f32.mrf.mxu1 }
 0x36a   : > { %v882_v5 = vsel %vm866_vm12, %v858_v4, -inf }
 0x36b   : > { %883 = vmax.xlane.f32.xlu2 %v882_v5 }
 0x36f   : > { %v4057_v53 = vpop.f32.mrf.mxu3 }
 0x370   : > { %v1087_v0 = vsel %vm866_vm12, %v4057_v53, -inf }
 0x371   : > { %v4015_v6 = vpop.f32.mrf.mxu1 }
 0x372   : > { %v885_v9 = vsel %vm866_vm12, %v4015_v6, -inf }
 0x373   : > { %886 = vmax.xlane.f32.xlu2 %v885_v9 }
 0x377   : > { %v4063_v58 = vpop.f32.mrf.mxu3 }
 0x379   : > { %v4019_v10 = vpop.f32.mrf.mxu1 }
 0x37a   : > { %v888_v11 = vsel %vm866_vm12, %v4019_v10, -inf }
 0x37b   : > { %889 = vmax.xlane.f32.xlu2 %v888_v11 }
 0x386   : > { %877 = vmax.xlane.f32.xlu1 %v876_v13 }
 0x3b6   : > { %v869_v35 = vpop.xlane.xlu1 %868 }
 0x3b7   : > { %v891_v18 = vsub.f32 %v846_v61, %v869_v35  ;;  %v4069_v61 = vpop.f32.mrf.mxu3 }
 0x3b8   : > { %v1093_v5 = vsel %vm866_vm12, %v4069_v61, -inf }
 0x3b9   : > { %v899_v19 = vmul.f32 1.442695, %v891_v18 }
 0x3bb   : > { %3496 = vpow2.f32 %v899_v19 }
 0x3be   : > { %v872_v22 = vpop.xlane.xlu0 %871 }
 0x3bf   : > { %v892_v23 = vsub.f32 %v848_v63, %v872_v22 }
 0x3c1   : > { %v4030_v24 = vpop.eup %3496  ;;  %v901_v26 = vmul.f32 1.442695, %v892_v23 }
 0x3c2   : > { %v915_v27 = vsel %vm866_vm12, %v4030_v24, 0.0 }
 0x3c3   : > { %3498 = vpow2.f32 %v901_v26  ;;  %916 = vadd.xlane.f32.xlu1 %v915_v27 }
 0x3c6   : > { %v875_v28 = vpop.xlane.xlu2 %874 }
 0x3c7   : > { %v893_v29 = vsub.f32 %v851_v1, %v875_v28  ;;  %v4074_v1 = vpop.f32.mrf.mxu3  ;;  %v1090_v28 = vsel %vm866_vm12, %v4063_v58, -inf }
 0x3c8   : > { %v1096_v45 = vsel %vm866_vm12, %v4074_v1, -inf }
 0x3c9   : > { %v4034_v30 = vpop.eup %3498  ;;  %v903_v31 = vmul.f32 1.442695, %v893_v29 }
 0x3ca   : > { %v918_v52 = vsel %vm866_vm12, %v4034_v30, 0.0 }
 0x3cb   : > { %3500 = vpow2.f32 %v903_v31  ;;  %919 = vadd.xlane.f32.xlu0 %v918_v52 }
 0x3ce   : > { %v1449_v32 = vpop.permute.xlu1 %1448 }
 0x3cf   : > { %v1469_v39 = vsel %vm812_vm11, %v1449_v32, 0 }
 0x3d0   : > { %1487 = vmatpush.bf16.xpose.msrb.mxu3 %v1469_v39 }
 0x3d1   : > { %v4039_v33 = vpop.eup %3500 }
 0x3d2   : > { %v921_v34 = vsel %vm866_vm12, %v4039_v33, 0.0 }
 0x3d3   : > { %922 = vadd.xlane.f32.xlu0 %v921_v34 }
 0x3d6   : > { %v881_v36 = vpop.xlane.xlu0 %880 }
 0x3d7   : > { %v895_v38 = vsub.f32 %v856_v54, %v881_v36  ;;  %3222 = vmatmul.msk.bf16.vlgmr.msrb.gmra.mxu3 %vm812_vm11, %v1441_v40 }
 0x3d9   : > { %v907_v41 = vmul.f32 1.442695, %v895_v38 }
 0x3db   : > { %3502 = vpow2.f32 %v907_v41 }
 0x3de   : > { %v884_v49 = vpop.xlane.xlu2 %883 }
 0x3df   : > { %v896_v25 = vsub.f32 %v858_v4, %v884_v49  ;;  %v4086_v4 = vpop.f32.mrf.mxu3 }
 0x3e0   : > { %v1099_v31 = vsel %vm866_vm12, %v4086_v4, -inf }
 0x3e1   : > { %v4044_v42 = vpop.eup %3502  ;;  %v909_v55 = vmul.f32 1.442695, %v896_v25 }
 0x3e2   : > { %v927_v43 = vsel %vm866_vm12, %v4044_v42, 0.0 }
 0x3e3   : > { %928 = vadd.xlane.f32.xlu1 %v927_v43 }
 0x3e6   : > { %v887_v37 = vpop.xlane.xlu2 %886 }
 0x3e7   : > { %3223 = vmatmul.msk.bf16.gmra.mxu3 %vm812_vm11, %v1443_v21  ;;  %1446 = vrot.lane.b32.xlu0 %v3958_v17, %s3680_s29  ;;  %v4092_v9 = vpop.f32.mrf.mxu3  ;;  %v897_v11 = vsub.f32 %v4015_v6, %v887_v37  ;;  %v1081_v21 = vsel %vm866_vm12, %v4051_v44, -inf }
 0x3e8   : > { %v1102_v13 = vsel %vm866_vm12, %v4092_v9, -inf }
 0x3e9   : > { %v911_v35 = vmul.f32 1.442695, %v897_v11 }
 0x3ee   : > { %v890_v50 = vpop.xlane.xlu2 %889 }
 0x3ef   : > { %v898_v62 = vsub.f32 %v4019_v10, %v890_v50 }
 0x3f1   : > { %v913_v63 = vmul.f32 1.442695, %v898_v62 }
 0x3f9   : > { %v878_v47 = vpop.xlane.xlu1 %877 }
 0x3fa   : > { %v894_v48 = vsub.f32 %v853_v2, %v878_v47 }
 0x3fc   : > { %v905_v51 = vmul.f32 1.442695, %v894_v48  ;;  %1232 = vrot.lane.b32.xlu1 %v3958_v17, %s3679_s28 }
 0x3fe   : > { %3504 = vpow2.f32 %v905_v51 }
 0x3ff   : > { %3506 = vpow2.f32 %v909_v55 }
 0x400   : > { %3508 = vpow2.f32 %v913_v63 }
 0x404   : > { %v4059_v56 = vpop.eup %3504 }
 0x405   : > { %v924_v57 = vsel %vm866_vm12, %v4059_v56, 0.0  ;;  %v4065_v59 = vpop.eup %3506 }
 0x406   : > { %925 = vadd.xlane.f32.xlu2 %v924_v57  ;;  %v930_v60 = vsel %vm866_vm12, %v4065_v59, 0.0  ;;  %v4080_v2 = vpop.eup %3508 }
 0x407   : > { %v936_v54 = vsel %vm866_vm12, %v4080_v2, 0.0 }
 0x411   : > { %931 = vadd.xlane.f32.xlu0 %v930_v60 }
 0x419   : > { %1088 = vmax.xlane.f32.xlu0 %v1087_v0 }
 0x41e   : > { %1444 = vrot.lane.b32.xlu2 %v3933_v7, %s3680_s29 }
 0x421   : > { %1097 = vmax.xlane.f32.xlu0 %v1096_v45 }
 0x426   : > { %937 = vadd.xlane.f32.xlu1 %v936_v54 }
 0x42e   : > { %1085 = vmax.xlane.f32.xlu1 %v1084_v3 }
 0x435   : > { %1179 = vrot.lane.b32.xlu0 %v3958_v17, %s3681_s30 }
 0x436   : > { %1094 = vmax.xlane.f32.xlu1 %v1093_v5  ;;  %v917_v10 = vpop.xlane.xlu1 %916 }
 0x437   : > { %3510 = vrcp.f32 %v917_v10 }
 0x43d   : > { %1173 = vrot.lane.b32.xlu0 %v3939_v12, %s3681_s30  ;;  %v3511_v18 = vpop.eup %3510 }
 0x43e   : > { %1103 = vmax.xlane.f32.xlu1 %v1102_v13  ;;  %v920_v40 = vpop.xlane.xlu0 %919  ;;  %v947_v22 = vmul.f32 %v3511_v18, %v4030_v24 }
 0x43f   : > { %3512 = vrcp.f32 %v920_v40 }
 0x440   : > { %3514 = vpow2.f32 %v911_v35 }
 0x445   : > { %v3513_v19 = vpop.eup %3512 }
 0x446   : > { %v948_v6 = vmul.f32 %v3513_v19, %v4034_v30  ;;  %v3515_v26 = vpop.eup %3514  ;;  %v923_v52 = vpop.xlane.xlu0 %922 }
 0x447   : > { %1082 = vmax.xlane.f32.xlu2 %v1081_v21  ;;  %v933_v27 = vsel %vm866_vm12, %v3515_v26, 0.0  ;;  %3516 = vrcp.f32 %v923_v52 }
 0x448   : > { %v955_v23 = vpack.c.bf16 %v948_v6, %v947_v22 }
 0x44a   : > { %3202 = vmatmul.msk.bf16.vlgmr.msra.gmra.mxu2 %vm866_vm12, %v955_v23 }
 0x44d   : > { %v3517_v34 = vpop.eup %3516 }
 0x44e   : > { %v949_v41 = vmul.f32 %v3517_v34, %v4039_v33 }
 0x44f   : > { %934 = vadd.xlane.f32.xlu2 %v933_v27 }
 0x456   : > { %v929_v49 = vpop.xlane.xlu1 %928 }
 0x457   : > { %1091 = vmax.xlane.f32.xlu2 %v1090_v28 }
 0x459   : > { %v1447_v39 = vpop.permute.xlu0 %1446 }
 0x45a   : > { %v4107_v29 = vpop.f32.mrf.mxu3 }
 0x45f   : > { %1100 = vmax.xlane.f32.xlu2 %v1099_v31 }
 0x462   : > { %v4111_v24 = vpop.f32.mrf.mxu3 }
 0x463   : > { %v1512_v30 = vsel %vm866_vm12, %v4111_v24, -inf }
 0x467   : > { %1513 = vmax.xlane.f32.xlu0 %v1512_v30 }
 0x46a   : > { %v4145_v31 = vpop.f32.mrf.mxu3 }
 0x46e   : > { %v4120_v57 = vpop.permute.xlu1 %1232 }
 0x479   : > { %v926_v32 = vpop.xlane.xlu2 %925 }
 0x47a   : > { %3518 = vrcp.f32 %v926_v32 }
 0x480   : > { %v3519_v36 = vpop.eup %3518 }
 0x481   : > { %v1445_v38 = vpop.permute.xlu2 %1444  ;;  %v950_v43 = vmul.f32 %v3519_v36, %v4059_v56 }
 0x482   : > { %3224 = vmatmul.msk.bf16.gmra.mxu3 %vm812_vm11, %v1445_v38 }
 0x483   : > { %v956_v47 = vpack.c.bf16 %v950_v43, %v949_v41 }
 0x484   : > { %v932_v48 = vpop.xlane.xlu0 %931 }
 0x485   : > { %3203 = vmatmul.msk.bf16.gmra.mxu2 %vm866_vm12, %v956_v47  ;;  %3520 = vrcp.f32 %v932_v48 }
 0x486   : > { %3522 = vrcp.f32 %v929_v49 }
 0x48b   : > { %v3521_v51 = vpop.eup %3520 }
 0x48c   : > { %v3523_v25 = vpop.eup %3522  ;;  %v952_v55 = vmul.f32 %v3521_v51, %v4065_v59  ;;  %v1089_v56 = vpop.xlane.xlu0 %1088 }
 0x48d   : > { %v951_v37 = vmul.f32 %v3523_v25, %v4044_v42  ;;  %v1107_v30 = vsub.f32 %v4057_v53, %v1089_v56 }
 0x48f   : > { %v957_v33 = vpack.c.bf16 %v952_v55, %v951_v37  ;;  %v1117_v32 = vmul.f32 1.442695, %v1107_v30 }
 0x492   : > { %3225 = vmatmul.msk.bf16.gmra.mxu3 %vm812_vm11, %v1447_v39 }
 0x494   : > { %v1098_v50 = vpop.xlane.xlu0 %1097 }
 0x495   : > { %3204 = vmatmul.msk.bf16.gmra.mxu2 %vm866_vm12, %v957_v33  ;;  %v1110_v23 = vsub.f32 %v4074_v1, %v1098_v50 }
 0x497   : > { %v1123_v28 = vmul.f32 1.442695, %v1110_v23 }
 0x499   : > { %v938_v60 = vpop.xlane.xlu1 %937 }
 0x4a1   : > { %v1086_v62 = vpop.xlane.xlu1 %1085 }
 0x4a2   : > { %v1106_v63 = vsub.f32 %v4053_v46, %v1086_v62 }
 0x4a4   : > { %v1115_v0 = vmul.f32 1.442695, %v1106_v63 }
 0x4a6   : > { %3524 = vpow2.f32 %v1115_v0 }
 0x4a7   : > { %v1180_v45 = vpop.permute.xlu0 %1179 }
 0x4a8   : > { %1201 = vmatpush.bf16.msrb.mxu0 %v1180_v45 }
 0x4a9   : > { %v1095_v39 = vpop.xlane.xlu1 %1094 }
 0x4aa   : > { %v1109_v34 = vsub.f32 %v4069_v61, %v1095_v39 }
 0x4ac   : > { %v4126_v59 = vpop.eup %3524 }
 0x4ad   : > { %v1132_v42 = vsel %vm866_vm12, %v4126_v59, 0.0 }
 0x4ae   : > { %1133 = vadd.xlane.f32.xlu1 %v1132_v42 }
 0x4b1   : > { %v1104_v63 = vpop.xlane.xlu1 %1103 }
 0x4b2   : > { %v1112_v45 = vsub.f32 %v4092_v9, %v1104_v63 }
 0x4ba   : > { %v1083_v54 = vpop.xlane.xlu2 %1082 }
 0x4bb   : > { %v1105_v3 = vsub.f32 %v4051_v44, %v1083_v54  ;;  %v1127_v54 = vmul.f32 1.442695, %v1112_v45 }
 0x4bd   : > { %v1113_v5 = vmul.f32 1.442695, %v1105_v3 }
 0x4bf   : > { %3526 = vpow2.f32 %v1113_v5 }
 0x4c0   : > { %3528 = vrcp.f32 %v938_v60 }
 0x4c2   : > { %v935_v10 = vpop.xlane.xlu2 %934 }
 0x4c3   : > { %3530 = vrcp.f32 %v935_v10  ;;  %v1174_v10 = vpop.permute.xlu0 %1173 }
 0x4c5   : > { %v4131_v11 = vpop.eup %3526 }
 0x4c6   : > { %v1129_v46 = vsel %vm866_vm12, %v4131_v11, 0.0  ;;  %v3529_v13 = vpop.eup %3528 }
 0x4c7   : > { %1130 = vadd.xlane.f32.xlu2 %v1129_v46  ;;  %1175 = vrot.lane.b32.xlu1 %v3929_v8, %s3681_s30  ;;  %v954_v44 = vmul.f32 %v3529_v13, %v4080_v2 }
 0x4c9   : > { %v3531_v40 = vpop.eup %3530 }
 0x4ca   : > { %v1092_v35 = vpop.xlane.xlu2 %1091  ;;  %v953_v18 = vmul.f32 %v3531_v40, %v3515_v26  ;;  %v1509_v26 = vsel %vm866_vm12, %v4107_v29, -inf }
 0x4cb   : > { %v1108_v19 = vsub.f32 %v4063_v58, %v1092_v35  ;;  %v1515_v58 = vsel %vm866_vm12, %v4145_v31, -inf }
 0x4cc   : > { %v958_v21 = vpack.c.bf16 %v954_v44, %v953_v18 }
 0x4cd   : > { %v1119_v22 = vmul.f32 1.442695, %v1108_v19 }
 0x4ce   : > { %3205 = vmatmul.msk.bf16.gmra.mxu2 %vm866_vm12, %v958_v21 }
 0x4cf   : > { %3532 = vpow2.f32 %v1119_v22 }
 0x4d0   : > { %3534 = vpow2.f32 %v1123_v28 }
 0x4d1   : > { %3536 = vpow2.f32 %v1117_v32 }
 0x4d2   : > { %v1101_v36 = vpop.xlane.xlu2 %1100 }
 0x4d3   : > { %v1111_v53 = vsub.f32 %v4086_v4, %v1101_v36 }
 0x4d5   : > { %v4140_v6 = vpop.eup %3532  ;;  %v1125_v61 = vmul.f32 1.442695, %v1111_v53 }
 0x4d6   : > { %v1138_v27 = vsel %vm866_vm12, %v4140_v6, 0.0  ;;  %v4153_v2 = vpop.eup %3534 }
 0x4d7   : > { %1139 = vadd.xlane.f32.xlu0 %v1138_v27  ;;  %v1144_v1 = vsel %vm866_vm12, %v4153_v2, 0.0  ;;  %v4169_v38 = vpop.eup %3536 }
 0x4d8   : > { %v1135_v47 = vsel %vm866_vm12, %v4169_v38, 0.0 }
 0x4da   : > { %v1514_v18 = vpop.xlane.xlu0 %1513 }
 0x4db   : > { %v1534_v21 = vsub.f32 %v4111_v24, %v1514_v18 }
 0x4de   : > { %3214 = vmatmul.msk.bf16.vlgmr.msrb.gmra.mxu2 %vm812_vm11, %v4024_v14  ;;  %v4161_v14 = vpop.f32.mrf.mxu3 }
 0x4df   : > { %1177 = vrot.lane.b32.xlu2 %v3933_v7, %s3681_s30  ;;  %1516 = vmax.xlane.f32.xlu0 %v1515_v58  ;;  %v1518_v52 = vsel %vm866_vm12, %v4161_v14, -inf }
 0x4e7   : > { %1145 = vadd.xlane.f32.xlu0 %v1144_v1 }
 0x4ee   : > { %3215 = vmatmul.msk.bf16.gmra.mxu2 %vm812_vm11, %v4026_v15  ;;  %v1121_v15 = vmul.f32 1.442695, %v1109_v34 }
 0x4f0   : > { %3538 = vpow2.f32 %v1121_v15 }
 0x4f1   : > { %1510 = vmax.xlane.f32.xlu1 %v1509_v26  ;;  %3540 = vpow2.f32 %v1125_v61 }
 0x4f6   : > { %v4178_v48 = vpop.eup %3538 }
 0x4f7   : > { %v1141_v49 = vsel %vm866_vm12, %v4178_v48, 0.0  ;;  %v4188_v51 = vpop.eup %3540 }
 0x4f8   : > { %v1147_v37 = vsel %vm866_vm12, %v4188_v51, 0.0 }
 0x4f9   : > { %1519 = vmax.xlane.f32.xlu1 %v1518_v52 }
 0x4fe   : > { %3216 = vmatmul.msk.bf16.gmra.mxu2 %vm812_vm11, %v4028_v16 }
 0x505   : > { %v4171_v41 = vpop.f32.mrf.mxu3 }
 0x506   : > { %v1521_v43 = vsel %vm866_vm12, %v4171_v41, -inf }
 0x507   : > { %1522 = vmax.xlane.f32.xlu0 %v1521_v43 }
 0x508   : > { %1136 = vadd.xlane.f32.xlu2 %v1135_v47 }
 0x50d   : > { %v4180_v16 = vpop.f32.mrf.mxu3 }
 0x50e   : > { %3217 = vmatmul.msk.bf16.gmra.mxu2 %vm812_vm11, %v4120_v57  ;;  %v1524_v4 = vsel %vm866_vm12, %v4180_v16, -inf  ;;  %v4196_v57 = vpop.f32.mrf.mxu2 }
 0x50f   : > { %1525 = vmax.xlane.f32.xlu1 %v1524_v4 }
 0x510   : > { %1142 = vadd.xlane.f32.xlu2 %v1141_v49 }
 0x515   : > { %v4190_v25 = vpop.f32.mrf.mxu3 }
 0x516   : > { %v1527_v55 = vsel %vm866_vm12, %v4190_v25, -inf  ;;  %v4204_v60 = vpop.f32.mrf.mxu2 }
 0x517   : > { %1528 = vmax.xlane.f32.xlu1 %v1527_v55 }
 0x518   : > { %1148 = vadd.xlane.f32.xlu2 %v1147_v37 }
 0x51b   : > { %1393 = vrot.lane.b32.xlu0 %v3958_v17, %s3682_s16 }
 0x51d   : > { %v4200_v33 = vpop.f32.mrf.mxu3 }
 0x51e   : > { %v1530_v56 = vsel %vm866_vm12, %v4200_v33, -inf  ;;  %v4208_v50 = vpop.f32.mrf.mxu2 }
 0x520   : > { %1531 = vmax.xlane.f32.xlu2 %v1530_v56 }
 0x521   : > { %v1134_v42 = vpop.xlane.xlu1 %1133 }
 0x523   : > { %1605 = vrot.lane.b32.xlu0 %v3933_v7, %s3683_s17 }
 0x526   : > { %v4212_v62 = vpop.f32.mrf.mxu2 }
 0x52e   : > { %v4217_v3 = vpop.f32.mrf.mxu2 }
 0x530   : > { %1607 = vrot.lane.b32.xlu1 %v3958_v17, %s3683_s17 }
 0x536   : > { %v4222_v35 = vpop.f32.mrf.mxu2 }
 0x538   : > { %1391 = vrot.lane.b32.xlu2 %v3933_v7, %s3682_s16 }
 0x539   : > { %v1176_v46 = vpop.permute.xlu1 %1175 }
 0x53a   : > { %v1131_v0 = vpop.xlane.xlu2 %1130 }
 0x53b   : > { %3542 = vrcp.f32 %v1131_v0 }
 0x53c   : > { %3544 = vrcp.f32 %v1134_v42 }
 0x53d   : > { %3546 = vpow2.f32 %v1127_v54 }
 0x541   : > { %v3543_v17 = vpop.eup %3542 }
 0x542   : > { %v1178_v5 = vpop.permute.xlu2 %1177  ;;  %v3545_v13 = vpop.eup %3544  ;;  %v1161_v40 = vmul.f32 %v3543_v17, %v4131_v11  ;;  %v1543_v11 = vmul.f32 1.442695, %v1534_v21 }
 0x543   : > { %1202 = vmatpush.bf16.msrb.mxu0 %v1178_v5  ;;  %v4220_v7 = vpop.eup %3546  ;;  %v1162_v9 = vmul.f32 %v3545_v13, %v4126_v59 }
 0x544   : > { %v1150_v44 = vsel %vm866_vm12, %v4220_v7, 0.0  ;;  %3548 = vpow2.f32 %v1543_v11 }
 0x545   : > { %v1169_v19 = vpack.c.bf16 %v1162_v9, %v1161_v40 }
 0x547   : > { %1203 = vmatpush.bf16.msrb.mxu0 %v1176_v46 }
 0x54a   : > { %v4233_v27 = vpop.eup %3548  ;;  %v1140_v30 = vpop.xlane.xlu0 %1139 }
 0x54b   : > { %1204 = vmatpush.bf16.msrb.mxu0 %v1174_v10  ;;  %v1560_v59 = vsel %vm866_vm12, %v4233_v27, 0.0 }
 0x54d   : > { %1151 = vadd.xlane.f32.xlu0 %v1150_v44 }
 0x54e   : > { %3210 = vmatmul.msk.bf16.vlgmr.msrb.gmra.mxu0 %vm866_vm12, %v1169_v19 }
 0x551   : > { %v4229_v22 = vpop.f32.mrf.mxu2 }
 0x552   : > { %v4252_v36 = vpop.xlane.xlu0 %1516 }
 0x559   : > { %v4231_v23 = vpop.f32.mrf.mxu2 }
 0x55a   : > { %v1146_v61 = vpop.xlane.xlu0 %1145 }
 0x561   : > { %v4237_v28 = vpop.f32.mrf.mxu2  ;;  %1561 = vadd.xlane.f32.xlu2 %v1560_v59 }
 0x562   : > { %v1295_v58 = vsel %vm866_vm12, %v4237_v28, -inf }
 0x563   : > { %1296 = vmax.xlane.f32.xlu0 %v1295_v58 }
 0x564   : > { %v1511_v1 = vpop.xlane.xlu1 %1510 }
 0x565   : > { %v1533_v24 = vsub.f32 %v4107_v29, %v1511_v1 }
 0x567   : > { %v1541_v26 = vmul.f32 1.442695, %v1533_v24 }
 0x569   : > { %3550 = vpow2.f32 %v1541_v26  ;;  %v4242_v52 = vpop.f32.mrf.mxu2 }
 0x56a   : > { %v1298_v32 = vsel %vm866_vm12, %v4242_v52, -inf  ;;  %3552 = vrcp.f32 %v1140_v30 }
 0x56b   : > { %1299 = vmax.xlane.f32.xlu2 %v1298_v32 }
 0x56c   : > { %v4271_v54 = vpop.xlane.xlu1 %1519 }
 0x56f   : > { %v4246_v39 = vpop.eup %3550 }
 0x570   : > { %v1557_v34 = vsel %vm866_vm12, %v4246_v39, 0.0  ;;  %v3553_v4 = vpop.eup %3552 }
 0x571   : > { %1558 = vadd.xlane.f32.xlu1 %v1557_v34  ;;  %v4250_v15 = vpop.f32.mrf.mxu2  ;;  %v1164_v0 = vmul.f32 %v3553_v4, %v4140_v6 }
 0x572   : > { %v1301_v29 = vsel %vm866_vm12, %v4250_v15, -inf }
 0x577   : > { %1603 = vrot.lane.b32.xlu0 %v3929_v8, %s3683_s17 }
 0x579   : > { %1302 = vmax.xlane.f32.xlu1 %v1301_v29  ;;  %v4258_v53 = vpop.f32.mrf.mxu2 }
 0x57a   : > { %v1304_v43 = vsel %vm866_vm12, %v4258_v53, -inf  ;;  %v4268_v45 = vpop.xlane.xlu0 %1522 }
 0x57b   : > { %v1137_v47 = vpop.xlane.xlu2 %1136  ;;  %1305 = vmax.xlane.f32.xlu2 %v1304_v43 }
 0x57c   : > { %3554 = vrcp.f32 %v1137_v47 }
 0x581   : > { %v4262_v49 = vpop.f32.mrf.mxu2 }
 0x582   : > { %v3555_v55 = vpop.eup %3554  ;;  %v1307_v37 = vsel %vm866_vm12, %v4262_v49, -inf  ;;  %v4277_v13 = vpop.xlane.xlu1 %1525 }
 0x583   : > { %1308 = vmax.xlane.f32.xlu1 %v1307_v37  ;;  %v1143_v56 = vpop.xlane.xlu2 %1142  ;;  %v1163_v63 = vmul.f32 %v3555_v55, %v4169_v38 }
 0x584   : > { %3556 = vrcp.f32 %v1143_v56 }
 0x585   : > { %v1170_v42 = vpack.c.bf16 %v1164_v0, %v1163_v63  ;;  %3558 = vrcp.f32 %v1146_v61 }
 0x587   : > { %3211 = vmatmul.msk.bf16.gmra.mxu0 %vm866_vm12, %v1170_v42 }
 0x589   : > { %v4273_v5 = vpop.f32.mrf.mxu2 }
 0x58a   : > { %v1310_v10 = vsel %vm866_vm12, %v4273_v5, -inf  ;;  %v3557_v38 = vpop.eup %3556  ;;  %v4290_v59 = vpop.xlane.xlu1 %1528 }
 0x58b   : > { %v1149_v17 = vpop.xlane.xlu2 %1148  ;;  %1311 = vmax.xlane.f32.xlu2 %v1310_v10  ;;  %v3559_v6 = vpop.eup %3558  ;;  %v1165_v9 = vmul.f32 %v3557_v38, %v4178_v48 }
 0x58c   : > { %v1166_v19 = vmul.f32 %v3559_v6, %v4153_v2  ;;  %3560 = vrcp.f32 %v1149_v17 }
 0x58d   : > { %v1394_v46 = vpop.permute.xlu0 %1393 }
 0x58e   : > { %1415 = vmatpush.bf16.msrb.mxu1 %v1394_v46  ;;  %v1171_v21 = vpack.c.bf16 %v1166_v19, %v1165_v9 }
 0x591   : > { %v4279_v40 = vpop.f32.mrf.mxu2 }
 0x592   : > { %v1313_v18 = vsel %vm866_vm12, %v4279_v40, -inf  ;;  %v3561_v26 = vpop.eup %3560 }
 0x593   : > { %1314 = vmax.xlane.f32.xlu1 %v1313_v18  ;;  %v4284_v44 = vpop.xlane.xlu2 %1531  ;;  %v1167_v32 = vmul.f32 %v3561_v26, %v4188_v51 }
 0x595   : > { %v1606_v24 = vpop.permute.xlu0 %1605 }
 0x597   : > { %3212 = vmatmul.msk.bf16.gmra.mxu0 %vm866_vm12, %v1171_v21 }
 0x599   : > { %v4288_v11 = vpop.f32.mrf.mxu2 }
 0x59a   : > { %v1316_v58 = vsel %vm866_vm12, %v4288_v11, -inf }
 0x59b   : > { %v1392_v1 = vpop.permute.xlu2 %1391  ;;  %1317 = vmax.xlane.f32.xlu2 %v1316_v58 }
 0x59c   : > { %1416 = vmatpush.bf16.msrb.mxu1 %v1392_v1 }
 0x5a2   : > { %v1608_v48 = vpop.permute.xlu1 %1607 }
 0x5a3   : > { %1629 = vmatpush.bf16.msra.mxu0 %v1608_v48 }
 0x5a7   : > { %1630 = vmatpush.bf16.msra.mxu0 %v1606_v24 }
 0x5ac   : > { %1389 = vrot.lane.b32.xlu1 %v3929_v8, %s3682_s16 }
 0x5c0   : > { %v1152_v2 = vpop.xlane.xlu0 %1151 }
 0x5c1   : > { %3562 = vrcp.f32 %v1152_v2 }
 0x5c7   : > { %v3563_v30 = vpop.eup %3562 }
 0x5c8   : > { %v1168_v34 = vmul.f32 %v3563_v30, %v4220_v7 }
 0x5ca   : > { %v1172_v29 = vpack.c.bf16 %v1168_v34, %v1167_v32 }
 0x5cc   : > { %3213 = vmatmul.msk.bf16.gmra.mxu0 %vm866_vm12, %v1172_v29  ;;  %v1537_v29 = vsub.f32 %v4171_v41, %v4268_v45 }
 0x5d4   : > { %v1562_v43 = vpop.xlane.xlu2 %1561 }
 0x5d6   : > { %v1297_v47 = vpop.xlane.xlu0 %1296 }
 0x5d7   : > { %v1319_v61 = vsub.f32 %v4237_v28, %v1297_v47  ;;  %v1549_v47 = vmul.f32 1.442695, %v1537_v29 }
 0x5d9   : > { %v1327_v4 = vmul.f32 1.442695, %v1319_v61 }
 0x5db   : > { %3564 = vpow2.f32 %v1327_v4  ;;  %v1536_v4 = vsub.f32 %v4161_v14, %v4271_v54 }
 0x5dc   : > { %3566 = vrcp.f32 %v1562_v43 }
 0x5de   : > { %v1300_v55 = vpop.xlane.xlu2 %1299 }
 0x5df   : > { %v1320_v8 = vsub.f32 %v4242_v52, %v1300_v55 }
 0x5e1   : > { %v4301_v37 = vpop.eup %3564  ;;  %v1329_v56 = vmul.f32 1.442695, %v1320_v8 }
 0x5e2   : > { %v1343_v51 = vsel %vm866_vm12, %v4301_v37, 0.0  ;;  %v3567_v63 = vpop.eup %3566 }
 0x5e3   : > { %3568 = vpow2.f32 %v1329_v56  ;;  %1344 = vadd.xlane.f32.xlu2 %v1343_v51  ;;  %v4310_v10 = vmul.f32 %v3567_v63, %v4233_v27  ;;  %v1538_v27 = vsub.f32 %v4180_v16, %v4277_v13 }
 0x5e4   : > { %v1559_v7 = vpop.xlane.xlu1 %1558 }
 0x5e5   : > { %3570 = vrcp.f32 %v1559_v7 }
 0x5e9   : > { %v4305_v0 = vpop.eup %3568  ;;  %v1604_v28 = vpop.permute.xlu0 %1603 }
 0x5ea   : > { %1631 = vmatpush.bf16.msra.mxu0 %v1604_v28  ;;  %v1346_v42 = vsel %vm866_vm12, %v4305_v0, 0.0 }
 0x5eb   : > { %v3571_v52 = vpop.eup %3570  ;;  %1347 = vadd.xlane.f32.xlu0 %v1346_v42 }
 0x5ec   : > { %v4313_v17 = vmul.f32 %v3571_v52, %v4246_v39  ;;  %v1303_v38 = vpop.xlane.xlu1 %1302 }
 0x5ed   : > { %v1321_v32 = vsub.f32 %v4250_v15, %v1303_v38  ;;  %v1547_v15 = vmul.f32 1.442695, %v1536_v4 }
 0x5ee   : > { %v1597_v46 = vpack.c.bf16 %v4310_v10, %v4313_v17  ;;  %v1306_v6 = vpop.xlane.xlu2 %1305 }
 0x5ef   : > { %v1322_v9 = vsub.f32 %v4258_v53, %v1306_v6  ;;  %v1551_v53 = vmul.f32 1.442695, %v1538_v27  ;;  %v1331_v43 = vmul.f32 1.442695, %v1321_v32  ;;  %v1540_v6 = vsub.f32 %v4200_v33, %v4284_v44 }
 0x5f1   : > { %v1333_v18 = vmul.f32 1.442695, %v1322_v9 }
 0x5f3   : > { %3572 = vpow2.f32 %v1333_v18 }
 0x5f6   : > { %v1309_v19 = vpop.xlane.xlu1 %1308 }
 0x5f7   : > { %v1323_v21 = vsub.f32 %v4262_v49, %v1309_v19  ;;  %v1539_v49 = vsub.f32 %v4190_v25, %v4290_v59  ;;  %v1206_v19 = vpop.f32.mrf.mxu0 }
 0x5f9   : > { %v4319_v58 = vpop.eup %3572  ;;  %v1335_v1 = vmul.f32 1.442695, %v1323_v21  ;;  %v1553_v13 = vmul.f32 1.442695, %v1539_v49 }
 0x5fa   : > { %v1352_v39 = vsel %vm866_vm12, %v4319_v58, 0.0 }
 0x5fb   : > { %3574 = vpow2.f32 %v1335_v1  ;;  %1353 = vadd.xlane.f32.xlu1 %v1352_v39  ;;  %1387 = vrot.lane.b32.xlu2 %v3939_v12, %s3682_s16 }
 0x5fc   : > { %3576 = vpow2.f32 %v1551_v53 }
 0x5fd   : > { %3578 = vpow2.f32 %v1553_v13 }
 0x5fe   : > { %v1312_v34 = vpop.xlane.xlu2 %1311 }
 0x5ff   : > { %1601 = vrot.lane.b32.xlu0 %v3939_v12, %s3683_s17  ;;  %v1535_v12 = vsub.f32 %v4145_v31, %v4252_v36  ;;  %v1324_v56 = vsub.f32 %v4273_v5, %v1312_v34  ;;  %v1208_v1 = vpop.f32.mrf.mxu0 }
 0x600   : > { %v3341_v44 = vpack.i.bf16 %v1208_v1, %v1206_v19 }
 0x601   : > { %v4329_v48 = vpop.eup %3574  ;;  %v1545_v59 = vmul.f32 1.442695, %v1535_v12  ;;  %v1337_v54 = vmul.f32 1.442695, %v1324_v56 }
 0x602   : > { %v1355_v16 = vsel %vm866_vm12, %v4329_v48, 0.0  ;;  %v4335_v24 = vpop.eup %3576 }
 0x603   : > { %1356 = vadd.xlane.f32.xlu1 %v1355_v16  ;;  %v1572_v2 = vsel %vm866_vm12, %v4335_v24, 0.0  ;;  %v4339_v26 = vpop.eup %3578  ;;  %3580 = vpow2.f32 %v1545_v59 }
 0x604   : > { %v1575_v25 = vsel %vm866_vm12, %v4339_v26, 0.0  ;;  %3582 = vpow2.f32 %v1331_v43 }
 0x605   : > { %3584 = vpow2.f32 %v1549_v47 }
 0x606   : > { %v1315_v30 = vpop.xlane.xlu1 %1314  ;;  %3586 = vpow2.f32 %v1547_v15 }
 0x607   : > { %v1325_v63 = vsub.f32 %v4279_v40, %v1315_v30  ;;  %v1555_v40 = vmul.f32 1.442695, %v1540_v6 }
 0x609   : > { %v4350_v36 = vpop.eup %3580  ;;  %v1339_v5 = vmul.f32 1.442695, %v1325_v63 }
 0x60a   : > { %v1563_v8 = vsel %vm866_vm12, %v4350_v36, 0.0  ;;  %v3583_v41 = vpop.eup %3582 }
 0x60b   : > { %1573 = vadd.xlane.f32.xlu1 %v1572_v2  ;;  %v4356_v51 = vpop.eup %3584  ;;  %v1349_v14 = vsel %vm866_vm12, %v3583_v41, 0.0 }
 0x60c   : > { %v3587_v7 = vpop.eup %3586 }
 0x60d   : > { %v1566_v42 = vsel %vm866_vm12, %v3587_v7, 0.0 }
 0x60e   : > { %v1318_v31 = vpop.xlane.xlu2 %1317 }
 0x60f   : > { %v1326_v55 = vsub.f32 %v4288_v11, %v1318_v31  ;;  %v1569_v11 = vsel %vm866_vm12, %v4356_v51, 0.0 }
 0x611   : > { %v1341_v45 = vmul.f32 1.442695, %v1326_v55 }
 0x613   : > { %1576 = vadd.xlane.f32.xlu1 %v1575_v25  ;;  %3588 = vpow2.f32 %v1341_v45 }
 0x614   : > { %3590 = vpow2.f32 %v1337_v54 }
 0x615   : > { %3592 = vpow2.f32 %v1339_v5 }
 0x616   : > { %3594 = vpow2.f32 %v1555_v40 }
 0x619   : > { %v4362_v28 = vpop.eup %3588 }
 0x61a   : > { %v1364_v52 = vsel %vm866_vm12, %v4362_v28, 0.0  ;;  %v4367_v38 = vpop.eup %3590 }
 0x61b   : > { %v1358_v9 = vsel %vm866_vm12, %v4367_v38, 0.0  ;;  %v4373_v18 = vpop.eup %3592 }
 0x61c   : > { %v1361_v21 = vsel %vm866_vm12, %v4373_v18, 0.0  ;;  %v4377_v27 = vpop.eup %3594 }
 0x61d   : > { %v1578_v33 = vsel %vm866_vm12, %v4377_v27, 0.0 }
 0x61e   : > { %v1390_v61 = vpop.permute.xlu1 %1389 }
 0x61f   : > { %1417 = vmatpush.bf16.msrb.mxu1 %v1390_v61 }
 0x624   : > { %1564 = vadd.xlane.f32.xlu2 %v1563_v8 }
 0x629   : > { %1350 = vadd.xlane.f32.xlu0 %v1349_v14 }
 0x62c   : > { %1570 = vadd.xlane.f32.xlu2 %v1569_v11 }
 0x631   : > { %1567 = vadd.xlane.f32.xlu0 %v1566_v42 }
 0x634   : > { %1365 = vadd.xlane.f32.xlu2 %v1364_v52 }
 0x639   : > { %1359 = vadd.xlane.f32.xlu0 %v1358_v9 }
 0x641   : > { %1362 = vadd.xlane.f32.xlu0 %v1361_v21 }
 0x649   : > { %1579 = vadd.xlane.f32.xlu0 %v1578_v33 }
 0x64c   : > { %3342 = vrot.lane.b32.xlu2 %v3341_v44, %s3684_s19 }
 0x656   : > { %v1345_v39 = vpop.xlane.xlu2 %1344 }
 0x657   : > { %3596 = vrcp.f32 %v1345_v39 }
 0x65d   : > { %v3597_v16 = vpop.eup %3596 }
 0x65e   : > { %v1388_v53 = vpop.permute.xlu2 %1387  ;;  %v1348_v49 = vpop.xlane.xlu0 %1347  ;;  %v1375_v2 = vmul.f32 %v3597_v16, %v4301_v37 }
 0x65f   : > { %3598 = vrcp.f32 %v1348_v49  ;;  %1418 = vmatpush.bf16.msrb.mxu1 %v1388_v53 }
 0x665   : > { %v3599_v13 = vpop.eup %3598 }
 0x666   : > { %v1376_v12 = vmul.f32 %v3599_v13, %v4305_v0 }
 0x668   : > { %v1383_v25 = vpack.c.bf16 %v1376_v12, %v1375_v2 }
 0x66a   : > { %3218 = vmatmul.msk.bf16.vlgmr.msrb.gmra.mxu1 %vm866_vm12, %v1383_v25 }
 0x66e   : > { %v1354_v30 = vpop.xlane.xlu1 %1353 }
 0x66f   : > { %3600 = vrcp.f32 %v1354_v30 }
 0x671   : > { %v1602_v59 = vpop.permute.xlu0 %1601 }
 0x672   : > { %1632 = vmatpush.bf16.msra.mxu0 %v1602_v59 }
 0x675   : > { %3226 = vmatmul.msk.bf16.vlgmr.msra.gmra.mxu0 %vm866_vm12, %v1597_v46  ;;  %v3601_v29 = vpop.eup %3600 }
 0x676   : > { %v1378_v47 = vmul.f32 %v3601_v29, %v4319_v58  ;;  %v1357_v61 = vpop.xlane.xlu1 %1356 }
 0x67e   : > { %v1574_v45 = vpop.xlane.xlu1 %1573 }
 0x686   : > { %v1577_v19 = vpop.xlane.xlu1 %1576 }
 0x697   : > { %v1565_v34 = vpop.xlane.xlu2 %1564 }
 0x69c   : > { %v1351_v32 = vpop.xlane.xlu0 %1350 }
 0x69d   : > { %3602 = vrcp.f32 %v1351_v32 }
 0x69e   : > { %3604 = vrcp.f32 %v1565_v34  ;;  %v3299_v34 = vld [vmem:[%s5674_s4 + $0x8] sm:$0xff] }
 0x69f   : > { %v1571_v15 = vpop.xlane.xlu2 %1570  ;;  %1818 = vmatpush.bf16.msra.mxu2 %v3299_v34 }
 0x6a3   : > { %v3603_v43 = vpop.eup %3602 }
 0x6a4   : > { %v1568_v37 = vpop.xlane.xlu0 %1567  ;;  %v1377_v0 = vmul.f32 %v3603_v43, %v3583_v41  ;;  %v3605_v10 = vpop.eup %3604 }
 0x6a5   : > { %3606 = vrcp.f32 %v1568_v37  ;;  %v1591_v31 = vmul.f32 %v3605_v10, %v4350_v36  ;;  %v3298_v10 = vld [vmem:[%s5674_s4] sm:$0xff] }
 0x6a6   : > { %v1384_v4 = vpack.c.bf16 %v1378_v47, %v1377_v0  ;;  %3608 = vrcp.f32 %v1357_v61  ;;  %1819 = vmatpush.bf16.msra.mxu2 %v3298_v10 }
 0x6a7   : > { %v1366_v42 = vpop.xlane.xlu2 %1365 }
 0x6a8   : > { %3219 = vmatmul.msk.bf16.gmra.mxu1 %vm866_vm12, %v1384_v4 }
 0x6ab   : > { %v3607_v17 = vpop.eup %3606 }
 0x6ac   : > { %v1360_v46 = vpop.xlane.xlu0 %1359  ;;  %v1592_v55 = vmul.f32 %v3607_v17, %v3587_v7  ;;  %v3609_v41 = vpop.eup %3608 }
 0x6ad   : > { %3610 = vrcp.f32 %v1360_v46  ;;  %v1379_v14 = vmul.f32 %v3609_v41, %v4329_v48  ;;  %v1211_v7 = vpop.f32.mrf.mxu0 }
 0x6ae   : > { %v1598_v8 = vpack.c.bf16 %v1592_v55, %v1591_v31  ;;  %3612 = vrcp.f32 %v1571_v15 }
 0x6af   : > { %3614 = vrcp.f32 %v1574_v45 }
 0x6b0   : > { %3227 = vmatmul.msk.bf16.gmra.mxu0 %vm866_vm12, %v1598_v8 }
 0x6b3   : > { %v3611_v58 = vpop.eup %3610 }
 0x6b4   : > { %v1363_v56 = vpop.xlane.xlu0 %1362  ;;  %v1380_v54 = vmul.f32 %v3611_v58, %v4367_v38  ;;  %v3613_v63 = vpop.eup %3612 }
 0x6b5   : > { %v3615_v36 = vpop.eup %3614  ;;  %3616 = vrcp.f32 %v1363_v56  ;;  %v1593_v5 = vmul.f32 %v3613_v63, %v4356_v51  ;;  %v1213_v21 = vpop.f32.mrf.mxu0 }
 0x6b6   : > { %v1385_v11 = vpack.c.bf16 %v1380_v54, %v1379_v14  ;;  %3618 = vrcp.f32 %v1366_v42  ;;  %v1594_v52 = vmul.f32 %v3615_v36, %v4335_v24  ;;  %v3343_v54 = vpop.permute.xlu2 %3342 }
 0x6b7   : > { %v3345_v63 = vunpack.i.h.bf16 %v3343_v54  ;;  %v3344_v42 = vunpack.i.l.bf16 %v3343_v54 }
 0x6b8   : > { %3220 = vmatmul.msk.bf16.gmra.mxu1 %vm866_vm12, %v1385_v11  ;;  %v1599_v9 = vpack.c.bf16 %v1594_v52, %v1593_v5 }
 0x6b9   : > { %v1751_v52 = vsel %vm812_vm11, %v4204_v60, %v3345_v63 }
 0x6bb   : > { %v3617_v40 = vpop.eup %3616 }
 0x6bc   : > { %v1580_v6 = vpop.xlane.xlu0 %1579  ;;  %v3619_v48 = vpop.eup %3618  ;;  %v1381_v38 = vmul.f32 %v3617_v40, %v4373_v18 }
 0x6bd   : > { %3620 = vrcp.f32 %v1580_v6  ;;  %v1382_v1 = vmul.f32 %v3619_v48, %v4362_v28  ;;  %v1216_v53 = vpop.f32.mrf.mxu0  ;;  %v1750_v6 = vsel %vm812_vm11, %v4196_v57, %v3344_v42 }
 0x6be   : > { %3622 = vrcp.f32 %v1577_v19 }
 0x6bf   : > { %v1386_v33 = vpack.c.bf16 %v1382_v1, %v1381_v38 }
 0x6c0   : > { %3228 = vmatmul.msk.bf16.gmra.mxu0 %vm866_vm12, %v1599_v9 }
 0x6c3   : > { %v3621_v44 = vpop.eup %3620 }
 0x6c4   : > { %v3623_v51 = vpop.eup %3622  ;;  %v1596_v24 = vmul.f32 %v3621_v44, %v4377_v27 }
 0x6c5   : > { %v1595_v39 = vmul.f32 %v3623_v51, %v4339_v26  ;;  %v1218_v16 = vpop.f32.mrf.mxu0  ;;  %v3356_v26 = vpack.i.bf16 %v1213_v21, %v1211_v7 }
 0x6c6   : > { %v3371_v27 = vpack.i.bf16 %v1218_v16, %v1216_v53 }
 0x6c7   : > { %v1600_v49 = vpack.c.bf16 %v1596_v24, %v1595_v39 }
 0x6c8   : > { %3221 = vmatmul.msk.bf16.gmra.mxu1 %vm866_vm12, %v1386_v33 }
 0x6cd   : > { %v1221_v13 = vpop.f32.mrf.mxu0 }
 0x6d0   : > { %3229 = vmatmul.msk.bf16.gmra.mxu0 %vm866_vm12, %v1600_v49 }
 0x6d5   : > { %v1223_v2 = vpop.f32.mrf.mxu0 }
 0x6d6   : > { %v3386_v32 = vpack.i.bf16 %v1223_v2, %v1221_v13 }
 0x6e7   : > { %v1420_v18 = vpop.f32.mrf.mxu1 }
 0x6ef   : > { %v1422_v12 = vpop.f32.mrf.mxu1 }
 0x6f0   : > { %v3346_v25 = vpack.i.bf16 %v1422_v12, %v1420_v18 }
 0x6f2   : > { %3347 = vrot.lane.b32.xlu1 %v3346_v25, %s3685_s22  ;;  %v1634_v28 = vpop.f32.mrf.mxu0 }
 0x6fa   : > { %v1636_v59 = vpop.f32.mrf.mxu0 }
 0x6fb   : > { %v3351_v30 = vpack.i.bf16 %v1636_v59, %v1634_v28 }
 0x6fd   : > { %3352 = vrot.lane.b32.xlu0 %v3351_v30, %s3686_s23 }
 0x705   : > { %3357 = vrot.lane.b32.xlu0 %v3356_v26, %s3684_s19 }
 0x70d   : > { %3372 = vrot.lane.b32.xlu0 %v3371_v27, %s3684_s19 }
 0x715   : > { %3387 = vrot.lane.b32.xlu0 %v3386_v32, %s3684_s19 }
 0x725   : > { %v1425_v29 = vpop.f32.mrf.mxu1 }
 0x72d   : > { %v1427_v43 = vpop.f32.mrf.mxu1  ;;  %v1639_v37 = vpop.f32.mrf.mxu0 }
 0x72e   : > { %v3361_v0 = vpack.i.bf16 %v1427_v43, %v1425_v29 }
 0x730   : > { %3362 = vrot.lane.b32.xlu2 %v3361_v0, %s3685_s22 }
 0x735   : > { %v1430_v47 = vpop.f32.mrf.mxu1  ;;  %v1641_v61 = vpop.f32.mrf.mxu0 }
 0x736   : > { %v3366_v4 = vpack.i.bf16 %v1641_v61, %v1639_v37 }
 0x738   : > { %3367 = vrot.lane.b32.xlu1 %v3366_v4, %s3686_s23 }
 0x73d   : > { %v1432_v17 = vpop.f32.mrf.mxu1  ;;  %v1644_v46 = vpop.f32.mrf.mxu0 }
 0x73e   : > { %v3376_v31 = vpack.i.bf16 %v1432_v17, %v1430_v47 }
 0x740   : > { %3377 = vrot.lane.b32.xlu2 %v3376_v31, %s3685_s22 }
 0x745   : > { %v1435_v55 = vpop.f32.mrf.mxu1  ;;  %v1646_v15 = vpop.f32.mrf.mxu0 }
 0x746   : > { %v3381_v8 = vpack.i.bf16 %v1646_v15, %v1644_v46 }
 0x748   : > { %3382 = vrot.lane.b32.xlu1 %v3381_v8, %s3686_s23 }
 0x74d   : > { %v1437_v45 = vpop.f32.mrf.mxu1  ;;  %v1649_v41 = vpop.f32.mrf.mxu0 }
 0x74e   : > { %v3391_v58 = vpack.i.bf16 %v1437_v45, %v1435_v55 }
 0x750   : > { %3392 = vrot.lane.b32.xlu2 %v3391_v58, %s3685_s22 }
 0x755   : > { %v1651_v56 = vpop.f32.mrf.mxu0 }
 0x756   : > { %v3396_v14 = vpack.i.bf16 %v1651_v56, %v1649_v41 }
 0x758   : > { %3397 = vrot.lane.b32.xlu1 %v3396_v14, %s3686_s23 }
 0x764   : > { %v3348_v11 = vpop.permute.xlu1 %3347 }
 0x765   : > { %v3350_v36 = vunpack.i.h.bf16 %v3348_v11  ;;  %v3349_v7 = vunpack.i.l.bf16 %v3348_v11 }
 0x767   : > { %v1760_v19 = vsel %vm1758_vm13, %v1751_v52, %v3350_v36  ;;  %v1759_v48 = vsel %vm1758_vm13, %v1750_v6, %v3349_v7  ;;  %v3656_v36 = vld [vmem:[%s3791_s24] sm:$0xff] }
 0x76f   : > { %v3353_v5 = vpop.permute.xlu0 %3352 }
 0x770   : > { %v3355_v9 = vunpack.i.h.bf16 %v3353_v5  ;;  %v3354_v40 = vunpack.i.l.bf16 %v3353_v5 }
 0x772   : > { %v1769_v38 = vsel %vm1767_vm14, %v1760_v19, %v3355_v9  ;;  %v1768_v21 = vsel %vm1767_vm14, %v1759_v48, %v3354_v40  ;;  %v3657_v9 = vld [vmem:[%s3791_s24 + $0x8] sm:$0xff] }
 0x773   : > { %v1776_v1 = vpack.c.bf16 %v1769_v38, %v1768_v21  ;;  %v3658_v21 = vld [vmem:[%s3791_s24 + $0x10] sm:$0xff] }
 0x775   : > { %3238 = vmatmul.msk.bf16.vlgmr.msra.gmra.mxu2 %vm509_vm0, %v1776_v1 }
 0x777   : > { %v3358_v33 = vpop.permute.xlu0 %3357 }
 0x778   : > { %v3360_v51 = vunpack.i.h.bf16 %v3358_v33  ;;  %v3359_v60 = vunpack.i.l.bf16 %v3358_v33 }
 0x77a   : > { %v1753_v53 = vsel %vm812_vm11, %v4212_v62, %v3360_v51  ;;  %v1752_v49 = vsel %vm812_vm11, %v4208_v50, %v3359_v60  ;;  %v3659_v60 = vld [vmem:[%s3791_s24 + $0x18] sm:$0xff] }
 0x77f   : > { %v3373_v59 = vpop.permute.xlu0 %3372 }
 0x780   : > { %v3375_v26 = vunpack.i.h.bf16 %v3373_v59  ;;  %v3374_v62 = vunpack.i.l.bf16 %v3373_v59 }
 0x782   : > { %v1755_v34 = vsel %vm812_vm11, %v4222_v35, %v3375_v26  ;;  %v1754_v29 = vsel %vm812_vm11, %v4217_v3, %v3374_v62  ;;  %v3662_v26 = vld [vmem:[%s3791_s24 + $0x30] sm:$0xff] }
 0x787   : > { %v3388_v17 = vpop.permute.xlu0 %3387 }
 0x788   : > { %v3390_v31 = vunpack.i.h.bf16 %v3388_v17  ;;  %v3389_v35 = vunpack.i.l.bf16 %v3388_v17 }
 0x78a   : > { %v3363_v44 = vpop.permute.xlu2 %3362  ;;  %v1757_v8 = vsel %vm812_vm11, %v4231_v23, %v3390_v31  ;;  %v1756_v45 = vsel %vm812_vm11, %v4229_v22, %v3389_v35  ;;  %v3463_v23 = vld [vmem:[%s5675_s5] ss:$0 sm:$0xff] }
 0x78b   : > { %v3365_v24 = vunpack.i.h.bf16 %v3363_v44  ;;  %v3364_v39 = vunpack.i.l.bf16 %v3363_v44 }
 0x78d   : > { %v1761_v18 = vsel %vm1758_vm13, %v1752_v49, %v3364_v39  ;;  %v1762_v2 = vsel %vm1758_vm13, %v1753_v53, %v3365_v24  ;;  %v3660_v49 = vld [vmem:[%s3791_s24 + $0x20] sm:$0xff] }
 0x79a   : > { %v3378_v30 = vpop.permute.xlu2 %3377 }
 0x79b   : > { %v3380_v27 = vunpack.i.h.bf16 %v3378_v30  ;;  %v3379_v32 = vunpack.i.l.bf16 %v3378_v30 }
 0x79d   : > { %v1763_v0 = vsel %vm1758_vm13, %v1754_v29, %v3379_v32  ;;  %v1764_v47 = vsel %vm1758_vm13, %v1755_v34, %v3380_v27 }
 0x7aa   : > { %v3368_v57 = vpop.permute.xlu1 %3367  ;;  %v3393_v46 = vpop.permute.xlu2 %3392 }
 0x7ab   : > { %v3370_v16 = vunpack.i.h.bf16 %v3368_v57  ;;  %v3369_v13 = vunpack.i.l.bf16 %v3368_v57  ;;  %v3395_v55 = vunpack.i.h.bf16 %v3393_v46  ;;  %v3394_v3 = vunpack.i.l.bf16 %v3393_v46 }
 0x7ad   : > { %v1770_v12 = vsel %vm1767_vm14, %v1761_v18, %v3369_v13  ;;  %v1771_v25 = vsel %vm1767_vm14, %v1762_v2, %v3370_v16  ;;  %v1765_v56 = vsel %vm1758_vm13, %v1756_v45, %v3394_v3  ;;  %v1766_v14 = vsel %vm1758_vm13, %v1757_v8, %v3395_v55 }
 0x7ae   : > { %v1777_v28 = vpack.c.bf16 %v1771_v25, %v1770_v12  ;;  %v3661_v12 = vld [vmem:[%s3791_s24 + $0x28] sm:$0xff] }
 0x7b0   : > { %3239 = vmatmul.msk.bf16.gmra.mxu2 %vm509_vm0, %v1777_v28 }
 0x7ba   : > { %v3383_v50 = vpop.permute.xlu1 %3382 }
 0x7bb   : > { %v3385_v43 = vunpack.i.h.bf16 %v3383_v50  ;;  %v3384_v37 = vunpack.i.l.bf16 %v3383_v50 }
 0x7bd   : > { %v1772_v61 = vsel %vm1767_vm14, %v1763_v0, %v3384_v37  ;;  %v1773_v4 = vsel %vm1767_vm14, %v1764_v47, %v3385_v43 }
 0x7be   : > { %v1778_v10 = vpack.c.bf16 %v1773_v4, %v1772_v61  ;;  %v3663_v4 = vld [vmem:[%s3791_s24 + $0x38] sm:$0xff] }
 0x7c0   : > { %3240 = vmatmul.msk.bf16.gmra.mxu2 %vm509_vm0, %v1778_v10 }
 0x7ca   : > { %v3398_v15 = vpop.permute.xlu1 %3397 }
 0x7cb   : > { %v3400_v41 = vunpack.i.h.bf16 %v3398_v15  ;;  %v3399_v58 = vunpack.i.l.bf16 %v3398_v15 }
 0x7cd   : > { %v1774_v54 = vsel %vm1767_vm14, %v1765_v56, %v3399_v58  ;;  %v1775_v11 = vsel %vm1767_vm14, %v1766_v14, %v3400_v41  ;;  %v3687_v56 = vmov 0  }
 0x7ce   : > { %v1779_v63 = vpack.c.bf16 %v1775_v11, %v1774_v54  ;;  %3401 = vset.pattern.permute.xlu2 %v3687_v56  ;;  %3402 = vset.pattern.permute.xlu1 %v3687_v56 }
 0x7d0   : > { %3241 = vmatmul.msk.bf16.gmra.mxu2 %vm509_vm0, %v1779_v63 }
 0x7f8   : > { %v1821_v22 = vpop.f32.mrf.mxu2 }
 0x7f9   : > { %v1822_v42 = vadd.f32 %v3463_v23, %v1821_v22 }
 0x7fb   : > { %v4462_v7 = vadd.f32 %v3656_v36, %v1822_v42 }
 0x7fd   : > { %5716 = vst [vmem:[#allocation2_spill] sm:$0xff] %v4462_v7  ;;  %v1851_v5 = vsel %vm509_vm0, %v4462_v7, 0.0 }
 0x7fe   : > { %1852 = vadd.xlane.f32.xlu0 %v1851_v5 }
 0x800   : > { %v1823_v52 = vpop.f32.mrf.mxu2 }
 0x801   : > { %v1824_v6 = vadd.f32 %v3463_v23, %v1823_v52 }
 0x803   : > { %v4467_v40 = vadd.f32 %v3657_v9, %v1824_v6 }
 0x805   : > { %5717 = vst [vmem:[#allocation3_spill] sm:$0xff] %v4467_v40  ;;  %v1854_v19 = vsel %vm509_vm0, %v4467_v40, 0.0 }
 0x806   : > { %1855 = vadd.xlane.f32.xlu2 %v1854_v19 }
 0x833   : > { %v1826_v48 = vpop.f32.mrf.mxu2 }
 0x834   : > { %v1827_v38 = vadd.f32 %v3463_v23, %v1826_v48 }
 0x836   : > { %v4472_v1 = vadd.f32 %v3658_v21, %v1827_v38 }
 0x838   : > { %5718 = vst [vmem:[#allocation4_spill] sm:$0xff] %v4472_v1  ;;  %v1857_v33 = vsel %vm509_vm0, %v4472_v1, 0.0 }
 0x839   : > { %1858 = vadd.xlane.f32.xlu1 %v1857_v33 }
 0x83b   : > { %v1828_v44 = vpop.f32.mrf.mxu2 }
 0x83c   : > { %v1829_v51 = vadd.f32 %v3463_v23, %v1828_v44 }
 0x83e   : > { %v4477_v24 = vadd.f32 %v3659_v60, %v1829_v51  ;;  %v4555_v51 = vld [vmem:[%s5682_s12] sm:$0xff]  ;;  %v4561_v60 = vld [vmem:[%s5682_s12 + $0x8] sm:$0xff] }
 0x840   : > { %5719 = vst [vmem:[#allocation5_spill] sm:$0xff] %v4477_v24  ;;  %v1860_v39 = vsel %vm509_vm0, %v4477_v24, 0.0 }
 0x841   : > { %1861 = vadd.xlane.f32.xlu0 %v1860_v39  ;;  %v3301_v39 = vld [vmem:[%s5678_s8 + $0x8] sm:$0xff] }
 0x842   : > { %2091 = vmatpush.bf16.msra.mxu1 %v3301_v39 }
 0x843   : > { %v1831_v57 = vpop.f32.mrf.mxu2 }
 0x844   : > { %v1832_v53 = vadd.f32 %v3463_v23, %v1831_v57  ;;  %v3688_v57 = vmov 1  }
 0x846   : > { %v4482_v16 = vadd.f32 %v3660_v49, %v1832_v53 }
 0x848   : > { %5720 = vst [vmem:[#allocation6_spill] sm:$0xff] %v4482_v16  ;;  %v1863_v13 = vsel %vm509_vm0, %v4482_v16, 0.0 }
 0x849   : > { %1864 = vadd.xlane.f32.xlu2 %v1863_v13 }
 0x84b   : > { %v1833_v18 = vpop.f32.mrf.mxu2 }
 0x84c   : > { %v1834_v2 = vadd.f32 %v3463_v23, %v1833_v18  ;;  %v3300_v18 = vld [vmem:[%s5678_s8] sm:$0xff] }
 0x84d   : > { %2092 = vmatpush.bf16.msra.mxu1 %v3300_v18 }
 0x84e   : > { %v4487_v25 = vadd.f32 %v3661_v12, %v1834_v2 }
 0x850   : > { %5721 = vst [vmem:[#allocation7_spill] sm:$0xff] %v4487_v25  ;;  %v1866_v28 = vsel %vm509_vm0, %v4487_v25, 0.0 }
 0x851   : > { %1867 = vadd.xlane.f32.xlu1 %v1866_v28  ;;  %v3689_v28 = vmov 7  }
 0x852   : > { %3413 = vset.pattern.permute.xlu0 %v3689_v28 }
 0x853   : > { %v1836_v59 = vpop.f32.mrf.mxu2 }
 0x854   : > { %v1837_v30 = vadd.f32 %v3463_v23, %v1836_v59 }
 0x856   : > { %v4492_v62 = vadd.f32 %v3662_v26, %v1837_v30  ;;  %v3690_v26 = vmov 2  }
 0x858   : > { %5722 = vst [vmem:[#allocation8_spill] sm:$0xff] %v4492_v62  ;;  %v1869_v27 = vsel %vm509_vm0, %v4492_v62, 0.0 }
 0x859   : > { %1870 = vadd.xlane.f32.xlu1 %v1869_v27 }
 0x85b   : > { %v1838_v29 = vpop.f32.mrf.mxu2 }
 0x85c   : > { %v1839_v37 = vadd.f32 %v3463_v23, %v1838_v29 }
 0x85e   : > { %v4505_v10 = vadd.f32 %v3663_v4, %v1839_v37  ;;  %v3691_v4 = vmov 3  }
 0x860   : > { %5723 = vst [vmem:[#allocation9_spill] sm:$0xff] %v4505_v10  ;;  %v1872_v35 = vsel %vm509_vm0, %v4505_v10, 0.0 }
 0x871   : > { %v1853_v32 = vpop.xlane.xlu0 %1852 }
 0x872   : > { %v1875_v50 = vmul.f32 %v1853_v32, %v3807_v20 }
 0x874   : > { %v4498_v34 = vsub.f32 %v4462_v7, %v1875_v50 }
 0x876   : > { %v1891_v43 = vmul.f32 %v4498_v34, %v4498_v34 }
 0x878   : > { %v1899_v0 = vsel %vm509_vm0, %v1891_v43, 0.0 }
 0x879   : > { %v1856_v47 = vpop.xlane.xlu2 %1855  ;;  %1900 = vadd.xlane.f32.xlu0 %v1899_v0 }
 0x87a   : > { %v1876_v61 = vmul.f32 %v1856_v47, %v3807_v20 }
 0x87c   : > { %v4508_v17 = vsub.f32 %v4467_v40, %v1876_v61 }
 0x87e   : > { %v1892_v46 = vmul.f32 %v4508_v17, %v4508_v17 }
 0x880   : > { %v1902_v31 = vsel %vm509_vm0, %v1892_v46, 0.0 }
 0x881   : > { %1903 = vadd.xlane.f32.xlu2 %v1902_v31  ;;  %1873 = vadd.xlane.f32.xlu0 %v1872_v35 }
 0x8ac   : > { %v1859_v55 = vpop.xlane.xlu1 %1858 }
 0x8ad   : > { %v1877_v3 = vmul.f32 %v1859_v55, %v3807_v20 }
 0x8af   : > { %v4517_v15 = vsub.f32 %v4472_v1, %v1877_v3 }
 0x8b1   : > { %v1893_v8 = vmul.f32 %v4517_v15, %v4517_v15 }
 0x8b3   : > { %v1905_v45 = vsel %vm509_vm0, %v1893_v8, 0.0 }
 0x8b4   : > { %1906 = vadd.xlane.f32.xlu2 %v1905_v45  ;;  %v1862_v41 = vpop.xlane.xlu0 %1861 }
 0x8b5   : > { %v1878_v58 = vmul.f32 %v1862_v41, %v3807_v20  ;;  %v4593_v41 = vld [vmem:[%s5676_s6] ss:$0 sm:$0xff] }
 0x8b7   : > { %v4526_v14 = vsub.f32 %v4477_v24, %v1878_v58 }
 0x8b9   : > { %v1894_v54 = vmul.f32 %v4526_v14, %v4526_v14 }
 0x8bb   : > { %v1908_v11 = vsel %vm509_vm0, %v1894_v54, 0.0  ;;  %v3692_v54 = vmov 5  }
 0x8bc   : > { %v1865_v63 = vpop.xlane.xlu2 %1864  ;;  %1909 = vadd.xlane.f32.xlu1 %v1908_v11  ;;  %v3693_v11 = vmov 4  }
 0x8bd   : > { %v1879_v23 = vmul.f32 %v1865_v63, %v3807_v20 }
 0x8bf   : > { %v4533_v22 = vsub.f32 %v4482_v16, %v1879_v23 }
 0x8c1   : > { %v1895_v42 = vmul.f32 %v4533_v22, %v4533_v22 }
 0x8c3   : > { %v1911_v36 = vsel %vm509_vm0, %v1895_v42, 0.0  ;;  %v4603_v42 = vld [vmem:[%s5677_s7] ss:$0 sm:$0xff] }
 0x8c4   : > { %v1868_v5 = vpop.xlane.xlu1 %1867  ;;  %1912 = vadd.xlane.f32.xlu0 %v1911_v36 }
 0x8c5   : > { %v1880_v52 = vmul.f32 %v1868_v5, %v3807_v20 }
 0x8c7   : > { %v4540_v6 = vsub.f32 %v4487_v25, %v1880_v52 }
 0x8c9   : > { %v1896_v9 = vmul.f32 %v4540_v6, %v4540_v6 }
 0x8cb   : > { %v1914_v19 = vsel %vm509_vm0, %v1896_v9, 0.0 }
 0x8cc   : > { %v1871_v48 = vpop.xlane.xlu1 %1870  ;;  %1915 = vadd.xlane.f32.xlu2 %v1914_v19  ;;  %v3694_v19 = vmov 6  }
 0x8cd   : > { %v1881_v38 = vmul.f32 %v1871_v48, %v3807_v20 }
 0x8cf   : > { %v4547_v21 = vsub.f32 %v4492_v62, %v1881_v38  ;;  %v4630_v38 = vld [vmem:[%s5682_s12 + $0x10] sm:$0xff] }
 0x8d1   : > { %v1897_v33 = vmul.f32 %v4547_v21, %v4547_v21 }
 0x8d3   : > { %v1917_v44 = vsel %vm509_vm0, %v1897_v33, 0.0 }
 0x8d4   : > { %1918 = vadd.xlane.f32.xlu1 %v1917_v44 }
 0x8e4   : > { %2153 = vperm.xlu2 %3401, %v4555_v51  }
 0x8ec   : > { %3403 = vset.pattern.permute.xlu2 %v3688_v57  ;;  %v1901_v53 = vpop.xlane.xlu0 %1900 }
 0x8ed   : > { %v1923_v49 = vmul.f32 %v1901_v53, %v3807_v20  ;;  %2222 = vperm.xlu2 %3403, %v4561_v60   ;;  %2158 = vperm.xlu1 %3402, %v4561_v60  }
 0x8ef   : > { %v1931_v13 = vadd.f32 1e-05, %v1923_v49 }
 0x8f1   : > { %3624 = vrsqrt.f32 %v1931_v13  ;;  %vm1945_vm1 = vweird.f32 %v1931_v13 }
 0x8f4   : > { %v1904_v2 = vpop.xlane.xlu2 %1903  ;;  %v1874_v12 = vpop.xlane.xlu0 %1873 }
 0x8f5   : > { %v1924_v59 = vmul.f32 %v1904_v2, %v3807_v20  ;;  %v1882_v30 = vmul.f32 %v1874_v12, %v3807_v20  ;;  %3405 = vset.pattern.permute.xlu2 %v3690_v26  ;;  %3404 = vset.pattern.permute.xlu1 %v3690_v26 }
 0x8f6   : > { %2297 = vperm.xlu2 %3405, %v4561_v60   ;;  %2293 = vperm.xlu1 %3404, %v4555_v51  }
 0x8f7   : > { %v3625_v27 = vpop.eup %3624  ;;  %v1932_v32 = vadd.f32 1e-05, %v1924_v59  ;;  %v4581_v50 = vsub.f32 %v4505_v10, %v1882_v30 }
 0x8f8   : > { %v1940_v29 = vmul.f32 %v3625_v27, %v1931_v13  ;;  %vm1946_vm15 = vweird.f32 %v3625_v27 }
 0x8f9   : > { %3626 = vrsqrt.f32 %v1932_v32  ;;  %v1898_v43 = vmul.f32 %v4581_v50, %v4581_v50  ;;  %vm1947_vm2 = vmor %vm1945_vm1, %vm1946_vm15  ;;  %vm1955_vm4 = vweird.f32 %v1932_v32 }
 0x8fa   : > { %v1941_v37 = vmul.f32 %v3625_v27, %v1940_v29 }
 0x8fb   : > { %v1920_v0 = vsel %vm509_vm0, %v1898_v43, 0.0 }
 0x8fc   : > { %v1942_v47 = vmul.f32 0.5, %v1941_v37  ;;  %1921 = vadd.xlane.f32.xlu0 %v1920_v0  ;;  %v4654_v37 = vld [vmem:[%s5682_s12 + $0x20] sm:$0xff] }
 0x8fe   : > { %v1943_v61 = vsub.f32 1.5, %v1942_v47  ;;  %3407 = vset.pattern.permute.xlu2 %v3691_v4  ;;  %3406 = vset.pattern.permute.xlu1 %v3691_v4 }
 0x8ff   : > { %v3627_v46 = vpop.eup %3626  ;;  %2355 = vperm.xlu2 %3407, %v4561_v60   ;;  %2351 = vperm.xlu1 %3406, %v4555_v51  }
 0x900   : > { %v1944_v31 = vmul.f32 %v3625_v27, %v1943_v61  ;;  %v1950_v35 = vmul.f32 %v3627_v46, %v1932_v32  ;;  %vm1956_vm3 = vweird.f32 %v3627_v46 }
 0x901   : > { %vm1957_vm5 = vmor %vm1955_vm4, %vm1956_vm3 }
 0x902   : > { %v1951_v55 = vmul.f32 %v3627_v46, %v1950_v35  ;;  %v1948_v3 = vsel %vm1947_vm2, %v3625_v27, %v1944_v31 }
 0x903   : > { %v2019_v58 = vmul.f32 %v1948_v3, %v4498_v34 }
 0x904   : > { %v1952_v8 = vmul.f32 0.5, %v1951_v55 }
 0x905   : > { %v2030_v34 = vmul.f32 %v4593_v41, %v2019_v58 }
 0x906   : > { %v1953_v45 = vsub.f32 1.5, %v1952_v8 }
 0x907   : > { %3409 = vset.pattern.permute.xlu2 %v3692_v54  ;;  %3408 = vset.pattern.permute.xlu1 %v3693_v11  ;;  %v2041_v52 = vadd.f32 %v4603_v42, %v2030_v34 }
 0x908   : > { %v1954_v63 = vmul.f32 %v3627_v46, %v1953_v45  ;;  %2467 = vperm.xlu2 %3409, %v4555_v51   ;;  %2409 = vperm.xlu1 %3408, %v4555_v51  }
 0x90a   : > { %v1958_v23 = vsel %vm1957_vm5, %v3627_v46, %v1954_v63 }
 0x90b   : > { %v2020_v36 = vmul.f32 %v1958_v23, %v4508_v17  ;;  %v4625_v17 = vld [vmem:[%s5682_s12 + $0x18] sm:$0xff] }
 0x90d   : > { %v2031_v5 = vmul.f32 %v4593_v41, %v2020_v36 }
 0x90f   : > { %v2042_v9 = vadd.f32 %v4603_v42, %v2031_v5 }
 0x910   : > { %3411 = vset.pattern.permute.xlu2 %v3694_v19  ;;  %3410 = vset.pattern.permute.xlu1 %v3692_v54 }
 0x911   : > { %2525 = vperm.xlu2 %3411, %v4555_v51   ;;  %2471 = vperm.xlu1 %3410, %v4561_v60   ;;  %v2049_v48 = vpack.c.bf16 %v2042_v9, %v2041_v52 }
 0x912   : > { %2583 = vperm.xlu0 %3413, %v4555_v51  }
 0x913   : > { %3250 = vmatmul.msk.bf16.vlgmr.msra.gmra.mxu1 %vm509_vm0, %v2049_v48 }
 0x919   : > { %3415 = vset.pattern.permute.xlu2 %v3689_v28  ;;  %3412 = vset.pattern.permute.xlu1 %v3694_v19 }
 0x91a   : > { %2587 = vperm.xlu2 %3415, %v4561_v60   ;;  %2529 = vperm.xlu1 %3412, %v4561_v60  }
 0x91b   : > { %3414 = vset.pattern.permute.xlu0 %v3693_v11 }
 0x91c   : > { %2413 = vperm.xlu0 %3414, %v4561_v60  }
 0x922   : > { %3417 = vset.pattern.permute.xlu2 %v3687_v56  ;;  %3416 = vset.pattern.permute.xlu1 %v3687_v56 }
 0x923   : > { %2168 = vperm.xlu2 %3417, %v4625_v17   ;;  %2163 = vperm.xlu1 %3416, %v4630_v38  }
 0x924   : > { %2417 = vperm.xlu0 %3414, %v4630_v38  }
 0x927   : > { %v1907_v33 = vpop.xlane.xlu2 %1906 }
 0x928   : > { %v1925_v44 = vmul.f32 %v1907_v33, %v3807_v20 }
 0x92a   : > { %v1933_v60 = vadd.f32 1e-05, %v1925_v44 }
 0x92b   : > { %3419 = vset.pattern.permute.xlu2 %v3690_v26  ;;  %3418 = vset.pattern.permute.xlu1 %v3688_v57 }
 0x92c   : > { %3628 = vrsqrt.f32 %v1933_v60  ;;  %2301 = vperm.xlu2 %3419, %v4630_v38   ;;  %2226 = vperm.xlu1 %3418, %v4630_v38   ;;  %vm1965_vm7 = vweird.f32 %v1933_v60 }
 0x92d   : > { %3423 = vset.pattern.permute.xlu0 %v3688_v57 }
 0x92e   : > { %2218 = vperm.xlu0 %3423, %v4555_v51  }
 0x92f   : > { %v1910_v39 = vpop.xlane.xlu1 %1909 }
 0x930   : > { %v1926_v53 = vmul.f32 %v1910_v39, %v3807_v20 }
 0x932   : > { %v3629_v49 = vpop.eup %3628  ;;  %v1934_v13 = vadd.f32 1e-05, %v1926_v53 }
 0x933   : > { %v1960_v18 = vmul.f32 %v3629_v49, %v1933_v60  ;;  %vm1966_vm6 = vweird.f32 %v3629_v49 }
 0x934   : > { %3630 = vrsqrt.f32 %v1934_v13  ;;  %3421 = vset.pattern.permute.xlu2 %v3691_v4  ;;  %3420 = vset.pattern.permute.xlu1 %v3690_v26  ;;  %vm1967_vm8 = vmor %vm1965_vm7, %vm1966_vm6  ;;  %vm1975_vm10 = vweird.f32 %v1934_v13 }
 0x935   : > { %v1961_v2 = vmul.f32 %v3629_v49, %v1960_v18  ;;  %2359 = vperm.xlu2 %3421, %v4630_v38   ;;  %2305 = vperm.xlu1 %3420, %v4625_v17  }
 0x936   : > { %2230 = vperm.xlu0 %3423, %v4625_v17  }
 0x937   : > { %v1962_v12 = vmul.f32 0.5, %v1961_v2  ;;  %v1913_v51 = vpop.xlane.xlu0 %1912 }
 0x938   : > { %v1927_v59 = vmul.f32 %v1913_v51, %v3807_v20 }
 0x939   : > { %v1963_v30 = vsub.f32 1.5, %v1962_v12 }
 0x93a   : > { %v3631_v27 = vpop.eup %3630  ;;  %v1935_v32 = vadd.f32 1e-05, %v1927_v59 }
 0x93b   : > { %v1964_v29 = vmul.f32 %v3629_v49, %v1963_v30  ;;  %v1970_v43 = vmul.f32 %v3631_v27, %v1934_v13  ;;  %vm1976_vm9 = vweird.f32 %v3631_v27 }
 0x93c   : > { %3632 = vrsqrt.f32 %v1935_v32  ;;  %vm1977_vm11 = vmor %vm1975_vm10, %vm1976_vm9  ;;  %vm1985_vm13 = vweird.f32 %v1935_v32 }
 0x93d   : > { %v1971_v0 = vmul.f32 %v3631_v27, %v1970_v43  ;;  %3424 = vset.pattern.permute.xlu2 %v3693_v11  ;;  %3422 = vset.pattern.permute.xlu1 %v3691_v4  ;;  %v1968_v47 = vsel %vm1967_vm8, %v3629_v49, %v1964_v29 }
 0x93e   : > { %2421 = vperm.xlu2 %3424, %v4625_v17   ;;  %2363 = vperm.xlu1 %3422, %v4625_v17   ;;  %v2021_v3 = vmul.f32 %v1968_v47, %v4517_v15 }
 0x93f   : > { %v1972_v61 = vmul.f32 0.5, %v1971_v0  ;;  %v1916_v46 = vpop.xlane.xlu2 %1915  ;;  %2234 = vperm.xlu0 %3423, %v4654_v37  }
 0x940   : > { %v1928_v31 = vmul.f32 %v1916_v46, %v3807_v20  ;;  %v2032_v36 = vmul.f32 %v4593_v41, %v2021_v3  ;;  %v4708_v46 = vld [vmem:[%s5682_s12 + $0x28] sm:$0xff] }
 0x941   : > { %v1973_v35 = vsub.f32 1.5, %v1972_v61 }
 0x942   : > { %v3633_v55 = vpop.eup %3632  ;;  %v1936_v8 = vadd.f32 1e-05, %v1928_v31  ;;  %v2043_v48 = vadd.f32 %v4603_v42, %v2032_v36 }
 0x943   : > { %v1974_v45 = vmul.f32 %v3631_v27, %v1973_v35  ;;  %v1980_v58 = vmul.f32 %v3633_v55, %v1935_v32  ;;  %vm1986_vm12 = vweird.f32 %v3633_v55 }
 0x944   : > { %3634 = vrsqrt.f32 %v1936_v8  ;;  %vm1987_vm14 = vmor %vm1985_vm13, %vm1986_vm12  ;;  %vm1995_vm1 = vweird.f32 %v1936_v8 }
 0x945   : > { %v1978_v63 = vsel %vm1977_vm11, %v3631_v27, %v1974_v45  ;;  %v1981_v23 = vmul.f32 %v3633_v55, %v1980_v58 }
 0x946   : > { %v2022_v34 = vmul.f32 %v1978_v63, %v4526_v14  ;;  %3426 = vset.pattern.permute.xlu2 %v3692_v54  ;;  %3425 = vset.pattern.permute.xlu1 %v3692_v54 }
 0x947   : > { %v1982_v5 = vmul.f32 0.5, %v1981_v23  ;;  %2479 = vperm.xlu2 %3426, %v4625_v17   ;;  %2475 = vperm.xlu1 %3425, %v4630_v38   ;;  %v4669_v15 = vpop.permute.xlu2 %2153  ;;  %v1919_v32 = vpop.xlane.xlu1 %1918 }
 0x948   : > { %5724 = vst [vmem:[#allocation10_spill] sm:$0xff] %v4669_v15  ;;  %v2033_v52 = vmul.f32 %v4593_v41, %v2022_v34  ;;  %3432 = vset.pattern.permute.xlu0 %v3694_v19 }
 0x949   : > { %v1983_v9 = vsub.f32 1.5, %v1982_v5  ;;  %2537 = vperm.xlu0 %3432, %v4625_v17  }
 0x94a   : > { %v3635_v14 = vpop.eup %3634  ;;  %v2044_v33 = vadd.f32 %v4603_v42, %v2033_v52 }
 0x94b   : > { %v1984_v44 = vmul.f32 %v3633_v55, %v1983_v9  ;;  %v1990_v60 = vmul.f32 %v3635_v14, %v1936_v8  ;;  %vm1996_vm15 = vweird.f32 %v3635_v14 }
 0x94c   : > { %v2050_v39 = vpack.c.bf16 %v2044_v33, %v2043_v48  ;;  %vm1997_vm2 = vmor %vm1995_vm1, %vm1996_vm15 }
 0x94d   : > { %v1991_v53 = vmul.f32 %v3635_v14, %v1990_v60  ;;  %v1988_v49 = vsel %vm1987_vm14, %v3633_v55, %v1984_v44 }
 0x94e   : > { %3251 = vmatmul.msk.bf16.gmra.mxu1 %vm509_vm0, %v2050_v39  ;;  %v2023_v12 = vmul.f32 %v1988_v49, %v4533_v22  ;;  %v4695_v22 = vld [vmem:[%s5682_s12 + $0x38] sm:$0xff] }
 0x94f   : > { %v1992_v13 = vmul.f32 0.5, %v1991_v53  ;;  %3428 = vset.pattern.permute.xlu2 %v3689_v28  ;;  %3427 = vset.pattern.permute.xlu1 %v3694_v19  ;;  %v4679_v18 = vpop.permute.xlu2 %2222 }
 0x950   : > { %2591 = vperm.xlu2 %3428, %v4630_v38   ;;  %2533 = vperm.xlu1 %3427, %v4630_v38   ;;  %v2034_v27 = vmul.f32 %v4593_v41, %v2023_v12 }
 0x951   : > { %v1993_v2 = vsub.f32 1.5, %v1992_v13  ;;  %2541 = vperm.xlu0 %3432, %v4654_v37  }
 0x952   : > { %v2045_v43 = vadd.f32 %v4603_v42, %v2034_v27 }
 0x953   : > { %v1994_v51 = vmul.f32 %v3635_v14, %v1993_v2 }
 0x955   : > { %v1998_v59 = vsel %vm1997_vm2, %v3635_v14, %v1994_v51 }
 0x956   : > { %v2024_v30 = vmul.f32 %v1998_v59, %v4540_v6  ;;  %v1929_v6 = vmul.f32 %v1919_v32, %v3807_v20 }
 0x957   : > { %v4687_v29 = vpop.permute.xlu2 %2297 }
 0x958   : > { %3430 = vset.pattern.permute.xlu2 %v3687_v56  ;;  %3429 = vset.pattern.permute.xlu1 %v3689_v28  ;;  %v2035_v38 = vmul.f32 %v4593_v41, %v2024_v30  ;;  %v1937_v61 = vadd.f32 1e-05, %v1929_v6 }
 0x959   : > { %2173 = vperm.xlu2 %3430, %v4654_v37   ;;  %2595 = vperm.xlu1 %3429, %v4625_v17  }
 0x95a   : > { %v2046_v0 = vadd.f32 %v4603_v42, %v2035_v38  ;;  %3445 = vset.pattern.permute.xlu0 %v3687_v56  ;;  %3636 = vrsqrt.f32 %v1937_v61  ;;  %vm2005_vm4 = vweird.f32 %v1937_v61 }
 0x95b   : > { %2188 = vperm.xlu0 %3445, %v4695_v22  }
 0x95c   : > { %v2051_v47 = vpack.c.bf16 %v2046_v0, %v2045_v43 }
 0x95e   : > { %3252 = vmatmul.msk.bf16.gmra.mxu1 %vm509_vm0, %v2051_v47 }
 0x95f   : > { %v4710_v17 = vpop.permute.xlu1 %2158  ;;  %v4712_v31 = vpop.permute.xlu2 %2355 }
 0x960   : > { %5725 = vst [vmem:[#allocation11_spill] sm:$0xff] %v4710_v17  ;;  %v3637_v55 = vpop.eup %3636 }
 0x961   : > { %3433 = vset.pattern.permute.xlu2 %v3688_v57  ;;  %3431 = vset.pattern.permute.xlu1 %v3687_v56  ;;  %v2000_v8 = vmul.f32 %v3637_v55, %v1937_v61  ;;  %vm2006_vm3 = vweird.f32 %v3637_v55 }
 0x962   : > { %2238 = vperm.xlu2 %3433, %v4708_v46   ;;  %2178 = vperm.xlu1 %3431, %v4708_v46   ;;  %vm2007_vm5 = vmor %vm2005_vm4, %vm2006_vm3 }
 0x963   : > { %3446 = vset.pattern.permute.xlu0 %v3691_v4  ;;  %v2001_v45 = vmul.f32 %v3637_v55, %v2000_v8 }
 0x964   : > { %2371 = vperm.xlu0 %3446, %v4708_v46  }
 0x965   : > { %v2002_v5 = vmul.f32 0.5, %v2001_v45 }
 0x967   : > { %v4720_v35 = vpop.permute.xlu2 %2467  ;;  %v2003_v52 = vsub.f32 1.5, %v2002_v5 }
 0x968   : > { %v4722_v3 = vpop.permute.xlu1 %2293 }
 0x969   : > { %5726 = vst [vmem:[#allocation12_spill] sm:$0xff] %v4722_v3  ;;  %v2004_v33 = vmul.f32 %v3637_v55, %v2003_v52 }
 0x96a   : > { %3435 = vset.pattern.permute.xlu2 %v3690_v26  ;;  %3434 = vset.pattern.permute.xlu1 %v3690_v26 }
 0x96b   : > { %2313 = vperm.xlu2 %3435, %v4708_v46   ;;  %2309 = vperm.xlu1 %3434, %v4654_v37   ;;  %v2008_v39 = vsel %vm2007_vm5, %v3637_v55, %v2004_v33 }
 0x96c   : > { %v2025_v2 = vmul.f32 %v2008_v39, %v4547_v21 }
 0x96e   : > { %v2036_v21 = vmul.f32 %v4593_v41, %v2025_v2 }
 0x96f   : > { %v1922_v58 = vpop.xlane.xlu0 %1921  ;;  %v4728_v63 = vpop.permute.xlu2 %2525 }
 0x970   : > { %v1930_v23 = vmul.f32 %v1922_v58, %v3807_v20  ;;  %v4742_v20 = vld [vmem:[%s5682_s12 + $0x30] sm:$0xff]  ;;  %v2047_v38 = vadd.f32 %v4603_v42, %v2036_v21  ;;  %v2132_v58 = vlaneseq  ;;  %v4872_v21 = vld [vmem:[%s5680_s10 + $0x1] ss:$0 sm:$0xff] }
 0x971   : > { %v4731_v34 = vpop.permute.xlu1 %2351  ;;  %2375 = vperm.xlu0 %3446, %v4742_v20  }
 0x972   : > { %5727 = vst [vmem:[#allocation13_spill] sm:$0xff] %v4731_v34  ;;  %v1938_v36 = vadd.f32 1e-05, %v1930_v23  ;;  %v4827_v5 = vshrl.u32 %v2132_v58, 7 }
 0x973   : > { %3437 = vset.pattern.permute.xlu2 %v3693_v11  ;;  %3436 = vset.pattern.permute.xlu1 %v3691_v4 }
 0x974   : > { %3638 = vrsqrt.f32 %v1938_v36  ;;  %2425 = vperm.xlu2 %3437, %v4654_v37   ;;  %2367 = vperm.xlu1 %3436, %v4654_v37   ;;  %vm2015_vm7 = vweird.f32 %v1938_v36  ;;  %vm2134_vm9 = vcmp.lt.s32.totalorder %v4827_v5, 1  ;;  %vm2283_vm10 = vcmp.lt.s32.totalorder %v4827_v5, 7 }
 0x977   : > { %v4737_v9 = vpop.permute.xlu2 %2587 }
 0x979   : > { %3455 = vset.pattern.permute.xlu0 %v3692_v54 }
 0x97a   : > { %v3639_v14 = vpop.eup %3638  ;;  %v4745_v48 = vpop.permute.xlu1 %2409  ;;  %2495 = vperm.xlu0 %3455, %v4695_v22  }
 0x97b   : > { %v2010_v44 = vmul.f32 %v3639_v14, %v1938_v36  ;;  %vm2016_vm6 = vweird.f32 %v3639_v14 }
 0x97c   : > { %3439 = vset.pattern.permute.xlu2 %v3692_v54  ;;  %3438 = vset.pattern.permute.xlu1 %v3693_v11  ;;  %vm2017_vm8 = vmor %vm2015_vm7, %vm2016_vm6 }
 0x97d   : > { %v2011_v60 = vmul.f32 %v3639_v14, %v2010_v44  ;;  %2483 = vperm.xlu2 %3439, %v4654_v37   ;;  %2429 = vperm.xlu1 %3438, %v4708_v46  }
 0x97f   : > { %v2012_v53 = vmul.f32 0.5, %v2011_v60  ;;  %v4751_v49 = vpop.permute.xlu2 %2168 }
 0x981   : > { %v2013_v13 = vsub.f32 1.5, %v2012_v53  ;;  %v4854_v53 = vld [vmem:[%s5680_s10] ss:$0 sm:$0xff] }
 0x982   : > { %3460 = vset.pattern.permute.xlu0 %v3689_v28 }
 0x983   : > { %v2014_v12 = vmul.f32 %v3639_v14, %v2013_v13  ;;  %v4756_v51 = vpop.permute.xlu1 %2471 }
 0x985   : > { %v2018_v59 = vsel %vm2017_vm8, %v3639_v14, %v2014_v12  ;;  %3441 = vset.pattern.permute.xlu2 %v3694_v19  ;;  %3440 = vset.pattern.permute.xlu1 %v3692_v54 }
 0x986   : > { %v2026_v30 = vmul.f32 %v2018_v59, %v4581_v50  ;;  %2545 = vperm.xlu2 %3441, %v4708_v46   ;;  %2487 = vperm.xlu1 %3440, %v4708_v46   ;;  %v4866_v59 = vld [vmem:[%s5680_s10 + $0x4] ss:$0 sm:$0xff] }
 0x987   : > { %v4765_v32 = vpop.permute.xlu2 %2301 }
 0x988   : > { %v2037_v27 = vmul.f32 %v4593_v41, %v2026_v30 }
 0x98a   : > { %v2048_v6 = vadd.f32 %v4603_v42, %v2037_v27 }
 0x98c   : > { %v4770_v43 = vpop.permute.xlu1 %2529  ;;  %v2052_v0 = vpack.c.bf16 %v2048_v6, %v2047_v38 }
 0x98e   : > { %3443 = vset.pattern.permute.xlu2 %v3689_v28  ;;  %3442 = vset.pattern.permute.xlu1 %v3689_v28 }
 0x98f   : > { %3253 = vmatmul.msk.bf16.gmra.mxu1 %vm509_vm0, %v2052_v0  ;;  %2603 = vperm.xlu2 %3443, %v4708_v46   ;;  %v4777_v50 = vpop.permute.xlu2 %2359 }
 0x990   : > { %2599 = vperm.xlu1 %3442, %v4654_v37   ;;  %v2094_v55 = vpop.f32.mrf.mxu1 }
 0x995   : > { %v2164_v41 = vpop.permute.xlu1 %2163 }
 0x997   : > { %3447 = vset.pattern.permute.xlu2 %v3688_v57 }
 0x998   : > { %3444 = vset.pattern.permute.xlu1 %v3687_v56  ;;  %2242 = vperm.xlu2 %3447, %v4742_v20   ;;  %v4783_v42 = vpop.permute.xlu2 %2421  ;;  %v4793_v56 = vpop.permute.xlu0 %2583 }
 0x999   : > { %2183 = vperm.xlu1 %3444, %v4742_v20   ;;  %v2096_v45 = vpop.f32.mrf.mxu1 }
 0x99e   : > { %v2227_v47 = vpop.permute.xlu1 %2226 }
 0x9a0   : > { %3449 = vset.pattern.permute.xlu2 %v3690_v26  ;;  %v4804_v8 = vpop.permute.xlu0 %2413 }
 0x9a1   : > { %3448 = vset.pattern.permute.xlu1 %v3688_v57  ;;  %2317 = vperm.xlu2 %3449, %v4742_v20   ;;  %v4789_v37 = vpop.permute.xlu2 %2479 }
 0x9a2   : > { %2246 = vperm.xlu1 %3448, %v4695_v22  }
 0x9a7   : > { %v4791_v61 = vpop.permute.xlu1 %2305 }
 0x9a8   : > { %v4821_v23 = vpop.permute.xlu0 %2417 }
 0x9a9   : > { %3451 = vset.pattern.permute.xlu2 %v3691_v4 }
 0x9aa   : > { %3450 = vset.pattern.permute.xlu1 %v3690_v26  ;;  %2379 = vperm.xlu2 %3451, %v4695_v22   ;;  %v4801_v57 = vpop.permute.xlu2 %2591 }
 0x9ab   : > { %2321 = vperm.xlu1 %3450, %v4695_v22  }
 0x9b0   : > { %v4799_v46 = vpop.permute.xlu1 %2363  ;;  %v4843_v60 = vpop.permute.xlu0 %2218 }
 0x9b1   : > { %5729 = vst [vmem:[#allocation15_spill] sm:$0xff] %v4843_v60 }
 0x9b2   : > { %3453 = vset.pattern.permute.xlu2 %v3693_v11 }
 0x9b3   : > { %3452 = vset.pattern.permute.xlu1 %v3693_v11  ;;  %2437 = vperm.xlu2 %3453, %v4695_v22   ;;  %v4811_v4 = vpop.permute.xlu2 %2173  ;;  %v4819_v11 = vld [vmem:[%s5679_s9] ss:$0 sm:$0xff] }
 0x9b4   : > { %2433 = vperm.xlu1 %3452, %v4742_v20   ;;  %v4825_v36 = vadd.f32 %v4819_v11, %v2096_v45  ;;  %v4830_v52 = vadd.f32 %v4819_v11, %v2094_v55 }
 0x9b6   : > { %5728 = vst [vmem:[#allocation14_spill] sm:$0xff] %v4830_v52  ;;  %v2126_v14 = vrot.slane %v4825_v36, 7  ;;  %v5686_v44 = vrot.slane %v4830_v52, 7  ;;  %v2251_v2 = vmul.f32 %v2227_v47, %v4825_v36  ;;  %v5687_v30 = vrot.slane %v4825_v36, 1 }
 0x9b8   : > { %v4849_v39 = vsel %vm2134_vm9, %v5686_v44, %v2126_v14  ;;  %v2261_v47 = vmul.f32 %v4872_v21, %v2251_v2  ;;  %v2231_v58 = vpop.permute.xlu0 %2230 }
 0x9b9   : > { %v4809_v26 = vpop.permute.xlu1 %2475 }
 0x9bb   : > { %3456 = vset.pattern.permute.xlu2 %v3694_v19 }
 0x9bc   : > { %3454 = vset.pattern.permute.xlu1 %v3692_v54  ;;  %2549 = vperm.xlu2 %3456, %v4742_v20   ;;  %v4837_v33 = vpop.permute.xlu2 %2238 }
 0x9bd   : > { %2491 = vperm.xlu1 %3454, %v4742_v20  }
 0x9c2   : > { %v4832_v54 = vpop.permute.xlu1 %2533 }
 0x9c4   : > { %3458 = vset.pattern.permute.xlu2 %v3689_v28 }
 0x9c5   : > { %3457 = vset.pattern.permute.xlu1 %v3694_v19  ;;  %2607 = vperm.xlu2 %3458, %v4742_v20   ;;  %v2193_v19 = vmul.f32 %v2164_v41, %v4849_v39  ;;  %v4880_v41 = vpop.permute.xlu2 %2313 }
 0x9c6   : > { %2553 = vperm.xlu1 %3457, %v4695_v22  }
 0x9c7   : > { %v2203_v0 = vmul.f32 %v4854_v53, %v2193_v19 }
 0x9cb   : > { %v2099_v20 = vpop.f32.mrf.mxu1  ;;  %v4857_v13 = vpop.permute.xlu1 %2595 }
 0x9cc   : > { %v4861_v12 = vadd.f32 %v4819_v11, %v2099_v20 }
 0x9ce   : > { %v2118_v27 = vmul.f32 %v4866_v59, %v4861_v12  ;;  %v2127_v38 = vrot.slane %v4861_v12, 7  ;;  %v2278_v6 = vrot.slane %v4861_v12, 1  ;;  %3459 = vset.pattern.permute.xlu1 %v3689_v28  ;;  %v2252_v44 = vmul.f32 %v2231_v58, %v4861_v12 }
 0x9cf   : > { %2611 = vperm.xlu1 %3459, %v4695_v22   ;;  %v4900_v22 = vld [vmem:[%s5680_s10 + $0x2] ss:$0 sm:$0xff] }
 0x9d0   : > { %v4887_v55 = vsel %vm2134_vm9, %v2126_v14, %v2127_v38  ;;  %v2211_v45 = vadd.f32 %v2203_v0, %v2118_v27  ;;  %v4893_v28 = vsel %vm2283_vm10, %v5687_v30, %v2278_v6  ;;  %v4909_v0 = vld [vmem:[%s5680_s10 + $0x3] ss:$0 sm:$0xff]  ;;  %v2262_v58 = vmul.f32 %v4872_v21, %v2252_v44 }
 0x9d1   : > { %v2384_v19 = vmul.f32 %v4777_v50, %v4887_v55  ;;  %v2326_v14 = vmul.f32 %v4765_v32, %v4893_v28  ;;  %v2194_v20 = vmul.f32 %v4751_v49, %v4887_v55 }
 0x9d2   : > { %v2269_v2 = vadd.f32 %v2261_v47, %v2211_v45 }
 0x9d3   : > { %v2101_v27 = vpop.f32.mrf.mxu1  ;;  %v2336_v50 = vmul.f32 %v4900_v22, %v2326_v14  ;;  %v2394_v62 = vmul.f32 %v4909_v0, %v2384_v19  ;;  %v2204_v45 = vmul.f32 %v4854_v53, %v2194_v20  ;;  %v4938_v20 = vld [vmem:[%s5680_s10 + $0x5] ss:$0 sm:$0xff] }
 0x9d4   : > { %v4914_v30 = vadd.f32 %v4819_v11, %v2101_v27  ;;  %v4916_v10 = vpop.permute.xlu1 %2178  ;;  %5730 = vst [vmem:[#allocation16_spill] sm:$0xff] %v4938_v20 }
 0x9d5   : > { %v2344_v32 = vadd.f32 %v2336_v50, %v2269_v2  ;;  %v4929_v2 = vpop.permute.xlu2 %2425 }
 0x9d6   : > { %v2119_v49 = vmul.f32 %v4866_v59, %v4914_v30  ;;  %v2128_v47 = vrot.slane %v4914_v30, 7  ;;  %v2279_v25 = vrot.slane %v4914_v30, 1  ;;  %v2558_v1 = vmul.f32 %v4832_v54, %v4914_v30  ;;  %v4979_v54 = vld [vmem:[%s5680_s10 + $0x8] ss:$0 sm:$0xff] }
 0x9d7   : > { %v2402_v14 = vadd.f32 %v2394_v62, %v2344_v32  ;;  %v4946_v32 = vpop.permute.xlu0 %2234 }
 0x9d8   : > { %v2212_v16 = vadd.f32 %v2204_v45, %v2119_v49  ;;  %v4927_v27 = vsel %vm2134_vm9, %v2127_v38, %v2128_v47  ;;  %v4933_v19 = vsel %vm2283_vm10, %v2278_v6, %v2279_v25 }
 0x9d9   : > { %v2327_v62 = vmul.f32 %v4791_v61, %v4933_v19  ;;  %v2385_v44 = vmul.f32 %v4799_v46, %v4927_v27  ;;  %v2442_v38 = vmul.f32 %v4821_v23, %v4933_v19  ;;  %v2500_v61 = vmul.f32 %v4809_v26, %v4927_v27 }
 0x9da   : > { %v2270_v50 = vadd.f32 %v2262_v58, %v2212_v16 }
 0x9db   : > { %v2104_v49 = vpop.f32.mrf.mxu1  ;;  %v2337_v45 = vmul.f32 %v4900_v22, %v2327_v62  ;;  %v2452_v24 = vmul.f32 %v4938_v20, %v2442_v38  ;;  %v2395_v23 = vmul.f32 %v4909_v0, %v2385_v44 }
 0x9dc   : > { %v4949_v6 = vadd.f32 %v4819_v11, %v2104_v49  ;;  %v4964_v49 = vld [vmem:[%s5680_s10 + $0x6] ss:$0 sm:$0xff] }
 0x9dd   : > { %v4953_v16 = vpop.permute.xlu1 %2309  ;;  %v2345_v58 = vadd.f32 %v2337_v45, %v2270_v50  ;;  %5731 = vst [vmem:[#allocation17_spill] sm:$0xff] %v4964_v49  ;;  %v2460_v38 = vadd.f32 %v2452_v24, %v2402_v14  ;;  %v4974_v50 = vld [vmem:[%s5680_s10 + $0x7] ss:$0 sm:$0xff]  ;;  %v2510_v14 = vmul.f32 %v4964_v49, %v2500_v61 }
 0x9de   : > { %v2280_v46 = vrot.slane %v4949_v6, 1  ;;  %v5696_v62 = vrot.slane %v4949_v6, 7  ;;  %5732 = vst [vmem:[#allocation18_spill] sm:$0xff] %v4974_v50 }
 0x9df   : > { %v2403_v26 = vadd.f32 %v2395_v23, %v2345_v58  ;;  %v4994_v58 = vpop.permute.xlu2 %2483  ;;  %v2518_v34 = vadd.f32 %v2510_v14, %v2460_v38  ;;  %v5008_v38 = vld [vmem:[%s5681_s11] ss:$0 sm:$0xff] }
 0x9e0   : > { %v4969_v40 = vsel %vm2283_vm10, %v2279_v25, %v2280_v46  ;;  %v4989_v25 = vsel %vm2134_vm9, %v2128_v47, %v5696_v62  ;;  %v2538_v47 = vpop.permute.xlu0 %2537  ;;  %5733 = vst [vmem:[#allocation19_spill] sm:$0xff] %v5008_v38 }
 0x9e1   : > { %v2443_v44 = vmul.f32 %v4783_v42, %v4969_v40  ;;  %v2616_v24 = vmul.f32 %v4801_v57, %v4969_v40  ;;  %v2501_v45 = vmul.f32 %v4789_v37, %v4989_v25  ;;  %v2568_v57 = vmul.f32 %v4974_v50, %v2558_v1 }
 0x9e2   : > { %v2559_v37 = vmul.f32 %v2538_v47, %v4949_v6 }
 0x9e3   : > { %v2453_v23 = vmul.f32 %v4938_v20, %v2443_v44  ;;  %v2626_v42 = vmul.f32 %v4979_v54, %v2616_v24  ;;  %v2106_v7 = vpop.f32.mrf.mxu1  ;;  %v2511_v61 = vmul.f32 %v4964_v49, %v2501_v45  ;;  %v2576_v15 = vadd.f32 %v2568_v57, %v2518_v34 }
 0x9e4   : > { %v5000_v3 = vadd.f32 %v4819_v11, %v2106_v7  ;;  %v2569_v34 = vmul.f32 %v4974_v50, %v2559_v37 }
 0x9e5   : > { %v2461_v62 = vadd.f32 %v2453_v23, %v2403_v26  ;;  %v2634_v1 = vadd.f32 %v2626_v42, %v2576_v15 }
 0x9e6   : > { %v5697_v17 = vrot.slane %v5000_v3, 1  ;;  %v2368_v60 = vpop.permute.xlu1 %2367 }
 0x9e7   : > { %v2519_v44 = vadd.f32 %v2511_v61, %v2461_v62  ;;  %v5020_v24 = vadd.f32 %v5008_v38, %v2634_v1  ;;  %v5023_v45 = vpop.permute.xlu2 %2545 }
 0x9e8   : > { %v5014_v7 = vsel %vm2283_vm10, %v2280_v46, %v5697_v17  ;;  %5734 = vst [vmem:[#allocation20_spill] sm:$0xff] %v5023_v45  ;;  %v5044_v1 = vpop.permute.xlu0 %2541 }
 0x9e9   : > { %v2617_v26 = vmul.f32 %v4857_v13, %v5014_v7  ;;  %v2577_v62 = vadd.f32 %v2569_v34, %v2519_v44  ;;  %v5026_v15 = vmul.f32 0.70710677, %v5020_v24 }
 0x9eb   : > { %v2627_v14 = vmul.f32 %v4979_v54, %v2617_v26  ;;  %5735 = vst [vmem:[#allocation21_spill] sm:$0xff] %v5026_v15  ;;  %v2748_v46 = vmul.f32 %v5026_v15, %v5026_v15 }
 0x9ed   : > { %v2635_v23 = vadd.f32 %v2627_v14, %v2577_v62  ;;  %v5035_v13 = vmin.f32 %v2748_v46, 16.0  ;;  %v2250_v14 = vmul.f32 %v4679_v18, %v4830_v52  ;;  %v5703_v18 = vrot.slane %v4830_v52, 1 }
 0x9ef   : > { %v5028_v42 = vpop.permute.xlu1 %2429  ;;  %v5033_v57 = vadd.f32 %v5008_v38, %v2635_v23  ;;  %v2750_v61 = vmul.f32 2.1237322e-06, %v5035_v13  ;;  %v2761_v37 = vmul.f32 3.8918573e-05, %v5035_v13  ;;  %v2195_v23 = vmul.f32 %v4811_v4, %v4927_v27  ;;  %v5052_v46 = vpop.permute.xlu2 %2603 }
 0x9f0   : > { %5738 = vst [vmem:[#allocation24_spill] sm:$0xff] %v5052_v46  ;;  %v2556_v4 = vmul.f32 %v4728_v63, %v4825_v36  ;;  %v5067_v27 = vmul.f32 %v4866_v59, %v4830_v52  ;;  %v5742_v63 = vrot.slane %v4825_v36, 1 }
 0x9f1   : > { %5736 = vst [vmem:[#allocation22_spill] sm:$0xff] %v5033_v57  ;;  %v5038_v47 = vmul.f32 0.70710677, %v5033_v57  ;;  %v2751_v34 = vadd.f32 0.00028619796, %v2750_v61  ;;  %v2205_v46 = vmul.f32 %v4854_v53, %v2195_v23  ;;  %v5073_v57 = vmul.f32 %v4872_v21, %v2250_v14 }
 0x9f2   : > { %v2762_v26 = vadd.f32 0.001143296, %v2761_v37  ;;  %v2120_v37 = vmul.f32 %v4866_v59, %v4949_v6  ;;  %5740 = vst [vmem:[#allocation26_spill] sm:$0xff] %v5067_v27 }
 0x9f3   : > { %5737 = vst [vmem:[#allocation23_spill] sm:$0xff] %v5038_v47  ;;  %v2788_v44 = vmul.f32 %v5038_v47, %v5038_v47  ;;  %v2752_v17 = vmul.f32 %v2751_v34, %v5035_v13 }
 0x9f4   : > { %v2763_v38 = vmul.f32 %v2762_v26, %v5035_v13  ;;  %5741 = vst [vmem:[#allocation27_spill] sm:$0xff] %v5073_v57  ;;  %v5096_v57 = vmul.f32 %v4974_v50, %v2556_v4 }
 0x9f5   : > { %v5046_v62 = vmin.f32 %v2788_v44, 16.0  ;;  %v2753_v44 = vadd.f32 0.0036580483, %v2752_v17 }
 0x9f6   : > { %v2764_v15 = vadd.f32 0.014752088, %v2763_v38  ;;  %v5078_v38 = vmul.f32 %v4866_v59, %v4825_v36  ;;  %v2383_v36 = vmul.f32 %v4712_v31, %v4849_v39 }
 0x9f7   : > { %v2790_v47 = vmul.f32 2.1237322e-06, %v5046_v62  ;;  %v2801_v61 = vmul.f32 3.8918573e-05, %v5046_v62  ;;  %v2754_v14 = vmul.f32 %v2753_v44, %v5035_v13 }
 0x9f8   : > { %v5056_v45 = vpop.permute.xlu1 %2487  ;;  %v2765_v17 = vmul.f32 %v2764_v15, %v5035_v13  ;;  %v2328_v15 = vmul.f32 %v4953_v16, %v4969_v40  ;;  %v2498_v40 = vmul.f32 %v4720_v35, %v4849_v39  ;;  %v2121_v35 = vmul.f32 %v4866_v59, %v5000_v3 }
 0x9f9   : > { %5739 = vst [vmem:[#allocation25_spill] sm:$0xff] %v5056_v45  ;;  %v2791_v34 = vadd.f32 0.00028619796, %v2790_v47  ;;  %v2802_v26 = vadd.f32 0.001143296, %v2801_v61  ;;  %v2253_v45 = vmul.f32 %v4946_v32, %v4914_v30  ;;  %v5086_v47 = vsel %vm2283_vm10, %v5703_v18, %v5742_v63 }
 0x9fa   : > { %5743 = vst [vmem:[#allocation28_spill] sm:$0xff] %v5086_v47  ;;  %v2213_v32 = vadd.f32 %v2205_v46, %v2120_v37  ;;  %v2766_v61 = vadd.f32 0.112945676, %v2765_v17  ;;  %v2386_v46 = vmul.f32 %v2368_v60, %v4989_v25  ;;  %v2196_v37 = vmul.f32 %v4916_v10, %v4989_v25  ;;  %v5112_v17 = vpop.permute.xlu2 %2242 }
 0x9fb   : > { %v2792_v23 = vmul.f32 %v2791_v34, %v5046_v62  ;;  %v2803_v30 = vmul.f32 %v2802_v26, %v5046_v62  ;;  %v2263_v18 = vmul.f32 %v4872_v21, %v2253_v45  ;;  %v5099_v34 = vpop.permute.xlu0 %2188  ;;  %v2325_v31 = vmul.f32 %v4687_v29, %v5086_v47 }
 0x9fc   : > { %v2767_v16 = vmul.f32 %v2766_v61, %v5035_v13  ;;  %v2338_v26 = vmul.f32 %v4900_v22, %v2328_v15  ;;  %v2755_v60 = vadd.f32 0.05243302, %v2754_v14  ;;  %v2130_v39 = vrot.slane %v5000_v3, 7 }
 0x9fd   : > { %v2793_v27 = vadd.f32 0.0036580483, %v2792_v23  ;;  %v2804_v63 = vadd.f32 0.014752088, %v2803_v30  ;;  %v2271_v45 = vadd.f32 %v2263_v18, %v2213_v32  ;;  %v2440_v29 = vmul.f32 %v4745_v48, %v5086_v47  ;;  %v5757_v47 = vld [vmem:[#allocation15_spill] sm:$0xff] }
 0x9fe   : > { %v2768_v23 = vadd.f32 0.4994258, %v2767_v16  ;;  %v2444_v18 = vmul.f32 %v4929_v2, %v5014_v7  ;;  %v2206_v15 = vmul.f32 %v4854_v53, %v2196_v37  ;;  %v2254_v14 = vmul.f32 %v4837_v33, %v4949_v6 }
 0x9ff   : > { %v2794_v44 = vmul.f32 %v2793_v27, %v5046_v62  ;;  %v2805_v4 = vmul.f32 %v2804_v63, %v5046_v62  ;;  %v2396_v27 = vmul.f32 %v4909_v0, %v2386_v46  ;;  %v5129_v61 = vmul.f32 %v4900_v22, %v2325_v31 }
 0xa00   : > { %v2769_v30 = vmul.f32 %v2768_v23, %v5035_v13  ;;  %v2557_v48 = vmul.f32 %v4770_v43, %v4861_v12  ;;  %v2346_v46 = vadd.f32 %v2338_v26, %v2271_v45  ;;  %v2756_v16 = vmul.f32 %v2755_v60, %v5035_v13 }
 0xa01   : > { %v2806_v25 = vadd.f32 0.112945676, %v2805_v4  ;;  %v2795_v32 = vadd.f32 0.05243302, %v2794_v44  ;;  %v2214_v4 = vadd.f32 %v2206_v15, %v2121_v35  ;;  %v5744_v37 = vrot.slane %v4949_v6, 7 }
 0xa02   : > { %v5117_v10 = vpop.permute.xlu1 %2599  ;;  %v5135_v2 = vadd.f32 1.0, %v2769_v30  ;;  %v2329_v31 = vmul.f32 %v4880_v41, %v5014_v7  ;;  %v2404_v23 = vadd.f32 %v2396_v27, %v2346_v46  ;;  %v2454_v43 = vmul.f32 %v4938_v20, %v2444_v18  ;;  %v5156_v35 = vpop.permute.xlu2 %2317 }
 0xa03   : > { %v2807_v63 = vmul.f32 %v2806_v25, %v5046_v62  ;;  %v2136_v33 = vsel %vm2134_vm9, %v5744_v37, %v2130_v39  ;;  %v2796_v12 = vmul.f32 %v2795_v32, %v5046_v62  ;;  %v2264_v45 = vmul.f32 %v4872_v21, %v2254_v14  ;;  %v2372_v7 = vpop.permute.xlu0 %2371 }
 0xa04   : > { %3640 = vrcp.f32 %v5135_v2  ;;  %v5150_v26 = vmul.f32 %v4909_v0, %v2383_v36  ;;  %v2441_v6 = vmul.f32 %v4804_v8, %v4893_v28  ;;  %v2502_v41 = vmul.f32 %v4994_v58, %v2136_v33 }
 0xa05   : > { %v2808_v44 = vadd.f32 0.4994258, %v2807_v63  ;;  %v2499_v25 = vmul.f32 %v4756_v51, %v4887_v55  ;;  %v5161_v27 = vmul.f32 %v4964_v49, %v2498_v40  ;;  %v2757_v18 = vadd.f32 0.18741608, %v2756_v16 }
 0xa06   : > { %v2615_v36 = vmul.f32 %v4737_v9, %v4933_v19  ;;  %v2272_v30 = vadd.f32 %v2264_v45, %v2214_v4  ;;  %v2339_v8 = vmul.f32 %v4900_v22, %v2329_v31  ;;  %v2614_v32 = vmul.f32 %v4793_v56, %v4893_v28 }
 0xa07   : > { %v2809_v60 = vmul.f32 %v2808_v44, %v5046_v62  ;;  %v5169_v58 = vmul.f32 %v4974_v50, %v2557_v48  ;;  %v2462_v15 = vadd.f32 %v2454_v43, %v2404_v23  ;;  %v5172_v51 = vmul.f32 %v4938_v20, %v2440_v29 }
 0xa08   : > { %v2797_v55 = vadd.f32 0.18741608, %v2796_v12  ;;  %v2560_v40 = vmul.f32 %v5044_v1, %v5000_v3  ;;  %v2387_v63 = vmul.f32 %v2372_v7, %v2136_v33  ;;  %v5177_v19 = vmul.f32 %v4938_v20, %v2441_v6 }
 0xa09   : > { %v5179_v46 = vadd.f32 1.0, %v2809_v60  ;;  %v2512_v28 = vmul.f32 %v4964_v49, %v2502_v41  ;;  %v5188_v29 = vmul.f32 %v4964_v49, %v2499_v25  ;;  %v2758_v16 = vmul.f32 %v2757_v18, %v5035_v13 }
 0xa0a   : > { %v5181_v56 = vpop.eup %3640  ;;  %v5192_v1 = vmul.f32 %v4979_v54, %v2615_v36  ;;  %v2347_v4 = vadd.f32 %v2339_v8, %v2272_v30  ;;  %v5195_v37 = vmul.f32 %v4979_v54, %v2614_v32  ;;  %v2798_v12 = vmul.f32 %v2797_v55, %v5046_v62 }
 0xa0b   : > { %v2184_v14 = vpop.permute.xlu1 %2183  ;;  %v2772_v31 = vmul.f32 %v5181_v56, %v5135_v2  ;;  %v2520_v44 = vadd.f32 %v2512_v28, %v2462_v15  ;;  %v2570_v45 = vmul.f32 %v4974_v50, %v2560_v40  ;;  %v2397_v13 = vmul.f32 %v4909_v0, %v2387_v63  ;;  %v5227_v15 = vpop.permute.xlu2 %2379 }
 0xa0c   : > { %v2109_v9 = vpop.f32.mrf.mxu1  ;;  %5745 = vst [vmem:[#allocation29_spill] sm:$0xff] %v5195_v37  ;;  %v2255_v6 = vmul.f32 %v5112_v17, %v5000_v3  ;;  %3642 = vrcp.f32 %v5179_v46  ;;  %v5746_v60 = vrot.slane %v5000_v3, 1  ;;  %v5214_v7 = vmul.f32 0.5, %v5020_v24  ;;  %v5748_v24 = vld [vmem:[#allocation22_spill] sm:$0xff] }
 0xa0d   : > { %v5185_v48 = vadd.f32 %v4819_v11, %v2109_v9  ;;  %v2759_v25 = vadd.f32 1.1283791, %v2758_v16  ;;  %v2782_v62 = vand.u32 2147483648, %v5135_v2  ;;  %v2197_v18 = vmul.f32 %v2184_v14, %v2136_v33  ;;  %v5750_v9 = vld [vmem:[#allocation25_spill] sm:$0xff] }
 0xa0e   : > { %5747 = vst [vmem:[#allocation30_spill] sm:$0xff] %v5214_v7  ;;  %v2773_v30 = vsub.f32 1.0, %v2772_v31  ;;  %v5225_v8 = vadd.f32 %v2570_v45, %v2520_v44  ;;  %v2405_v32 = vadd.f32 %v2397_v13, %v2347_v4  ;;  %v5230_v55 = vmul.f32 0.5, %v5748_v24  ;;  %v5751_v4 = vld [vmem:[#allocation21_spill] sm:$0xff] }
 0xa0f   : > { %v2282_v23 = vrot.slane %v5185_v48, 1  ;;  %v2131_v43 = vrot.slane %v5185_v48, 7  ;;  %v2799_v40 = vadd.f32 1.1283791, %v2798_v12  ;;  %v2265_v33 = vmul.f32 %v4872_v21, %v2255_v6 }
 0xa10   : > { %5749 = vst [vmem:[#allocation22_spill] sm:$0xff] %v5230_v55  ;;  %v2780_v63 = vand.u32 2147483647, %v5135_v2  ;;  %v5244_v31 = vmul.f32 %v2759_v25, %v5751_v4  ;;  %vm2776_vm11 = vweird.f32 %v5135_v2  ;;  %v2207_v12 = vmul.f32 %v4854_v53, %v2197_v18  ;;  %v3309_v18 = vld [vmem:[%s5683_s13 + $0x38] sm:$0xff] }
 0xa11   : > { %v5211_v41 = vsel %vm2283_vm10, %v5746_v60, %v2282_v23  ;;  %v5221_v17 = vsel %vm2134_vm9, %v2130_v39, %v2131_v43  ;;  %v2122_v45 = vmul.f32 %v4866_v59, %v5185_v48  ;;  %v2774_v13 = vmul.f32 %v5181_v56, %v2773_v30  ;;  %3076 = vmatpush.bf16.msra.mxu3 %v3309_v18  ;;  %v5769_v2 = vld [vmem:[#allocation13_spill] sm:$0xff] }
 0xa12   : > { %v2445_v36 = vmul.f32 %v5028_v42, %v5211_v41  ;;  %v2822_v42 = vand.u32 2147483648, %v5179_v46  ;;  %v2503_v28 = vmul.f32 %v5750_v9, %v5221_v17  ;;  %v5247_v44 = vpop.eup %3642  ;;  %v2783_v6 = vor.u32 1.1754944e-38, %v2782_v62 }
 0xa13   : > { %v2820_v25 = vand.u32 2147483647, %v5179_v46  ;;  %vm2777_vm12 = vweird.f32 %v5181_v56  ;;  %vm5265_vm13 = vcmp.eq.f32.partialorder %v2780_v63, 8.507059e+37  ;;  %v2812_v63 = vmul.f32 %v5247_v44, %v5179_v46  ;;  %v5308_v18 = vpop.permute.xlu2 %2437 }
 0xa14   : > { %v2455_v3 = vmul.f32 %v4938_v20, %v2445_v36  ;;  %v5234_v14 = vpop.permute.xlu1 %2246  ;;  %v2111_v39 = vpop.f32.mrf.mxu1  ;;  %v5269_v30 = vor.u32 1.1754944e-38, %v2822_v42  ;;  %v5758_v20 = vld [vmem:[#allocation11_spill] sm:$0xff]  ;;  %vm2816_vm14 = vweird.f32 %v5179_v46  ;;  %5762 = vst [vmem:[#allocation21_spill] sm:$0xff] %v5308_v18  ;;  %vm5322_vm15 = vmor %vm2776_vm11, %vm2777_vm12  ;;  %vm2817_vm2 = vweird.f32 %v5247_v44 }
 0xa15   : > { %v5241_v16 = vadd.f32 %v4819_v11, %v2111_v39  ;;  %v5752_v11 = vld [vmem:[#allocation23_spill] sm:$0xff]  ;;  %v5753_v39 = vld [vmem:[#allocation20_spill] sm:$0xff]  ;;  %vm5326_vm1 = vcmp.eq.f32.partialorder %v2820_v25, 8.507059e+37  ;;  %v2618_v62 = vmul.f32 %v5117_v10, %v5211_v41  ;;  %vm2818_vm3 = vmor %vm2816_vm14, %vm2817_vm2 }
 0xa16   : > { %v2463_v60 = vadd.f32 %v2455_v3, %v2405_v32  ;;  %v5255_v24 = vmul.f32 %v2799_v40, %v5752_v11  ;;  %v2561_v9 = vmul.f32 %v5753_v39, %v5185_v48  ;;  %v2513_v32 = vmul.f32 %v4964_v49, %v2503_v28 }
 0xa17   : > { %v2124_v36 = vrot.slane %v5241_v16, 7  ;;  %v2275_v4 = vrot.slane %v5241_v16, 1  ;;  %v5756_v40 = vrot.slane %v4830_v52, 7  ;;  %v2215_v39 = vadd.f32 %v2207_v12, %v2122_v45  ;;  %v5761_v12 = vld [vmem:[#allocation10_spill] sm:$0xff] }
 0xa18   : > { %v2249_v42 = vmul.f32 %v5757_v47, %v5241_v16  ;;  %v2775_v49 = vadd.f32 %v5181_v56, %v2774_v13  ;;  %v2521_v55 = vadd.f32 %v2513_v32, %v2463_v60  ;;  %v2330_v45 = vmul.f32 %v5156_v35, %v5211_v41  ;;  %v2376_v13 = vpop.permute.xlu0 %2375 }
 0xa19   : > { %v5276_v3 = vsel %vm2134_vm9, %v2124_v36, %v5756_v40  ;;  %v5280_v11 = vsel %vm2134_vm9, %v2131_v43, %v2124_v36  ;;  %v5291_v40 = vsel %vm2283_vm10, %v2282_v23, %v2275_v4  ;;  %v5759_v43 = vrot.slane %v4830_v52, 1 }
 0xa1a   : > { %v2192_v28 = vmul.f32 %v5758_v20, %v5276_v3  ;;  %v2191_v47 = vmul.f32 %v5761_v12, %v5280_v11  ;;  %v2198_v20 = vmul.f32 %v5099_v34, %v5221_v17  ;;  %v2571_v60 = vmul.f32 %v4974_v50, %v2561_v9  ;;  %v3308_v34 = vld [vmem:[%s5683_s13 + $0x30] sm:$0xff] }
 0xa1b   : > { %v5297_v36 = vsel %vm2283_vm10, %v2275_v4, %v5759_v43  ;;  %v5763_v4 = vld [vmem:[#allocation24_spill] sm:$0xff]  ;;  %v2813_v9 = vsub.f32 1.0, %v2812_v63  ;;  %v2779_v50 = vsel %vm5322_vm15, %v5181_v56, %v2775_v49  ;;  %v2382_v18 = vmul.f32 %v5769_v2, %v5276_v3  ;;  %v5770_v63 = vld [vmem:[#allocation26_spill] sm:$0xff]  ;;  %3077 = vmatpush.bf16.msra.mxu3 %v3308_v34 }
 0xa1c   : > { %5760 = vst [vmem:[#allocation25_spill] sm:$0xff] %v5297_v36  ;;  %v2202_v23 = vmul.f32 %v4854_v53, %v2192_v28  ;;  %v2619_v32 = vmul.f32 %v5763_v4, %v5291_v40  ;;  %v5764_v43 = vld [vmem:[#allocation12_spill] sm:$0xff]  ;;  %v2201_v52 = vmul.f32 %v4854_v53, %v2191_v47  ;;  %v2273_v4 = vadd.f32 %v2265_v33, %v2215_v39 }
 0xa1d   : > { %v2322_v5 = vpop.permute.xlu1 %2321  ;;  %v2324_v12 = vmul.f32 %v5764_v43, %v5297_v36  ;;  %v2259_v43 = vmul.f32 %v4872_v21, %v2249_v42  ;;  %v2579_v36 = vadd.f32 %v2571_v60, %v2521_v55  ;;  %v2388_v37 = vmul.f32 %v2376_v13, %v5221_v17 }
 0xa1e   : > { %v2210_v47 = vadd.f32 %v2202_v23, %v5078_v38  ;;  %v2629_v7 = vmul.f32 %v4979_v54, %v2619_v32  ;;  %v2209_v25 = vadd.f32 %v2201_v52, %v5770_v63  ;;  %v5771_v38 = vld [vmem:[#allocation27_spill] sm:$0xff]  ;;  %v2784_v49 = vsel %vm5265_vm13, %v2783_v6, %v2779_v50 }
 0xa1f   : > { %v2334_v33 = vmul.f32 %v4900_v22, %v2324_v12  ;;  %v2814_v56 = vmul.f32 %v5247_v44, %v2813_v9  ;;  %v2208_v55 = vmul.f32 %v4854_v53, %v2198_v20  ;;  %v2123_v52 = vmul.f32 %v4866_v59, %v5241_v16  ;;  %v5772_v59 = vld [vmem:[#allocation19_spill] sm:$0xff] }
 0xa20   : > { %v2268_v39 = vadd.f32 %v5771_v38, %v2210_v47  ;;  %v2637_v42 = vadd.f32 %v2629_v7, %v2579_v36  ;;  %v2267_v23 = vadd.f32 %v2259_v43, %v2209_v25  ;;  %v2785_v13 = vmul.f32 %v2784_v49, %v5244_v31  ;;  %v5773_v38 = vld [vmem:[#allocation29_spill] sm:$0xff] }
 0xa21   : > { %v2392_v60 = vmul.f32 %v4909_v0, %v2382_v18  ;;  %v2815_v7 = vadd.f32 %v5247_v44, %v2814_v56  ;;  %v2256_v50 = vmul.f32 %v5234_v14, %v5185_v48  ;;  %v2331_v53 = vmul.f32 %v2322_v5, %v5291_v40  ;;  %v2550_v5 = vpop.permute.xlu2 %2549 }
 0xa22   : > { %v2343_v17 = vadd.f32 %v5129_v61, %v2268_v39  ;;  %v2342_v32 = vadd.f32 %v2334_v33, %v2267_v23  ;;  %v5364_v61 = vadd.f32 %v5772_v59, %v2637_v42  ;;  %v3256_v36 = vclamps-f32 %v2785_v13, 1.0  ;;  %v5775_v23 = vld [vmem:[#allocation22_spill] sm:$0xff] }
 0xa23   : > { %v2819_v20 = vsel %vm2818_vm3, %v5247_v44, %v2815_v7  ;;  %v2628_v10 = vmul.f32 %v4979_v54, %v2618_v62  ;;  %v2340_v48 = vmul.f32 %v4900_v22, %v2330_v45  ;;  %v2216_v41 = vadd.f32 %v2208_v55, %v2123_v52  ;;  %v5776_v55 = vld [vmem:[#allocation25_spill] sm:$0xff]  ;;  %v5778_v62 = vld [vmem:[#allocation18_spill] sm:$0xff] }
 0xa24   : > { %v2401_v6 = vadd.f32 %v5150_v26, %v2343_v17  ;;  %v2400_v31 = vadd.f32 %v2392_v60, %v2342_v32  ;;  %v2824_v46 = vsel %vm5326_vm1, %v5269_v30, %v2819_v20  ;;  %v2398_v18 = vmul.f32 %v4909_v0, %v2388_v37  ;;  %v5777_v52 = vld [vmem:[#allocation21_spill] sm:$0xff] }
 0xa25   : > { %v2825_v34 = vmul.f32 %v2824_v46, %v5255_v24  ;;  %v2636_v44 = vadd.f32 %v2628_v10, %v5225_v8  ;;  %v2266_v35 = vmul.f32 %v4872_v21, %v2256_v50  ;;  %v2341_v45 = vmul.f32 %v4900_v22, %v2331_v53  ;;  %v3306_v53 = vld [vmem:[%s5683_s13 + $0x20] sm:$0xff] }
 0xa26   : > { %v2434_v14 = vpop.permute.xlu1 %2433  ;;  %v2459_v26 = vadd.f32 %v5177_v19, %v2401_v6  ;;  %v2458_v12 = vadd.f32 %v5172_v51, %v2400_v31  ;;  %v5381_v19 = vmul.f32 0.70710677, %v5364_v61  ;;  %v2990_v37 = vadd.f32 1.0, %v3256_v36  ;;  %v5779_v36 = vld [vmem:[#allocation16_spill] sm:$0xff] }
 0xa27   : > { %v3257_v28 = vclamps-f32 %v2825_v34, 1.0  ;;  %v5385_v47 = vadd.f32 %v5772_v59, %v2636_v44  ;;  %v2348_v51 = vadd.f32 %v2340_v48, %v2273_v4  ;;  %v2274_v24 = vadd.f32 %v2266_v35, %v2216_v41 }
 0xa28   : > { %v2517_v9 = vadd.f32 %v5188_v29, %v2459_v26  ;;  %v2516_v30 = vadd.f32 %v5161_v27, %v2458_v12  ;;  %v2868_v21 = vmul.f32 %v5381_v19, %v5381_v19  ;;  %v2562_v22 = vmul.f32 %v2550_v5, %v5241_v16  ;;  %v2496_v29 = vpop.permute.xlu0 %2495  ;;  %v5774_v16 = vld [vmem:[#allocation30_spill] sm:$0xff]  ;;  %v5780_v5 = vld [vmem:[#allocation17_spill] sm:$0xff] }
 0xa29   : > { %v2389_v43 = vmul.f32 %v5227_v15, %v5280_v11  ;;  %v2991_v2 = vadd.f32 1.0, %v3257_v28  ;;  %v2349_v63 = vadd.f32 %v2341_v45, %v2274_v24  ;;  %v5396_v4 = vmul.f32 0.70710677, %v5385_v47 }
 0xa2a   : > { %v2575_v8 = vadd.f32 %v5169_v58, %v2517_v9  ;;  %v2574_v27 = vadd.f32 %v5096_v57, %v2516_v30  ;;  %v5398_v33 = vmin.f32 %v2868_v21, 16.0  ;;  %v2446_v58 = vmul.f32 %v2434_v14, %v5291_v40  ;;  %v3305_v9 = vld [vmem:[%s5683_s13 + $0x18] sm:$0xff] }
 0xa2b   : > { %v5403_v42 = vmul.f32 %v2990_v37, %v5774_v16  ;;  %v5406_v15 = vmul.f32 %v2991_v2, %v5775_v23  ;;  %v2505_v57 = vmul.f32 %v2496_v29, %v5276_v3  ;;  %v2828_v40 = vmul.f32 %v5396_v4, %v5396_v4  ;;  %v3304_v2 = vld [vmem:[%s5683_s13 + $0x10] sm:$0xff] }
 0xa2c   : > { %v2633_v25 = vadd.f32 %v5192_v1, %v2575_v8  ;;  %v2632_v39 = vadd.f32 %v5773_v38, %v2574_v27  ;;  %v3307_v1 = vld [vmem:[%s5683_s13 + $0x28] sm:$0xff]  ;;  %v2870_v56 = vmul.f32 2.1237322e-06, %v5398_v33  ;;  %v2447_v17 = vmul.f32 %v5777_v52, %v5776_v55 }
 0xa2d   : > { %v2399_v60 = vmul.f32 %v4909_v0, %v2389_v43  ;;  %v3005_v32 = vpack.c.bf16 %v5406_v15, %v5403_v42  ;;  %v2406_v7 = vadd.f32 %v2398_v18, %v2348_v51  ;;  %v5427_v50 = vmul.f32 %v5778_v62, %v2562_v22  ;;  %3078 = vmatpush.bf16.msra.mxu3 %v3307_v1  ;;  %v2608_v0 = vpop.permute.xlu2 %2607 }
 0xa2e   : > { %v5413_v49 = vadd.f32 %v5772_v59, %v2633_v25  ;;  %v5422_v3 = vadd.f32 %v5772_v59, %v2632_v39  ;;  %v5435_v31 = vmin.f32 %v2828_v40, 16.0  ;;  %v2456_v20 = vmul.f32 %v5779_v36, %v2446_v58  ;;  %v5781_v40 = vld [vmem:[#allocation14_spill] sm:$0xff] }
 0xa2f   : > { %v2492_v13 = vpop.permute.xlu1 %2491  ;;  %v2407_v10 = vadd.f32 %v2399_v60, %v2349_v63  ;;  %v2871_v41 = vadd.f32 0.00028619796, %v2870_v56  ;;  %v2881_v18 = vmul.f32 3.8918573e-05, %v5398_v33  ;;  %v2515_v12 = vmul.f32 %v5780_v5, %v2505_v57 }
 0xa30   : > { %v5433_v6 = vmul.f32 0.70710677, %v5413_v49  ;;  %v5439_v48 = vmul.f32 0.70710677, %v5422_v3  ;;  %v2830_v26 = vmul.f32 2.1237322e-06, %v5435_v31  ;;  %v2457_v34 = vmul.f32 %v5779_v36, %v2447_v17 }
 0xa31   : > { %v2841_v46 = vmul.f32 3.8918573e-05, %v5435_v31  ;;  %v2872_v35 = vmul.f32 %v2871_v41, %v5398_v33  ;;  %v5452_v45 = vmul.f32 %v2608_v0, %v5776_v55  ;;  %3079 = vmatpush.bf16.msra.mxu3 %v3306_v53  ;;  %v2464_v51 = vadd.f32 %v2456_v20, %v2406_v7 }
 0xa32   : > { %v2708_v14 = vmul.f32 %v5433_v6, %v5433_v6  ;;  %v2668_v44 = vmul.f32 %v5439_v48, %v5439_v48  ;;  %v2831_v28 = vadd.f32 0.00028619796, %v2830_v26  ;;  %v2465_v24 = vadd.f32 %v2457_v34, %v2407_v10 }
 0xa33   : > { %v2842_v37 = vadd.f32 0.001143296, %v2841_v46  ;;  %v2873_v21 = vadd.f32 0.0036580483, %v2872_v35  ;;  %v2882_v27 = vadd.f32 0.001143296, %v2881_v18  ;;  %v2504_v39 = vmul.f32 %v2492_v13, %v5280_v11 }
 0xa34   : > { %v5457_v30 = vmin.f32 %v2708_v14, 16.0  ;;  %v5459_v8 = vmin.f32 %v2668_v44, 16.0  ;;  %v2832_v43 = vmul.f32 %v2831_v28, %v5435_v31  ;;  %v3303_v11 = vld [vmem:[%s5683_s13 + $0x8] sm:$0xff] }
 0xa35   : > { %v2843_v58 = vmul.f32 %v2842_v37, %v5435_v31  ;;  %v2874_v38 = vmul.f32 %v2873_v21, %v5398_v33  ;;  %3080 = vmatpush.bf16.msra.mxu3 %v3305_v9  ;;  %v2883_v10 = vmul.f32 %v2882_v27, %v5398_v33  ;;  %v2514_v41 = vmul.f32 %v5780_v5, %v2504_v39  ;;  %v3302_v5 = vld [vmem:[%s5683_s13] sm:$0xff] }
 0xa36   : > { %v2710_v22 = vmul.f32 2.1237322e-06, %v5457_v30  ;;  %v2721_v29 = vmul.f32 3.8918573e-05, %v5457_v30  ;;  %v2670_v63 = vmul.f32 2.1237322e-06, %v5459_v8  ;;  %v2523_v27 = vadd.f32 %v2515_v12, %v2465_v24 }
 0xa37   : > { %v2681_v25 = vmul.f32 3.8918573e-05, %v5459_v8  ;;  %v2833_v1 = vadd.f32 0.0036580483, %v2832_v43  ;;  %v2844_v17 = vadd.f32 0.014752088, %v2843_v58  ;;  %v2522_v58 = vadd.f32 %v2514_v41, %v2464_v51 }
 0xa38   : > { %v2554_v16 = vpop.permute.xlu1 %2553  ;;  %v2711_v23 = vadd.f32 0.00028619796, %v2710_v22  ;;  %v2722_v57 = vadd.f32 0.001143296, %v2721_v29  ;;  %v2671_v55 = vadd.f32 0.00028619796, %v2670_v63 }
 0xa39   : > { %v2563_v56 = vmul.f32 %v2554_v16, %v5781_v40  ;;  %v2682_v52 = vadd.f32 0.001143296, %v2681_v25  ;;  %v2834_v53 = vmul.f32 %v2833_v1, %v5435_v31  ;;  %v2875_v0 = vadd.f32 0.05243302, %v2874_v38  ;;  %3081 = vmatpush.bf16.msra.mxu3 %v3304_v2  ;;  %v5782_v1 = vld [vmem:[#allocation28_spill] sm:$0xff] }
 0xa3a   : > { %v2712_v60 = vmul.f32 %v2711_v23, %v5457_v30  ;;  %v2723_v7 = vmul.f32 %v2722_v57, %v5457_v30  ;;  %v2672_v13 = vmul.f32 %v2671_v55, %v5459_v8  ;;  %v2845_v20 = vmul.f32 %v2844_v17, %v5435_v31 }
 0xa3b   : > { %v2683_v36 = vmul.f32 %v2682_v52, %v5459_v8  ;;  %v2835_v46 = vadd.f32 0.05243302, %v2834_v53  ;;  %v2573_v18 = vmul.f32 %v5778_v62, %v2563_v56  ;;  %v2876_v21 = vmul.f32 %v2875_v0, %v5398_v33 }
 0xa3c   : > { %v2713_v14 = vadd.f32 0.0036580483, %v2712_v60  ;;  %v2724_v26 = vadd.f32 0.014752088, %v2723_v7  ;;  %v2673_v34 = vadd.f32 0.0036580483, %v2672_v13 }
 0xa3d   : > { %v2684_v44 = vadd.f32 0.014752088, %v2683_v36  ;;  %v2846_v35 = vadd.f32 0.112945676, %v2845_v20  ;;  %v2836_v37 = vmul.f32 %v2835_v46, %v5435_v31  ;;  %v2884_v43 = vadd.f32 0.014752088, %v2883_v10  ;;  %3082 = vmatpush.bf16.msra.mxu3 %v3303_v11 }
 0xa3e   : > { %v2714_v9 = vmul.f32 %v2713_v14, %v5457_v30  ;;  %v2725_v28 = vmul.f32 %v2724_v26, %v5457_v30  ;;  %v2674_v22 = vmul.f32 %v2673_v34, %v5459_v8  ;;  %v2581_v57 = vadd.f32 %v2573_v18, %v2523_v27 }
 0xa3f   : > { %v2685_v29 = vmul.f32 %v2684_v44, %v5459_v8  ;;  %v2847_v62 = vmul.f32 %v2846_v35, %v5435_v31  ;;  %v2837_v25 = vadd.f32 0.18741608, %v2836_v37  ;;  %v2877_v17 = vadd.f32 0.18741608, %v2876_v21 }
 0xa40   : > { %v2715_v2 = vadd.f32 0.05243302, %v2714_v9  ;;  %v2726_v63 = vadd.f32 0.112945676, %v2725_v28  ;;  %v2675_v39 = vadd.f32 0.05243302, %v2674_v22  ;;  %v2885_v53 = vmul.f32 %v2884_v43, %v5398_v33 }
 0xa41   : > { %v2612_v38 = vpop.permute.xlu1 %2611  ;;  %v2686_v16 = vadd.f32 0.112945676, %v2685_v29  ;;  %v2848_v23 = vadd.f32 0.4994258, %v2847_v62  ;;  %3083 = vmatpush.bf16.msra.mxu3 %v3302_v5  ;;  %v2838_v13 = vmul.f32 %v2837_v25, %v5435_v31  ;;  %v2580_v14 = vadd.f32 %v5427_v50, %v2522_v58 }
 0xa42   : > { %v2621_v40 = vmul.f32 %v2612_v38, %v5782_v1  ;;  %v2716_v56 = vmul.f32 %v2715_v2, %v5457_v30  ;;  %v2727_v55 = vmul.f32 %v2726_v63, %v5457_v30  ;;  %v2676_v52 = vmul.f32 %v2675_v39, %v5459_v8 }
 0xa43   : > { %v2687_v12 = vmul.f32 %v2686_v16, %v5459_v8  ;;  %v2849_v24 = vmul.f32 %v2848_v23, %v5435_v31  ;;  %v2878_v31 = vmul.f32 %v2877_v17, %v5398_v33  ;;  %v2630_v44 = vmul.f32 %v4979_v54, %v5452_v45 }
 0xa44   : > { %v2631_v51 = vmul.f32 %v4979_v54, %v2621_v40  ;;  %v2717_v60 = vadd.f32 0.18741608, %v2716_v56  ;;  %v2728_v7 = vadd.f32 0.4994258, %v2727_v55  ;;  %v2677_v0 = vadd.f32 0.18741608, %v2676_v52 }
 0xa45   : > { %v2688_v11 = vadd.f32 0.4994258, %v2687_v12  ;;  %v5504_v36 = vadd.f32 1.0, %v2849_v24  ;;  %v2886_v50 = vadd.f32 0.112945676, %v2885_v53  ;;  %v2638_v37 = vadd.f32 %v2630_v44, %v2580_v14 }
 0xa46   : > { %v2639_v20 = vadd.f32 %v2631_v51, %v2581_v57  ;;  %v2718_v10 = vmul.f32 %v2717_v60, %v5457_v30  ;;  %v2729_v41 = vmul.f32 %v2728_v7, %v5457_v30  ;;  %v2678_v26 = vmul.f32 %v2677_v0, %v5459_v8 }
 0xa47   : > { %v2689_v46 = vmul.f32 %v2688_v11, %v5459_v8  ;;  %3644 = vrcp.f32 %v5504_v36  ;;  %v2839_v30 = vadd.f32 1.1283791, %v2838_v13  ;;  %v5530_v5 = vmul.f32 0.5, %v5422_v3 }
 0xa48   : > { %v5513_v18 = vadd.f32 %v5772_v59, %v2639_v20  ;;  %v5515_v34 = vadd.f32 1.0, %v2729_v41  ;;  %v2679_v8 = vadd.f32 1.1283791, %v2678_v26  ;;  %v2719_v28 = vadd.f32 1.1283791, %v2718_v10 }
 0xa49   : > { %v5520_v35 = vadd.f32 1.0, %v2689_v46  ;;  %v5533_v54 = vmul.f32 0.5, %v5413_v49  ;;  %v5535_v45 = vadd.f32 1.1283791, %v2878_v31  ;;  %v5540_v29 = vmul.f32 %v2839_v30, %v5396_v4 }
 0xa4a   : > { %v5523_v9 = vmul.f32 0.70710677, %v5513_v18  ;;  %3646 = vrcp.f32 %v5515_v34  ;;  %vm2856_vm4 = vweird.f32 %v5504_v36  ;;  %v2860_v62 = vand.u32 2147483647, %v5504_v36 }
 0xa4b   : > { %3648 = vrcp.f32 %v5520_v35  ;;  %v2887_v43 = vmul.f32 %v2886_v50, %v5398_v33  ;;  %v2680_v3 = vmul.f32 %v2679_v8, %v5439_v48  ;;  %v2720_v49 = vmul.f32 %v2719_v28, %v5433_v6 }
 0xa4c   : > { %v2948_v21 = vmul.f32 %v5523_v9, %v5523_v9  ;;  %v2862_v2 = vand.u32 2147483648, %v5504_v36  ;;  %v2700_v63 = vand.u32 2147483647, %v5520_v35  ;;  %vm2736_vm5 = vweird.f32 %v5515_v34 }
 0xa4d   : > { %v5537_v22 = vpop.eup %3644  ;;  %v2888_v25 = vadd.f32 0.4994258, %v2887_v43  ;;  %v5555_v58 = vadd.f32 %v5772_v59, %v2638_v37  ;;  %vm2696_vm6 = vweird.f32 %v5520_v35  ;;  %v2702_v48 = vand.u32 2147483648, %v5520_v35 }
 0xa4e   : > { %v5545_v27 = vmin.f32 %v2948_v21, 16.0  ;;  %v2852_v4 = vmul.f32 %v5537_v22, %v5504_v36  ;;  %v2740_v57 = vand.u32 2147483647, %v5515_v34  ;;  %v2742_v56 = vand.u32 2147483648, %v5515_v34 }
 0xa4f   : > { %v2889_v40 = vmul.f32 %v2888_v25, %v5398_v33  ;;  %vm2857_vm7 = vweird.f32 %v5537_v22  ;;  %v5568_v55 = vmul.f32 0.70710677, %v5555_v58  ;;  %vm5573_vm8 = vcmp.eq.f32.partialorder %v2700_v63, 8.507059e+37 }
 0xa50   : > { %v3647_v38 = vpop.eup %3646  ;;  %v2950_v6 = vmul.f32 2.1237322e-06, %v5545_v27  ;;  %v2961_v39 = vmul.f32 3.8918573e-05, %v5545_v27  ;;  %v2853_v1 = vsub.f32 1.0, %v2852_v4  ;;  %vm5585_vm11 = vmor %vm2856_vm4, %vm2857_vm7  ;;  %vm5589_vm12 = vcmp.eq.f32.partialorder %v2860_v62, 8.507059e+37 }
 0xa51   : > { %v3649_v16 = vpop.eup %3648  ;;  %v2732_v23 = vmul.f32 %v3647_v38, %v5515_v34  ;;  %v5571_v24 = vadd.f32 1.0, %v2889_v40  ;;  %v2908_v33 = vmul.f32 %v5568_v55, %v5568_v55  ;;  %vm2737_vm9 = vweird.f32 %v3647_v38 }
 0xa52   : > { %v2692_v59 = vmul.f32 %v3649_v16, %v5520_v35  ;;  %v2854_v12 = vmul.f32 %v5537_v22, %v2853_v1  ;;  %v2951_v17 = vadd.f32 0.00028619796, %v2950_v6  ;;  %v2962_v7 = vadd.f32 0.001143296, %v2961_v39  ;;  %vm2738_vm13 = vmor %vm2736_vm5, %vm2737_vm9 }
 0xa53   : > { %v2733_v52 = vsub.f32 1.0, %v2732_v23  ;;  %3650 = vrcp.f32 %v5571_v24  ;;  %vm2697_vm10 = vweird.f32 %v3649_v16  ;;  %v5593_v10 = vmin.f32 %v2908_v33, 16.0 }
 0xa54   : > { %v2693_v51 = vsub.f32 1.0, %v2692_v59  ;;  %v2855_v0 = vadd.f32 %v5537_v22, %v2854_v12  ;;  %v2952_v26 = vmul.f32 %v2951_v17, %v5545_v27  ;;  %v2963_v46 = vmul.f32 %v2962_v7, %v5545_v27  ;;  %vm2698_vm14 = vmor %vm2696_vm6, %vm2697_vm10 }
 0xa55   : > { %v2734_v53 = vmul.f32 %v3647_v38, %v2733_v52  ;;  %v2703_v31 = vor.u32 1.1754944e-38, %v2702_v48  ;;  %v2743_v44 = vor.u32 1.1754944e-38, %v2742_v56  ;;  %v2863_v30 = vor.u32 1.1754944e-38, %v2862_v2 }
 0xa56   : > { %v2694_v11 = vmul.f32 %v3649_v16, %v2693_v51  ;;  %v2859_v14 = vsel %vm5585_vm11, %v5537_v22, %v2855_v0  ;;  %vm2741_vm15 = vcmp.eq.f32.partialorder %v2740_v57, 8.507059e+37  ;;  %v2910_v8 = vmul.f32 2.1237322e-06, %v5593_v10 }
 0xa57   : > { %v2735_v41 = vadd.f32 %v3647_v38, %v2734_v53  ;;  %v2921_v28 = vmul.f32 3.8918573e-05, %v5593_v10  ;;  %v2864_v22 = vsel %vm5589_vm12, %v2863_v30, %v2859_v14  ;;  %v2964_v62 = vadd.f32 0.014752088, %v2963_v46 }
 0xa58   : > { %v2695_v36 = vadd.f32 %v3649_v16, %v2694_v11  ;;  %v2911_v63 = vadd.f32 0.00028619796, %v2910_v8  ;;  %v2953_v35 = vadd.f32 0.0036580483, %v2952_v26  ;;  %v2865_v39 = vmul.f32 %v2864_v22, %v5540_v29 }
 0xa59   : > { %v2739_v50 = vsel %vm2738_vm13, %v3647_v38, %v2735_v41  ;;  %v3651_v43 = vpop.eup %3650  ;;  %v2900_v38 = vand.u32 2147483647, %v5571_v24  ;;  %v2922_v48 = vadd.f32 0.001143296, %v2921_v28  ;;  %v2880_v60 = vmul.f32 %v5535_v45, %v5381_v19 }
 0xa5a   : > { %v2699_v37 = vsel %vm2698_vm14, %v3649_v16, %v2695_v36  ;;  %v2744_v21 = vsel %vm2741_vm15, %v2743_v44, %v2739_v50  ;;  %v2892_v25 = vmul.f32 %v3651_v43, %v5571_v24  ;;  %v2902_v16 = vand.u32 2147483648, %v5571_v24 }
 0xa5b   : > { %v2704_v34 = vsel %vm5573_vm8, %v2703_v31, %v2699_v37  ;;  %v2745_v2 = vmul.f32 %v2744_v21, %v2720_v49  ;;  %v2912_v23 = vmul.f32 %v2911_v63, %v5593_v10  ;;  %v2923_v40 = vmul.f32 %v2922_v48, %v5593_v10 }
 0xa5c   : > { %v2705_v4 = vmul.f32 %v2704_v34, %v2680_v3  ;;  %v2893_v1 = vsub.f32 1.0, %v2892_v25  ;;  %v2965_v49 = vmul.f32 %v2964_v62, %v5545_v27  ;;  %vm2897_vm1 = vweird.f32 %v3651_v43 }
 0xa5d   : > { %v3255_v6 = vclamps-f32 %v2745_v2, 1.0  ;;  %v2913_v3 = vadd.f32 0.0036580483, %v2912_v23  ;;  %v2954_v56 = vmul.f32 %v2953_v35, %v5545_v27  ;;  %v2924_v17 = vadd.f32 0.014752088, %v2923_v40 }
 0xa5e   : > { %v3254_v57 = vclamps-f32 %v2705_v4, 1.0  ;;  %v2894_v12 = vmul.f32 %v3651_v43, %v2893_v1  ;;  %v2966_v51 = vadd.f32 0.112945676, %v2965_v49  ;;  %vm2896_vm2 = vweird.f32 %v5571_v24 }
 0xa5f   : > { %v2989_v59 = vadd.f32 1.0, %v3255_v6  ;;  %vm2901_vm3 = vcmp.eq.f32.partialorder %v2900_v38, 8.507059e+37  ;;  %v2925_v53 = vmul.f32 %v2924_v17, %v5593_v10  ;;  %v3258_v11 = vclamps-f32 %v2865_v39, 1.0  ;;  %vm2898_vm4 = vmor %vm2896_vm2, %vm2897_vm1 }
 0xa60   : > { %v2988_v52 = vadd.f32 1.0, %v3254_v57  ;;  %v2895_v7 = vadd.f32 %v3651_v43, %v2894_v12  ;;  %v2967_v0 = vmul.f32 %v2966_v51, %v5545_v27  ;;  %v2903_v13 = vor.u32 1.1754944e-38, %v2902_v16 }
 0xa61   : > { %v2997_v29 = vmul.f32 %v2989_v59, %v5533_v54  ;;  %v2914_v20 = vmul.f32 %v2913_v3, %v5593_v10  ;;  %v2955_v54 = vadd.f32 0.05243302, %v2954_v56  ;;  %v2926_v19 = vadd.f32 0.112945676, %v2925_v53 }
 0xa62   : > { %v2996_v33 = vmul.f32 %v2988_v52, %v5530_v5  ;;  %v2899_v14 = vsel %vm2898_vm4, %v3651_v43, %v2895_v7  ;;  %v2968_v45 = vadd.f32 0.4994258, %v2967_v0  ;;  %v2992_v36 = vadd.f32 1.0, %v3258_v11 }
 0xa63   : > { %v2904_v24 = vsel %vm2901_vm3, %v2903_v13, %v2899_v14  ;;  %v2927_v5 = vmul.f32 %v2926_v19, %v5593_v10  ;;  %v2956_v31 = vmul.f32 %v2955_v54, %v5545_v27  ;;  %v2915_v30 = vadd.f32 0.05243302, %v2914_v20 }
 0xa64   : > { %v3004_v41 = vpack.c.bf16 %v2997_v29, %v2996_v33  ;;  %v2905_v26 = vmul.f32 %v2904_v24, %v2880_v60  ;;  %v2969_v46 = vmul.f32 %v2968_v45, %v5545_v27  ;;  %v2657_v28 = vmul.f32 0.5, %v5364_v61 }
 0xa65   : > { %v2928_v50 = vadd.f32 0.4994258, %v2927_v5  ;;  %v2656_v37 = vmul.f32 0.5, %v5385_v47  ;;  %v2957_v62 = vadd.f32 0.18741608, %v2956_v31  ;;  %v2916_v2 = vmul.f32 %v2915_v30, %v5593_v10  ;;  %v5791_v31 = vld [vmem:[#allocation4_spill] sm:$0xff] }
 0xa66   : > { %3084 = vmatmul.bf16.vlgmr.msra.gmra.mxu3 %v3004_v41  ;;  %v3259_v44 = vclamps-f32 %v2905_v26, 1.0  ;;  %v2970_v8 = vadd.f32 1.0, %v2969_v46  ;;  %v2659_v53 = vmul.f32 0.5, %v5513_v18  ;;  %v2658_v11 = vmul.f32 0.5, %v5555_v58  ;;  %v5789_v18 = vld [vmem:[#allocation2_spill] sm:$0xff]  ;;  %v5790_v26 = vld [vmem:[#allocation3_spill] sm:$0xff] }
 0xa67   : > { %v2929_v22 = vmul.f32 %v2928_v50, %v5593_v10  ;;  %v3000_v43 = vmul.f32 %v2992_v36, %v2656_v37  ;;  %v2958_v4 = vmul.f32 %v2957_v62, %v5545_v27  ;;  %v2917_v38 = vadd.f32 0.18741608, %v2916_v2  ;;  %v5794_v2 = vld [vmem:[#allocation7_spill] sm:$0xff] }
 0xa68   : > { %v2993_v21 = vadd.f32 1.0, %v3259_v44  ;;  %3652 = vrcp.f32 %v2970_v8  ;;  %v2980_v16 = vand.u32 2147483647, %v2970_v8  ;;  %v2982_v23 = vand.u32 2147483648, %v2970_v8 }
 0xa69   : > { %v2930_v63 = vadd.f32 1.0, %v2929_v22  ;;  %v2959_v61 = vadd.f32 1.1283791, %v2958_v4  ;;  %v2918_v39 = vmul.f32 %v2917_v38, %v5593_v10  ;;  %vm2976_vm6 = vweird.f32 %v2970_v8  ;;  %v5793_v22 = vld [vmem:[#allocation6_spill] sm:$0xff] }
 0xa6a   : > { %v3001_v34 = vmul.f32 %v2993_v21, %v2657_v28  ;;  %vm2981_vm8 = vcmp.eq.f32.partialorder %v2980_v16, 8.507059e+37  ;;  %v2983_v56 = vor.u32 1.1754944e-38, %v2982_v23 }
 0xa6b   : > { %3654 = vrcp.f32 %v2930_v63  ;;  %v2960_v27 = vmul.f32 %v2959_v61, %v5523_v9  ;;  %v2919_v59 = vadd.f32 1.1283791, %v2918_v39  ;;  %v2942_v3 = vand.u32 2147483648, %v2930_v63 }
 0xa6c   : > { %v3006_v35 = vpack.c.bf16 %v3001_v34, %v3000_v43  ;;  %v2940_v52 = vand.u32 2147483647, %v2930_v63  ;;  %vm2936_vm10 = vweird.f32 %v2930_v63 }
 0xa6d   : > { %v2943_v42 = vor.u32 1.1754944e-38, %v2942_v3  ;;  %v2920_v15 = vmul.f32 %v2919_v59, %v5568_v55  ;;  %v3477_v55 = vld [vmem:[%s5684_s14] ss:$0 sm:$0xff] }
 0xa6e   : > { %v3653_v25 = vpop.eup %3652  ;;  %vm2941_vm12 = vcmp.eq.f32.partialorder %v2940_v52, 8.507059e+37 }
 0xa6f   : > { %v2972_v48 = vmul.f32 %v3653_v25, %v2970_v8  ;;  %vm2977_vm5 = vweird.f32 %v3653_v25  ;;  %v5792_v8 = vld [vmem:[#allocation5_spill] sm:$0xff] }
 0xa70   : > { %vm2978_vm7 = vmor %vm2976_vm6, %vm2977_vm5 }
 0xa71   : > { %v2973_v6 = vsub.f32 1.0, %v2972_v48  ;;  %v3655_v47 = vpop.eup %3654 }
 0xa72   : > { %v2932_v57 = vmul.f32 %v3655_v47, %v2930_v63  ;;  %vm2937_vm9 = vweird.f32 %v3655_v47 }
 0xa73   : > { %v2974_v1 = vmul.f32 %v3653_v25, %v2973_v6  ;;  %vm2938_vm11 = vmor %vm2936_vm10, %vm2937_vm9  ;;  %v5796_v6 = vld [vmem:[#allocation9_spill] sm:$0xff] }
 0xa74   : > { %v2933_v40 = vsub.f32 1.0, %v2932_v57 }
 0xa75   : > { %v2975_v49 = vadd.f32 %v3653_v25, %v2974_v1 }
 0xa76   : > { %3089 = vmatmul.bf16.gmra.mxu3 %v3005_v32  ;;  %v2934_v10 = vmul.f32 %v3655_v47, %v2933_v40 }
 0xa77   : > { %v2979_v12 = vsel %vm2978_vm7, %v3653_v25, %v2975_v49  ;;  %v5795_v25 = vld [vmem:[#allocation8_spill] sm:$0xff] }
 0xa78   : > { %v2984_v17 = vsel %vm2981_vm8, %v2983_v56, %v2979_v12  ;;  %v2935_v51 = vadd.f32 %v3655_v47, %v2934_v10 }
 0xa79   : > { %v2985_v29 = vmul.f32 %v2984_v17, %v2960_v27 }
 0xa7a   : > { %v2939_v32 = vsel %vm2938_vm11, %v3655_v47, %v2935_v51 }
 0xa7b   : > { %v3261_v9 = vclamps-f32 %v2985_v29, 1.0  ;;  %v2944_v60 = vsel %vm2941_vm12, %v2943_v42, %v2939_v32 }
 0xa7c   : > { %v2945_v33 = vmul.f32 %v2944_v60, %v2920_v15 }
 0xa7d   : > { %v2995_v7 = vadd.f32 1.0, %v3261_v9 }
 0xa7e   : > { %v3260_v0 = vclamps-f32 %v2945_v33, 1.0 }
 0xa7f   : > { %v3003_v20 = vmul.f32 %v2995_v7, %v2659_v53 }
 0xa80   : > { %v2994_v13 = vadd.f32 1.0, %v3260_v0 }
 0xa82   : > { %v3002_v54 = vmul.f32 %v2994_v13, %v2658_v11 }
 0xa84   : > { %v3007_v41 = vpack.c.bf16 %v3003_v20, %v3002_v54 }
 0xa86   : > { %3094 = vmatmul.bf16.gmra.mxu3 %v3006_v35 }
 0xa96   : > { %3099 = vmatmul.bf16.gmra.mxu3 %v3007_v41 }
 0xae9   : > { %v3085_v14 = vpop.f32.mrf.mxu3 }
 0xaea   : > { %v3086_v19 = vadd.f32 %v3477_v55, %v3085_v14 }
 0xaec   : > { %v3105_v45 = vadd.f32 %v3086_v19, %v5789_v18 }
 0xaee   : > { %3113 = vst.msk [vmem:[%s496_s25] sm:$0xff] %vm509_vm0, %v3105_v45 }
 0xaf1   : > { %v3087_v58 = vpop.f32.mrf.mxu3 }
 0xaf2   : > { %v3088_v24 = vadd.f32 %v3477_v55, %v3087_v58 }
 0xaf4   : > { %v3106_v5 = vadd.f32 %v3088_v24, %v5790_v26 }
 0xaf6   : > { %3114 = vst.msk [vmem:[%s496_s25 + $0x8] sm:$0xff] %vm509_vm0, %v3106_v5 }
 0xaf9   : > { %v3090_v46 = vpop.f32.mrf.mxu3 }
 0xafa   : > { %v3091_v36 = vadd.f32 %v3477_v55, %v3090_v46 }
 0xafc   : > { %v3107_v44 = vadd.f32 %v3091_v36, %v5791_v31 }
 0xafe   : > { %3115 = vst.msk [vmem:[%s496_s25 + $0x10] sm:$0xff] %vm509_vm0, %v3107_v44 }
 0xb01   : > { %v3092_v30 = vpop.f32.mrf.mxu3 }
 0xb02   : > { %v3093_v50 = vadd.f32 %v3477_v55, %v3092_v30 }
 0xb04   : > { %v3108_v28 = vadd.f32 %v3093_v50, %v5792_v8 }
 0xb06   : > { %3116 = vst.msk [vmem:[%s496_s25 + $0x18] sm:$0xff] %vm509_vm0, %v3108_v28 }
 0xb09   : > { %v3095_v37 = vpop.f32.mrf.mxu3 }
 0xb0a   : > { %v3096_v21 = vadd.f32 %v3477_v55, %v3095_v37 }
 0xb0c   : > { %v3109_v62 = vadd.f32 %v3096_v21, %v5793_v22 }
 0xb0e   : > { %3117 = vst.msk [vmem:[%s496_s25 + $0x20] sm:$0xff] %vm509_vm0, %v3109_v62 }
 0xb11   : > { %v3097_v43 = vpop.f32.mrf.mxu3 }
 0xb12   : > { %v3098_v34 = vadd.f32 %v3477_v55, %v3097_v43 }
 0xb14   : > { %v3110_v63 = vadd.f32 %v3098_v34, %v5794_v2 }
 0xb16   : > { %3118 = vst.msk [vmem:[%s496_s25 + $0x28] sm:$0xff] %vm509_vm0, %v3110_v63 }
 0xb19   : > { %v3100_v35 = vpop.f32.mrf.mxu3 }
 0xb1a   : > { %v3101_v4 = vadd.f32 %v3477_v55, %v3100_v35 }
 0xb1c   : > { %v3111_v38 = vadd.f32 %v3101_v4, %v5795_v25 }
 0xb1e   : > { %3119 = vst.msk [vmem:[%s496_s25 + $0x30] sm:$0xff] %vm509_vm0, %v3111_v38 }
 0xb21   : > { %v3102_v48 = vpop.f32.mrf.mxu3 }
 0xb22   : > { %v3103_v61 = vadd.f32 %v3477_v55, %v3102_v48 }
 0xb24   : > { %v3112_v47 = vadd.f32 %v3103_v61, %v5796_v6 }
 0xb26   : > { %3120 = vst.msk [vmem:[%s496_s25 + $0x38] sm:$0xff] %vm509_vm0, %v3112_v47 }
 0xb27 PF: > { %s25_s18 = sadd.s32 1, %s3670_s18  }
 0xb28   : > { %p22_p4 = scmp.ge.s32.totalorder %s25_s18, 4  }
 0xb2a   :  { %24 = sbr.rel (!%p22_p4) target bundleno = 1 (0x1), region = 110 }

</bundles_post_ra>
